<compile_context>
chip_gen: v6e
topology: v6e:2x2x1
jax: 0.10.0
libtpu: 0.0.40
codegen_flags: <defaults>
</compile_context>

<pallas_src>
import functools

import jax
import jax.numpy as jnp
from jax.experimental import pallas as pl
from jax.experimental.pallas import tpu as pltpu

RELU_ONLY = {0, 5, 10, 12, 17, 19, 24, 26}
RELU_POOL = {2, 7, 14, 21, 28}

_VMEM_LIMIT = 64 * 1024 * 1024  # raise the default scoped limit (16 MiB v5e / 32 MiB v6e);
                                # still within v7x's 64 MiB physical VMEM per TensorCore.


# ----------------------------------------------------------------------------- kernels
def conv3x3_relu_pool_kernel(x_ref, w_ref, b_ref, y_ref, xpad_ref, *, pool):
    """Fused Conv2d(3x3, stride=1, pad=1) + bias + ReLU (+ optional 2x2/2 max pool).

    x_ref   : (1, H, W, Cin)        bf16 input tile (one image, NHWC)
    w_ref   : (9*Cin, Cout)         bf16 conv weight as an im2col matrix,
                                    row index = (kh*3 + kw)*Cin + cin
    b_ref   : (1, Cout)             f32 conv bias
    y_ref   : (1, Hout, Wout, Cout) f32 activation (pooled when pool=True)
    xpad_ref: (H+2, W+2, Cin)       bf16 VMEM scratch holding the zero-padded image
    """
    _, H, W, Cin = x_ref.shape
    Cout = w_ref.shape[1]

    # Build the pad=1 halo in VMEM (replaces the former XLA-side jnp.pad HBM round trip).
    # Borders are re-zeroed every grid step (cheap) so correctness does not depend on grid
    # order when the batch axis is sharded across TensorCores ("parallel").
    xpad_ref[0:1, :, :] = jnp.zeros((1, W + 2, Cin), xpad_ref.dtype)
    xpad_ref[H + 1:H + 2, :, :] = jnp.zeros((1, W + 2, Cin), xpad_ref.dtype)
    xpad_ref[:, 0:1, :] = jnp.zeros((H + 2, 1, Cin), xpad_ref.dtype)
    xpad_ref[:, W + 1:W + 2, :] = jnp.zeros((H + 2, 1, Cin), xpad_ref.dtype)
    xpad_ref[1:H + 1, 1:W + 1, :] = x_ref[0]

    # im2col: one (H*W, 9*Cin) operand -> a single MXU matmul with contraction 9*Cin
    # (instead of 9 matmuls that only contract Cin).  bf16 operands, f32 accumulation.
    taps = [xpad_ref[kh:kh + H, kw:kw + W, :] for kh in range(3) for kw in range(3)]
    col = jnp.concatenate(taps, axis=-1).reshape(H * W, 9 * Cin)
    acc = jnp.dot(col, w_ref[...], preferred_element_type=jnp.float32)   # (H*W, Cout) f32
    acc = jnp.maximum(acc + b_ref[...], 0.0)                             # bias + ReLU in f32

    if pool:
        # 2x2/2 max pool fused in-kernel: the pre-pool activation never leaves VMEM.
        H2, W2 = H // 2, W // 2
        rows = acc.reshape(H2, 2, W, Cout)                   # split row pairs
        rmax = jnp.maximum(rows[:, 0], rows[:, 1])           # (H2, W, Cout)
        cols = rmax.reshape(H2, W2, 2, Cout)                 # split column pairs
        pooled = jnp.maximum(cols[:, :, 0, :], cols[:, :, 1, :])
        y_ref[0] = pooled.astype(y_ref.dtype)
    else:
        y_ref[0] = acc.reshape(H, W, Cout).astype(y_ref.dtype)


def fc_kernel(x_ref, w_ref, b_ref, out_ref):
    """Final Linear layer, streamed over the reduction dim D (grid axis 0).

    x_ref  : (N, TD)   f32 slice of the NHWC-flattened features
    w_ref  : (TD, cls) bf16 slice of the row-permuted FC weight
    b_ref  : (1, cls)  f32 bias
    out_ref: (N, cls)  f32 accumulator (same block for every grid step)
    """
    @pl.when(pl.program_id(0) == 0)
    def _():
        out_ref[...] = jnp.broadcast_to(b_ref[...], out_ref.shape)

    out_ref[...] += jnp.dot(x_ref[...].astype(jnp.bfloat16), w_ref[...],
                            preferred_element_type=jnp.float32)


# ----------------------------------------------------------------------------- helpers
def _pick_fc_tile(d, cap=8192):
    """Largest reduction tile <= cap that divides D and is a multiple of 128 (lane width)."""
    if d <= cap:
        return d
    td = cap - cap % 128
    while td >= 128:
        if d % td == 0:
            return td
        td -= 128
    return d


def prepare_params(params, index, h, w):
    """One-time reshuffle of the PyTorch-layout weights into kernel-friendly layouts.

    * conv OIHW -> (9*Cin, Cout) im2col matrix, bf16.
    * FC weight rows permuted from NCHW-flatten order to NHWC-flatten order and transposed
      to (D, cls), bf16 -- this is what lets the FC consume the NHWC features directly and
      removes the per-call full-activation transpose.
    """
    conv_w, conv_b = params["conv_w"], params["conv_b"]
    fc_w, fc_b = params["fc_w"], params["fc_b"]
    cout, cin = conv_w.shape[0], conv_w.shape[1]
    cls = fc_w.shape[0]
    if index in RELU_POOL:
        hout, wout = h // 2, w // 2
    else:
        hout, wout = h, w
    d = cout * hout * wout
    assert fc_w.shape[1] == d, "lastfc input size does not match the activation size"

    w_mat = jnp.transpose(conv_w, (2, 3, 1, 0)).reshape(9 * cin, cout).astype(jnp.bfloat16)
    b_row = conv_b.reshape(1, cout).astype(jnp.float32)
    fc_w_perm = (fc_w.reshape(cls, cout, hout, wout)
                     .transpose(2, 3, 1, 0)            # rows now in (h, w, c) order
                     .reshape(d, cls)
                     .astype(jnp.bfloat16))
    fc_b_row = fc_b.reshape(1, cls).astype(jnp.float32)
    return {"w_mat": w_mat, "b_row": b_row, "fc_w_perm": fc_w_perm, "fc_b_row": fc_b_row}


# ----------------------------------------------------------------------------- wrapper
def net_more_forward(x_nchw, prep, index):
    N, Cin, H, W = x_nchw.shape
    Cout = prep["w_mat"].shape[1]
    cls = prep["fc_w_perm"].shape[1]

    pool = index in RELU_POOL
    if pool:
        assert H % 2 == 0 and W % 2 == 0, "2x2/2 max pool assumes even H and W"
        Hout, Wout = H // 2, W // 2
    elif index in RELU_ONLY:
        Hout, Wout = H, W
    else:
        raise ValueError(f"index {index} not handled by Net_more.forward branches")
    D = Cout * Hout * Wout

    # glue: NCHW -> NHWC and cast to bf16 (halves HBM/VMEM traffic; matmuls accumulate f32).
    x_nhwc = jnp.transpose(x_nchw, (0, 2, 3, 1)).astype(jnp.bfloat16)

    conv_cost = pl.CostEstimate(
        flops=2 * N * H * W * 9 * Cin * Cout,
        transcendentals=0,
        bytes_accessed=(x_nhwc.size * 2 + prep["w_mat"].size * 2
                        + prep["b_row"].size * 4 + N * Hout * Wout * Cout * 4),
    )
    # NOTE: Cout / class_num below 128 lanes produce masked stores; lane-dense only for
    #       VGG-scale channel counts (>= 64/128).
    y_nhwc = pl.pallas_call(
        functools.partial(conv3x3_relu_pool_kernel, pool=pool),
        out_shape=jax.ShapeDtypeStruct((N, Hout, Wout, Cout), jnp.float32),
        grid=(N,),
        in_specs=[
            pl.BlockSpec((1, H, W, Cin), lambda n: (n, 0, 0, 0)),
            pl.BlockSpec((9 * Cin, Cout), lambda n: (0, 0)),
            pl.BlockSpec((1, Cout), lambda n: (0, 0)),
        ],
        out_specs=pl.BlockSpec((1, Hout, Wout, Cout), lambda n: (n, 0, 0, 0)),
        scratch_shapes=[pltpu.VMEM((H + 2, W + 2, Cin), jnp.bfloat16)],
        compiler_params=pltpu.CompilerParams(
            dimension_semantics=("parallel",),
            vmem_limit_bytes=_VMEM_LIMIT),
        cost_estimate=conv_cost,
    )(x_nhwc, prep["w_mat"], prep["b_row"])

    # x_internal is returned in NCHW to match the PyTorch module; the FC does NOT depend on
    # this transpose any more (it reads the NHWC flatten, which is a free row-major reshape).
    x_internal = jnp.transpose(y_nhwc, (0, 3, 1, 2))
    flat = y_nhwc.reshape(N, D)

    TD = _pick_fc_tile(D)
    KT = D // TD
    fc_cost = pl.CostEstimate(
        flops=2 * N * D * cls,
        transcendentals=0,
        bytes_accessed=N * D * 4 + D * cls * 2 + cls * 4 + N * cls * 4,
    )
    out = pl.pallas_call(
        fc_kernel,
        out_shape=jax.ShapeDtypeStruct((N, cls), jnp.float32),
        grid=(KT,),
        in_specs=[
            pl.BlockSpec((N, TD), lambda k: (0, k)),
            pl.BlockSpec((TD, cls), lambda k: (k, 0)),
            pl.BlockSpec((1, cls), lambda k: (0, 0)),
        ],
        out_specs=pl.BlockSpec((N, cls), lambda k: (0, 0)),
        compiler_params=pltpu.CompilerParams(
            dimension_semantics=("arbitrary",),
            vmem_limit_bytes=_VMEM_LIMIT),
        cost_estimate=fc_cost,
    )(flat, prep["fc_w_perm"], prep["fc_b_row"])

    return out, x_internal


# ----------------------------------------------------------------------------- reference
def reference_forward(x_nchw, params, index):
    y = jax.lax.conv_general_dilated(
        x_nchw.astype(jnp.float32), params["conv_w"].astype(jnp.float32),
        window_strides=(1, 1), padding=((1, 1), (1, 1)),
        dimension_numbers=("NCHW", "OIHW", "NCHW"))
    y = y + params["conv_b"][None, :, None, None]
    y = jnp.maximum(y, 0.0)
    if index in RELU_POOL:
        n, c, h, w = y.shape
        y = jnp.max(y.reshape(n, c, h // 2, 2, w // 2, 2), axis=(3, 5))
    flat = y.reshape(y.shape[0], -1)
    out = flat @ params["fc_w"].T + params["fc_b"]
    return out, y


# ----------------------------------------------------------------------------- params
def init_params(key, cin, cout, h, w, class_num, index):
    if index in RELU_POOL:
        d = cout * (h // 2) * (w // 2)
    else:
        d = cout * h * w
    k1, k2, k3, k4 = jax.random.split(key, 4)
    return {
        "conv_w": 0.1 * jax.random.normal(k1, (cout, cin, 3, 3), jnp.float32),
        "conv_b": 0.1 * jax.random.normal(k2, (cout,), jnp.float32),
        "fc_w": 0.05 * jax.random.normal(k3, (class_num, d), jnp.float32),
        "fc_b": 0.05 * jax.random.normal(k4, (class_num,), jnp.float32),
    }


if __name__ == "__main__":
    key = jax.random.PRNGKey(0)
    N, Cin, H, W = 2, 4, 16, 16
    Cout, class_num = 8, 10

    kx, kp_pool, kp_relu = jax.random.split(key, 3)
    x = jax.random.normal(kx, (N, Cin, H, W), jnp.float32)

    # Exercise both forward branches: index 2 -> conv+relu+maxpool, index 0 -> conv+relu.
    for index, kp in ((2, kp_pool), (0, kp_relu)):
        params = init_params(kp, Cin, Cout, H, W, class_num, index)
        prep = prepare_params(params, index, H, W)

        out, x_internal = net_more_forward(x, prep, index)
        out, x_internal = jax.block_until_ready((out, x_internal))

        out_ref, xi_ref = reference_forward(x, params, index)
        assert out.shape == out_ref.shape and x_internal.shape == xi_ref.shape
        assert jnp.allclose(out, out_ref, rtol=5e-2, atol=5e-2), f"fc mismatch (index={index})"
        assert jnp.allclose(x_internal, xi_ref, rtol=5e-2, atol=5e-2), f"feature mismatch (index={index})"

    print("KERNEL_OK")
</pallas_src>

<mosaic_0001>
module attributes {stable_mosaic.version = 11 : i64} {
  func.func @conv3x3_relu_pool_kernel(%arg0: i32, %arg1: memref<1x16x16x4xbf16, #tpu.memory_space<vmem>>, %arg2: memref<36x8xbf16, #tpu.memory_space<vmem>>, %arg3: memref<1x8xf32, #tpu.memory_space<vmem>>, %arg4: memref<1x8x8x8xf32, #tpu.memory_space<vmem>>, %arg5: memref<18x18x4xbf16, #tpu.memory_space<vmem>>) attributes {dimension_semantics = [#tpu.dimension_semantics<parallel>], iteration_bounds = array<i64: 2>, scalar_prefetch = 0 : i64, scratch_operands = 1 : i64, tpu.core_type = #tpu.core_type<tc>, window_params = [{transform_indices = @transform_0, window_bounds = array<i64: 1, 16, 16, 4>}, {pipeline_mode = #tpu.pipeline_mode<synchronous>, transform_indices = @transform_1, window_bounds = array<i64: 36, 8>}, {pipeline_mode = #tpu.pipeline_mode<synchronous>, transform_indices = @transform_2, window_bounds = array<i64: 1, 8>}, {transform_indices = @transform_3, window_bounds = array<i64: 1, 8, 8, 8>}]} {
    %cst = arith.constant 0.000000e+00 : bf16
    %0 = vector.broadcast %cst : bf16 to vector<1x18x4xbf16>
    %c0 = arith.constant 0 : index
    %c0_0 = arith.constant 0 : index
    %c0_1 = arith.constant 0 : index
    %1 = vector.load %arg5[%c0, %c0_0, %c0_1] : memref<18x18x4xbf16, #tpu.memory_space<vmem>>, vector<1x18x4xbf16>
    tpu.vector_store %arg5[%c0, %c0_0, %c0_1], %0 {strides = array<i32>} : memref<18x18x4xbf16, #tpu.memory_space<vmem>>, vector<1x18x4xbf16>,
    %cst_2 = arith.constant 0.000000e+00 : bf16
    %2 = vector.broadcast %cst_2 : bf16 to vector<1x18x4xbf16>
    %c17 = arith.constant 17 : index
    %c0_3 = arith.constant 0 : index
    %c0_4 = arith.constant 0 : index
    %3 = vector.load %arg5[%c17, %c0_3, %c0_4] : memref<18x18x4xbf16, #tpu.memory_space<vmem>>, vector<1x18x4xbf16>
    tpu.vector_store %arg5[%c17, %c0_3, %c0_4], %2 {strides = array<i32>} : memref<18x18x4xbf16, #tpu.memory_space<vmem>>, vector<1x18x4xbf16>,
    %cst_5 = arith.constant 0.000000e+00 : bf16
    %4 = vector.broadcast %cst_5 : bf16 to vector<18x1x4xbf16>
    %c0_6 = arith.constant 0 : index
    %c0_7 = arith.constant 0 : index
    %c0_8 = arith.constant 0 : index
    %5 = vector.load %arg5[%c0_6, %c0_7, %c0_8] : memref<18x18x4xbf16, #tpu.memory_space<vmem>>, vector<18x1x4xbf16>
    tpu.vector_store %arg5[%c0_6, %c0_7, %c0_8], %4 {strides = array<i32>} : memref<18x18x4xbf16, #tpu.memory_space<vmem>>, vector<18x1x4xbf16>,
    %cst_9 = arith.constant 0.000000e+00 : bf16
    %6 = vector.broadcast %cst_9 : bf16 to vector<18x1x4xbf16>
    %c0_10 = arith.constant 0 : index
    %c17_11 = arith.constant 17 : index
    %c0_12 = arith.constant 0 : index
    %7 = vector.load %arg5[%c0_10, %c17_11, %c0_12] : memref<18x18x4xbf16, #tpu.memory_space<vmem>>, vector<18x1x4xbf16>
    tpu.vector_store %arg5[%c0_10, %c17_11, %c0_12], %6 {strides = array<i32>} : memref<18x18x4xbf16, #tpu.memory_space<vmem>>, vector<18x1x4xbf16>,
    %c0_13 = arith.constant 0 : index
    %c0_14 = arith.constant 0 : index
    %c0_15 = arith.constant 0 : index
    %c0_16 = arith.constant 0 : index
    %8 = vector.load %arg1[%c0_13, %c0_14, %c0_15, %c0_16] : memref<1x16x16x4xbf16, #tpu.memory_space<vmem>>, vector<1x16x16x4xbf16>
    %9 = vector.shape_cast %8 : vector<1x16x16x4xbf16> to vector<16x16x4xbf16>
    %c1 = arith.constant 1 : index
    %c1_17 = arith.constant 1 : index
    %c0_18 = arith.constant 0 : index
    %10 = vector.load %arg5[%c1, %c1_17, %c0_18] : memref<18x18x4xbf16, #tpu.memory_space<vmem>>, vector<16x16x4xbf16>
    tpu.vector_store %arg5[%c1, %c1_17, %c0_18], %9 {strides = array<i32>} : memref<18x18x4xbf16, #tpu.memory_space<vmem>>, vector<16x16x4xbf16>,
    %c0_19 = arith.constant 0 : index
    %c0_20 = arith.constant 0 : index
    %c0_21 = arith.constant 0 : index
    %11 = vector.load %arg5[%c0_19, %c0_20, %c0_21] : memref<18x18x4xbf16, #tpu.memory_space<vmem>>, vector<16x16x4xbf16>
    %c0_22 = arith.constant 0 : index
    %c1_23 = arith.constant 1 : index
    %c0_24 = arith.constant 0 : index
    %12 = vector.load %arg5[%c0_22, %c1_23, %c0_24] : memref<18x18x4xbf16, #tpu.memory_space<vmem>>, vector<16x16x4xbf16>
    %c0_25 = arith.constant 0 : index
    %c2 = arith.constant 2 : index
    %c0_26 = arith.constant 0 : index
    %13 = vector.load %arg5[%c0_25, %c2, %c0_26] : memref<18x18x4xbf16, #tpu.memory_space<vmem>>, vector<16x16x4xbf16>
    %c1_27 = arith.constant 1 : index
    %c0_28 = arith.constant 0 : index
    %c0_29 = arith.constant 0 : index
    %14 = vector.load %arg5[%c1_27, %c0_28, %c0_29] : memref<18x18x4xbf16, #tpu.memory_space<vmem>>, vector<16x16x4xbf16>
    %c1_30 = arith.constant 1 : index
    %c1_31 = arith.constant 1 : index
    %c0_32 = arith.constant 0 : index
    %15 = vector.load %arg5[%c1_30, %c1_31, %c0_32] : memref<18x18x4xbf16, #tpu.memory_space<vmem>>, vector<16x16x4xbf16>
    %c1_33 = arith.constant 1 : index
    %c2_34 = arith.constant 2 : index
    %c0_35 = arith.constant 0 : index
    %16 = vector.load %arg5[%c1_33, %c2_34, %c0_35] : memref<18x18x4xbf16, #tpu.memory_space<vmem>>, vector<16x16x4xbf16>
    %c2_36 = arith.constant 2 : index
    %c0_37 = arith.constant 0 : index
    %c0_38 = arith.constant 0 : index
    %17 = vector.load %arg5[%c2_36, %c0_37, %c0_38] : memref<18x18x4xbf16, #tpu.memory_space<vmem>>, vector<16x16x4xbf16>
    %c2_39 = arith.constant 2 : index
    %c1_40 = arith.constant 1 : index
    %c0_41 = arith.constant 0 : index
    %18 = vector.load %arg5[%c2_39, %c1_40, %c0_41] : memref<18x18x4xbf16, #tpu.memory_space<vmem>>, vector<16x16x4xbf16>
    %c2_42 = arith.constant 2 : index
    %c2_43 = arith.constant 2 : index
    %c0_44 = arith.constant 0 : index
    %19 = vector.load %arg5[%c2_42, %c2_43, %c0_44] : memref<18x18x4xbf16, #tpu.memory_space<vmem>>, vector<16x16x4xbf16>
    %20 = tpu.concatenate %11, %12, %13, %14, %15, %16, %17, %18, %19 in 2 : vector<16x16x4xbf16>, vector<16x16x4xbf16>, vector<16x16x4xbf16>, vector<16x16x4xbf16>, vector<16x16x4xbf16>, vector<16x16x4xbf16>, vector<16x16x4xbf16>, vector<16x16x4xbf16>, vector<16x16x4xbf16> -> vector<16x16x36xbf16>
    %21 = vector.shape_cast %20 : vector<16x16x36xbf16> to vector<256x36xbf16>
    %c0_45 = arith.constant 0 : index
    %c0_46 = arith.constant 0 : index
    %22 = vector.load %arg2[%c0_45, %c0_46] : memref<36x8xbf16, #tpu.memory_space<vmem>>, vector<36x8xbf16>
    %cst_47 = arith.constant dense<0.000000e+00> : vector<256x8xf32>
    %23 = tpu.matmul %21, %22, %cst_47 {dimension_numbers = #tpu.dot_dimension_numbers<[1], [0], [0], [1], [0, 0, 1, 1], [], []>} : vector<256x36xbf16>, vector<36x8xbf16>, vector<256x8xf32> -> vector<256x8xf32>
    %c0_48 = arith.constant 0 : index
    %c0_49 = arith.constant 0 : index
    %24 = vector.load %arg3[%c0_48, %c0_49] : memref<1x8xf32, #tpu.memory_space<vmem>>, vector<1x8xf32>
    %25 = vector.broadcast %24 : vector<1x8xf32> to vector<256x8xf32>
    %26 = arith.addf %23, %25 : vector<256x8xf32>
    %cst_50 = arith.constant 0.000000e+00 : f32
    %27 = vector.broadcast %cst_50 : f32 to vector<256x8xf32>
    %28 = arith.maximumf %26, %27 : vector<256x8xf32>
    %29 = vector.shape_cast %28 : vector<256x8xf32> to vector<8x2x16x8xf32>
    %30 = vector.extract_strided_slice %29 {offsets = [0, 0, 0, 0], sizes = [8, 1, 16, 8], strides = [1, 1, 1, 1]} : vector<8x2x16x8xf32> to vector<8x1x16x8xf32>
    %31 = vector.shape_cast %30 : vector<8x1x16x8xf32> to vector<8x16x8xf32>
    %32 = vector.extract_strided_slice %29 {offsets = [0, 1, 0, 0], sizes = [8, 1, 16, 8], strides = [1, 1, 1, 1]} : vector<8x2x16x8xf32> to vector<8x1x16x8xf32>
    %33 = vector.shape_cast %32 : vector<8x1x16x8xf32> to vector<8x16x8xf32>
    %34 = arith.maximumf %31, %33 : vector<8x16x8xf32>
    %35 = vector.shape_cast %34 : vector<8x16x8xf32> to vector<8x8x2x8xf32>
    %36 = vector.extract_strided_slice %35 {offsets = [0, 0, 0, 0], sizes = [8, 8, 1, 8], strides = [1, 1, 1, 1]} : vector<8x8x2x8xf32> to vector<8x8x1x8xf32>
    %37 = vector.shape_cast %36 : vector<8x8x1x8xf32> to vector<8x8x8xf32>
    %38 = vector.extract_strided_slice %35 {offsets = [0, 0, 1, 0], sizes = [8, 8, 1, 8], strides = [1, 1, 1, 1]} : vector<8x8x2x8xf32> to vector<8x8x1x8xf32>
    %39 = vector.shape_cast %38 : vector<8x8x1x8xf32> to vector<8x8x8xf32>
    %40 = arith.maximumf %37, %39 : vector<8x8x8xf32>
    %c0_51 = arith.constant 0 : index
    %c0_52 = arith.constant 0 : index
    %c0_53 = arith.constant 0 : index
    %c0_54 = arith.constant 0 : index
    %41 = vector.load %arg4[%c0_51, %c0_52, %c0_53, %c0_54] : memref<1x8x8x8xf32, #tpu.memory_space<vmem>>, vector<1x8x8x8xf32>
    %42 = vector.shape_cast %41 : vector<1x8x8x8xf32> to vector<8x8x8xf32>
    %43 = vector.shape_cast %40 : vector<8x8x8xf32> to vector<1x8x8x8xf32>
    tpu.vector_store %arg4[%c0_51, %c0_52, %c0_53, %c0_54], %43 {strides = array<i32>} : memref<1x8x8x8xf32, #tpu.memory_space<vmem>>, vector<1x8x8x8xf32>,
    return
  }
  func.func @transform_0(%arg0: i32) -> (i32, i32, i32, i32) {
    %c0_i32 = arith.constant 0 : i32
    %c0_i32_0 = arith.constant 0 : i32
    %c0_i32_1 = arith.constant 0 : i32
    %c0_i32_2 = arith.constant 0 : i32
    return %arg0, %c0_i32, %c0_i32_0, %c0_i32_1 : i32, i32, i32, i32
  }
  func.func @transform_1(%arg0: i32) -> (i32, i32) {
    %c0_i32 = arith.constant 0 : i32
    %c0_i32_0 = arith.constant 0 : i32
    %c0_i32_1 = arith.constant 0 : i32
    return %c0_i32, %c0_i32_0 : i32, i32
  }
  func.func @transform_2(%arg0: i32) -> (i32, i32) {
    %c0_i32 = arith.constant 0 : i32
    %c0_i32_0 = arith.constant 0 : i32
    %c0_i32_1 = arith.constant 0 : i32
    return %c0_i32, %c0_i32_0 : i32, i32
  }
  func.func @transform_3(%arg0: i32) -> (i32, i32, i32, i32) {
    %c0_i32 = arith.constant 0 : i32
    %c0_i32_0 = arith.constant 0 : i32
    %c0_i32_1 = arith.constant 0 : i32
    %c0_i32_2 = arith.constant 0 : i32
    return %arg0, %c0_i32, %c0_i32_0, %c0_i32_1 : i32, i32, i32, i32
  }
}

</mosaic_0001>

<bundles_post_ra>
// kernel: tpu_custom_call.1
= control target key start
LH: loop header
LB: loop body
LE: loop exit
PB: predicated region body
PF: predicated region fallthrough
CT: control target
= control target key end

     0   :  { %8 = vsyncpa [#allocation4], 0  ;;  %s6467_s0 = inlined_call_operand.vmem [shape: bf16[2,16,16,4], index: 0, kind: input, shape index: {}]   ;;  %s6468_s1 = inlined_call_operand.vmem [shape: bf16[36,8], index: 1, kind: input, shape index: {}]   ;;  %s6469_s2 = inlined_call_operand.vmem [shape: f32[1,8], index: 2, kind: input, shape index: {}]   ;;  %s6470_s3 = inlined_call_operand.hbm [shape: f32[2,8,8,8], index: 3, kind: output, shape index: {}]  }
   0x1   :  { %10 = vsyncpa [#allocation4 + $0x1], 0  ;;  %s4673_s12 = smov 0   ;;  %s4675_s13 = smov 0  }
   0x2   :  { %s4677_s14 = smov 0   ;;  %s4679_s15 = smov 0  }
   0x3 LB: > { %s4694_s16 = sadd.s32 4294967295, %s4639_s15   ;;  %s4080_s17 = sadd.s32 4294967294, %s4639_s15   ;;  %s4639_s15 = sphi %s4679_s15, %s6505_s15   ;;  %s4635_s14 = sphi %s4677_s14, %s6504_s14   ;;  %s4631_s13 = sphi %s4675_s13, %s6503_s13   ;;  %s4627_s12 = sphi %s4673_s12, %s6502_s12  }
   0x4   : > { %s4698_s18 = sadd.s32 1, %s4639_s15   ;;  %s91_s19 = sadd.s32 1, %s4635_s14 }
   0x5   : > { %s88_s20 = ssub.s32 %s4639_s15, %s4698_s18  ;;  %p101_p0 = scmp.ne.s32.totalorder %s4635_s14, %s4631_s13 }
   0x6   : > { %p89_p1 = scmp.eq.s32.totalorder %s88_s20, 0  ;;  %p102_p2 = scmp.eq.s32.totalorder %s4694_s16, 1 }
   0x7   : > { %p107_p3 = scmp.ne.s32.totalorder %s4631_s13, %s4627_s12  ;;  %p108_p4 = scmp.eq.s32.totalorder %s4080_s17, 1 }
   0x8   : > { %s4709_s21 = scalar_select %p89_p1, %s4635_s14, %s91_s19  }
   0x9   : > { %p4711_p5 = por %p102_p2, %p101_p0  ;;  %p4715_p6 = por %p108_p4, %p107_p3 }
   0xa   : > { %p4083_p7 = scmp.ge.s32.totalorder %s4639_s15, 1  ;;  %p140_p8 = scmp.lt.s32.totalorder %s4639_s15, 3 }
   0xc   : > { %p141_p9 = pnand %p4083_p7, %p140_p8 }
   0xe   : > { %144 = sbr.rel (%p141_p9) target bundleno = 672 (0x2a0), region = 32 }
  0x13   : > { %vm170_vm0 = vcmask 27648   ;;  %vm173_vm1 = vcmask 24576   ;;  %vm180_vm2 = vsmask.f32 256  ;;  %v4641_v0 = vmov 0   ;;  %p164_p10 = scmp.lt.s32.totalorder %s4694_s16, 1 }
  0x14   : > { %171 = vst.msk [vmem:[#allocation2] sm:$0xf] %vm170_vm0, %v4641_v0  ;;  %172 = vst.msk [vmem:[#allocation2 + $0x4] sm:$0xf] %vm170_vm0, %v4641_v0  ;;  %vm236_vm4 = vsmask.f32 7938 }
  0x15   : > { %174 = vst.msk [vmem:[#allocation2 + $0x8] sm:$0x1] %vm173_vm1, %v4641_v0  ;;  %vm4724_vm3 = vmand %vm173_vm1, %vm180_vm2  ;;  %v209_v2 = vld [vmem:[#allocation2 + $0x6c] sm:$0x1]  ;;  %s165_s24 = scalar_select %p164_p10, %s4694_s16, 1  ;;  %vm1355_vm9 = vcmask 1046528  }
  0x16   : > { %176 = vst.msk [vmem:[#allocation2 + $0xcc] sm:$0xf] %vm170_vm0, %v4641_v0  ;;  %177 = vst.msk [vmem:[#allocation2 + $0xd0] sm:$0xf] %vm170_vm0, %v4641_v0  ;;  %v210_v4 = vsel %vm4724_vm3, 0, %v209_v2  ;;  %s4642_s29 = smov 8  }
  0x17   : > { %178 = vst.msk [vmem:[#allocation2 + $0xd4] sm:$0x1] %vm173_vm1, %v4641_v0  ;;  %vm4732_vm5 = vmand %vm173_vm1, %vm236_vm4  ;;  %v185_v5 = vld [vmem:[#allocation2 + $0xc] sm:$0x1]  ;;  %v212_v7 = vld [vmem:[#allocation2 + $0x78] sm:$0x1] }
  0x18   : > { %211 = vst [vmem:[#allocation2 + $0x6c] sm:$0x1] %v210_v4  ;;  %v186_v6 = vsel %vm4724_vm3, 0, %v185_v5  ;;  %v188_v8 = vld [vmem:[#allocation2 + $0x18] sm:$0x1]  ;;  %v213_v9 = vsel %vm4724_vm3, 0, %v212_v7  ;;  %vm4768_vm7 = vmand %vm170_vm0, %vm236_vm4 }
  0x19   : > { %187 = vst [vmem:[#allocation2 + $0xc] sm:$0x1] %v186_v6  ;;  %v189_v10 = vsel %vm4724_vm3, 0, %v188_v8  ;;  %v206_v11 = vld [vmem:[#allocation2 + $0x60] sm:$0x1]  ;;  %s4320_s25 = sshll.u32 %s165_s24, 7 }
  0x1a   : > { %v262_v12 = vld [vmem:[#allocation2 + $0x68] sm:$0x1]  ;;  %214 = vst [vmem:[#allocation2 + $0x78] sm:$0x1] %v213_v9  ;;  %190 = vst [vmem:[#allocation2 + $0x18] sm:$0x1] %v189_v10  ;;  %s4752_s28 = scalar_lea.vmem %s6467_s0, %s4320_s25 }
  0x1b   : > { %v207_v13 = vsel %vm4724_vm3, 0, %v206_v11  ;;  %v263_v14 = vsel %vm4732_vm5, 0, %v262_v12  ;;  %vm324_vm6 = vsmask.f32 4368  ;;  %v265_v15 = vld [vmem:[#allocation2 + $0x74] sm:$0x1] }
  0x1c   : > { %208 = vst [vmem:[#allocation2 + $0x60] sm:$0x1] %v207_v13  ;;  %264 = vst [vmem:[#allocation2 + $0x68] sm:$0x1] %v263_v14  ;;  %v308_v16 = vld [vmem:[%s4752_s28 + $0x40] sm:$0xf] }
  0x1d   : > { %v309_v17 = vld [vmem:[%s4752_s28 + $0x44] sm:$0xf]  ;;  %v292_v18 = vld [vmem:[%s4752_s28] sm:$0xf]  ;;  %v238_v19 = vld [vmem:[#allocation2 + $0x8] sm:$0x1] }
  0x1e   : > { %v4757_v20 = vld [vmem:[#allocation2 + $0x4] sm:$0xf]  ;;  %v809_v21 = vld [vmem:[#allocation2] sm:$0xe]  ;;  %v241_v22 = vld [vmem:[#allocation2 + $0x14] sm:$0x1] }
  0x1f   : > { %v239_v23 = vsel %vm4732_vm5, 0, %v238_v19  ;;  %v182_v24 = vld [vmem:[#allocation2] sm:$0x1]  ;;  %v463_v25 = vshrl.u32 %v308_v16, 16  ;;  %v466_v26 = vshll.u32 %v308_v16, 16  ;;  %v471_v28 = vshrl.u32 %v309_v17, 16  ;;  %vm4777_vm8 = vmor %vm180_vm2, %vm324_vm6 }
  0x20   : > { %240 = vst [vmem:[#allocation2 + $0x8] sm:$0x1] %v239_v23  ;;  %v183_v27 = vsel %vm4724_vm3, 0, %v182_v24  ;;  %v474_v29 = vshll.u32 %v309_v17, 16  ;;  %v705_v30 = vld [vmem:[#allocation2 + $0x6c] sm:$0xf]  ;;  %v4119_v42 = vcombine.low %v809_v21, %v4757_v20 }
  0x21   : > { %v327_v31 = vshrl.u32 %v292_v18, 16  ;;  %184 = vst [vmem:[#allocation2] sm:$0x1] %v183_v27  ;;  %v465_v32 = vrot.slane %v463_v25, 7  ;;  %v293_v33 = vld [vmem:[%s4752_s28 + $0x4] sm:$0xf] }
  0x22   : > { %v330_v34 = vshll.u32 %v292_v18, 16  ;;  %v266_v35 = vsel %vm4732_vm5, 0, %v265_v15  ;;  %v4772_v37 = vrot.slane %v471_v28, 7  ;;  %v335_v39 = vshrl.u32 %v293_v33, 16  ;;  %v649_v41 = vld [vmem:[#allocation2 + $0xc] sm:$0xf] }
  0x23   : > { %v329_v38 = vrot.slane %v327_v31, 7  ;;  %v338_v40 = vshll.u32 %v293_v33, 16  ;;  %267 = vst [vmem:[#allocation2 + $0x74] sm:$0x1] %v266_v35  ;;  %v468_v44 = vor.u32 %v466_v26, %v465_v32  ;;  %v469_v45 = vrot.slane %v465_v32, 4  ;;  %s4643_s30 = smov 12  }
  0x24   : > { %v310_v46 = vld [vmem:[%s4752_s28 + $0x48] sm:$0xf]  ;;  %v311_v47 = vld [vmem:[%s4752_s28 + $0x4c] sm:$0xf]  ;;  %v242_v48 = vsel %vm4732_vm5, 0, %v241_v22  ;;  %v476_v49 = vor.u32 %v474_v29, %v4772_v37  ;;  %v337_v53 = vrot.slane %v335_v39, 7 }
  0x25   : > { %v332_v50 = vor.u32 %v330_v34, %v329_v38  ;;  %v333_v51 = vrot.slane %v329_v38, 4  ;;  %243 = vst [vmem:[#allocation2 + $0x14] sm:$0x1] %v242_v48  ;;  %v706_v52 = vsel %vm4768_vm7, %v468_v44, %v705_v30  ;;  %v480_v54 = vshrl.u32 %v310_v46, 16  ;;  %v294_v56 = vld [vmem:[%s4752_s28 + $0x8] sm:$0xf] }
  0x26   : > { %v483_v55 = vshll.u32 %v310_v46, 16  ;;  %v477_v57 = vsel %vm4777_vm8, %v469_v45, %v476_v49  ;;  %707 = vst [vmem:[#allocation2 + $0x6c] sm:$0xf] %v706_v52  ;;  %v488_v59 = vshrl.u32 %v311_v47, 16  ;;  %v491_v60 = vshll.u32 %v311_v47, 16  ;;  %s4644_s4 = smov 4  }
  0x27   : > { %v650_v58 = vsel %vm4768_vm7, %v332_v50, %v649_v41  ;;  %v295_v61 = vld [vmem:[%s4752_s28 + $0xc] sm:$0xf]  ;;  %v4794_v62 = vld [vmem:[#allocation2 + $0x8] ss:$0 sps:$4 sm:$0x11]   ;;  %v1356_v63 = vrot.slane %v4119_v42, 1  ;;  %v340_v0 = vor.u32 %v338_v40, %v337_v53 }
  0x28   : > { %708 = vst.msk [vmem:[#allocation2 + $0x70] sm:$0xf] %vm170_vm0, %v477_v57  ;;  %651 = vst [vmem:[#allocation2 + $0xc] sm:$0xf] %v650_v58  ;;  %v478_v2 = vrot.slane %v4772_v37, 4  ;;  %v482_v4 = vrot.slane %v480_v54, 7 }
  0x29   : > { %v4798_v5 = vrot.slane %v488_v59, 7  ;;  %v712_v6 = vld [vmem:[#allocation2 + $0x78] sm:$0xf]  ;;  %v344_v7 = vshrl.u32 %v294_v56, 16  ;;  %v1357_v8 = vrot.slane %v4794_v62, 1  ;;  %v341_v9 = vsel %vm4777_vm8, %v333_v51, %v340_v0  ;;  %s4645_s5 = smov 16  }
  0x2a   : > { %v347_v10 = vshll.u32 %v294_v56, 16  ;;  %v352_v11 = vshrl.u32 %v295_v61, 16  ;;  %v306_v12 = vld [vmem:[%s4752_s28 + $0x38] sm:$0xf]  ;;  %v761_v13 = vld [vmem:[#allocation2] sm:$0xf]  ;;  %v485_v15 = vor.u32 %v483_v55, %v482_v4 }
  0x2b   : > { %v342_v14 = vrot.slane %v337_v53, 4  ;;  %652 = vst.msk [vmem:[#allocation2 + $0x10] sm:$0xf] %vm170_vm0, %v341_v9  ;;  %v486_v16 = vrot.slane %v482_v4, 4  ;;  %v493_v17 = vor.u32 %v491_v60, %v4798_v5  ;;  %v709_v18 = vld [vmem:[#allocation2 + $0x74] sm:$0x1]  ;;  %v1358_v19 = vsel %vm1355_vm9, %v1356_v63, %v1357_v8 }
  0x2c   : > { %v346_v21 = vrot.slane %v344_v7, 7  ;;  %v4807_v22 = vrot.slane %v352_v11, 7  ;;  %v355_v23 = vshll.u32 %v295_v61, 16  ;;  %v653_v24 = vld [vmem:[#allocation2 + $0x14] sm:$0x1]  ;;  %1404 = vrot.lane.b32.xlu0 %v1358_v19, %s4642_s29  ;;  %v713_v26 = vsel %vm4768_vm7, %v485_v15, %v712_v6  ;;  %s4646_s6 = smov 20  }
  0x2d   : > { %v494_v25 = vsel %vm4777_vm8, %v486_v16, %v493_v17  ;;  %v656_v27 = vld [vmem:[#allocation2 + $0x18] sm:$0xf]  ;;  %v446_v28 = vshrl.u32 %v306_v12, 16  ;;  %v4815_v29 = vcombine.low %v761_v13, %v4757_v20  ;;  %v841_v30 = vld [vmem:[#allocation2 + $0x6c] sm:$0xf]  ;;  %v449_v37 = vshll.u32 %v306_v12, 16 }
  0x2e   : > { %714 = vst [vmem:[#allocation2 + $0x78] sm:$0xf] %v713_v26  ;;  %715 = vst.msk [vmem:[#allocation2 + $0x7c] sm:$0xf] %vm170_vm0, %v494_v25  ;;  %v349_v31 = vor.u32 %v347_v10, %v346_v21  ;;  %v350_v32 = vrot.slane %v346_v21, 4  ;;  %v357_v33 = vor.u32 %v355_v23, %v4807_v22  ;;  %v710_v38 = vsel %vm4724_vm3, %v478_v2, %v709_v18  ;;  %s4647_s7 = smov 24  }
  0x2f   : > { %v307_v34 = vld [vmem:[%s4752_s28 + $0x3c] sm:$0xf]  ;;  %v4820_v35 = vld [vmem:[#allocation2 + $0x70] sm:$0xf]  ;;  %v654_v39 = vsel %vm4724_vm3, %v342_v14, %v653_v24  ;;  %v825_v40 = vld [vmem:[#allocation2 + $0xc] sm:$0xf] }
  0x30   : > { %v4827_v20 = vcombine.low %v841_v30, %v4820_v35  ;;  %v358_v41 = vsel %vm4777_vm8, %v350_v32, %v357_v33  ;;  %v657_v42 = vsel %vm4768_vm7, %v349_v31, %v656_v27  ;;  %711 = vst [vmem:[#allocation2 + $0x74] sm:$0x1] %v710_v38  ;;  %655 = vst [vmem:[#allocation2 + $0x14] sm:$0x1] %v654_v39  ;;  %v448_v44 = vrot.slane %v446_v28, 7  ;;  %s4648_s8 = smov 28  }
  0x31   : > { %658 = vst [vmem:[#allocation2 + $0x18] sm:$0xf] %v657_v42  ;;  %659 = vst.msk [vmem:[#allocation2 + $0x1c] sm:$0xf] %vm170_vm0, %v358_v41  ;;  %v454_v45 = vshrl.u32 %v307_v34, 16  ;;  %v457_v47 = vshll.u32 %v307_v34, 16 }
  0x32   : > { %1532 = vrot.lane.b32.xlu1 %v4827_v20, %s4643_s30  ;;  %v4836_v46 = vld [vmem:[#allocation2 + $0x10] sm:$0xf]  ;;  %v698_v48 = vld [vmem:[#allocation2 + $0x60] sm:$0xf]  ;;  %v1086_v49 = vshll.u32 %v4815_v29, 16  ;;  %v451_v51 = vor.u32 %v449_v37, %v448_v44  ;;  %v1091_v53 = vshll.u32 %v4794_v62, 16 }
  0x33   : > { %v4840_v50 = vcombine.low %v825_v40, %v4836_v46  ;;  %v702_v52 = vld [vmem:[#allocation2 + $0x68] sm:$0x1]  ;;  %v810_v54 = vld [vmem:[#allocation2 + $0xc] sm:$0xe]  ;;  %v452_v55 = vrot.slane %v448_v44, 4  ;;  %v456_v56 = vrot.slane %v454_v45, 7 }
  0x34   : > { %v1084_v57 = vshrl.u32 %v4815_v29, 16  ;;  %v1088_v58 = vrot.slane %v1086_v49, 1  ;;  %v764_v59 = vld [vmem:[#allocation2 + $0x10] sm:$0xf]  ;;  %v699_v63 = vsel %vm4768_vm7, %v451_v51, %v698_v48  ;;  %v763_v0 = vld [vmem:[#allocation2 + $0xc] sm:$0xf] }
  0x35   : > { %1516 = vrot.lane.b32.xlu0 %v4840_v50, %s4643_s30  ;;  %v843_v60 = vld [vmem:[#allocation2 + $0x78] sm:$0xf]  ;;  %v4846_v61 = vld [vmem:[#allocation2 + $0x7c] sm:$0xf]  ;;  %v459_v62 = vor.u32 %v457_v47, %v456_v56  ;;  %v461_v4 = vrot.slane %v456_v56, 4  ;;  %v1093_v7 = vrot.slane %v1091_v53, 1  ;;  %v4120_v9 = vcombine.low %v810_v54, %v764_v59 }
  0x36   : > { %v4851_v2 = vcombine.low %v843_v60, %v4846_v61  ;;  %700 = vst [vmem:[#allocation2 + $0x60] sm:$0xf] %v699_v63  ;;  %v779_v6 = vld [vmem:[#allocation2 + $0x6c] sm:$0xf]  ;;  %v780_v8 = vld [vmem:[#allocation2 + $0x70] sm:$0xf]  ;;  %v1089_v14 = vor.u32 %v1088_v58, %v1084_v57  ;;  %v4861_v16 = vcombine.low %v763_v0, %v764_v59 }
  0x37   : > { %v460_v12 = vsel %vm4777_vm8, %v452_v55, %v459_v62  ;;  %v703_v13 = vsel %vm4724_vm3, %v461_v4, %v702_v52  ;;  %v818_v15 = vld [vmem:[#allocation2 + $0x6c] sm:$0xe]  ;;  %vm1082_vm10 = vsmask.f32 7424  ;;  %v4867_v18 = vcombine.low %v779_v6, %v780_v8  ;;  %v244_v28 = vld [vmem:[#allocation2 + $0x20] sm:$0x1] }
  0x38   : > { %1534 = vrot.lane.b32.xlu1 %v4851_v2, %s4643_s30  ;;  %v827_v10 = vld [vmem:[#allocation2 + $0x18] sm:$0xf]  ;;  %v4855_v11 = vld [vmem:[#allocation2 + $0x1c] sm:$0xf]  ;;  %701 = vst.msk [vmem:[#allocation2 + $0x64] sm:$0xf] %vm170_vm0, %v460_v12  ;;  %v4128_v23 = vcombine.low %v818_v15, %v780_v8  ;;  %v1094_v24 = vsel %vm1082_vm10, %v1089_v14, %v1093_v7 }
  0x39   : > { %v4864_v17 = vcombine.low %v827_v10, %v4855_v11  ;;  %704 = vst [vmem:[#allocation2 + $0x68] sm:$0x1] %v703_v13  ;;  %v4453_v19 = vld [vmem:[#allocation2 + $0x14] ss:$0 sps:$4 sm:$0x11]   ;;  %v1359_v25 = vrot.slane %v4120_v9, 1 }
  0x3a   : > { %v4451_v21 = vld [vmem:[#allocation2 + $0x74] ss:$0 sps:$4 sm:$0x11]   ;;  %v1360_v26 = vrot.slane %v4453_v19, 1  ;;  %v1098_v27 = vshll.u32 %v4861_v16, 16  ;;  %v1695_v30 = vshll.u32 %v4827_v20, 16 }
  0x3b   : > { %1518 = vrot.lane.b32.xlu0 %v4864_v17, %s4643_s30  ;;  %v1599_v31 = vshll.u32 %v4840_v50, 16  ;;  %v1194_v32 = vshll.u32 %v4867_v18, 16  ;;  %v4876_v33 = vld [vmem:[#allocation2 + $0x14] ss:$0 sps:$4 sm:$0x11]   ;;  %v1383_v38 = vrot.slane %v4128_v23, 1 }
  0x3c   : > { %v1384_v39 = vrot.slane %v4451_v21, 1  ;;  %v1096_v40 = vshrl.u32 %v4861_v16, 16  ;;  %v1199_v41 = vshll.u32 %v4451_v21, 16  ;;  %v1361_v44 = vsel %vm1355_vm9, %v1359_v25, %v1360_v26  ;;  %v268_v58 = vld [vmem:[#allocation2 + $0x80] sm:$0x1]  ;;  %s4649_s9 = smov 32  }
  0x3d   : > { %v817_v34 = vld [vmem:[#allocation2 + $0x60] sm:$0xe]  ;;  %v1100_v45 = vrot.slane %v1098_v27, 1  ;;  %v245_v47 = vsel %vm4732_vm5, 0, %v244_v28  ;;  %v1103_v52 = vshll.u32 %v4453_v19, 16  ;;  %v1192_v53 = vshrl.u32 %v4867_v18, 16 }
  0x3e   : > { %v777_v37 = vld [vmem:[#allocation2 + $0x60] sm:$0xf]  ;;  %246 = vst [vmem:[#allocation2 + $0x20] sm:$0x1] %v245_v47  ;;  %v1196_v54 = vrot.slane %v1194_v32, 1  ;;  %v1597_v55 = vshrl.u32 %v4840_v50, 16  ;;  %v1385_v19 = vsel %vm1355_vm9, %v1383_v38, %v1384_v39 }
  0x3f   : > { %1275 = vrot.lane.b32.xlu0 %v1094_v24, %s4644_s4  ;;  %v778_v42 = vld [vmem:[#allocation2 + $0x64] sm:$0xf]  ;;  %v1601_v56 = vrot.slane %v1599_v31, 1  ;;  %v1604_v57 = vshll.u32 %v4876_v33, 16  ;;  %v359_v62 = vrot.slane %v4807_v22, 4  ;;  %v1101_v4 = vor.u32 %v1100_v45, %v1096_v40  ;;  %s161_s27 = sand.u32 1, %s4631_s13  }
  0x40   : > { %v4447_v48 = vld [vmem:[#allocation2 + $0x68] ss:$0 sps:$4 sm:$0x11]   ;;  %v4127_v49 = vcombine.low %v817_v34, %v778_v42  ;;  %v4883_v51 = vcombine.low %v777_v37, %v778_v42  ;;  %v1201_v7 = vrot.slane %v1199_v41, 1  ;;  %v1105_v9 = vrot.slane %v1103_v52, 1  ;;  %s4651_s10 = smov [#allocation3]  }
  0x41   : > { %v1381_v60 = vrot.slane %v4447_v48, 1  ;;  %v1187_v6 = vshll.u32 %v4447_v48, 16  ;;  %v4892_v8 = vld [vmem:[#allocation2 + $0x74] ss:$0 sps:$4 sm:$0x11]   ;;  %v269_v12 = vsel %vm4732_vm5, 0, %v268_v58  ;;  %v1197_v14 = vor.u32 %v1196_v54, %v1192_v53 }
  0x42   : > { %v1380_v59 = vrot.slane %v4127_v49, 1  ;;  %v1180_v63 = vshrl.u32 %v4883_v51, 16  ;;  %v1182_v0 = vshll.u32 %v4883_v51, 16  ;;  %v1693_v15 = vshrl.u32 %v4827_v20, 16  ;;  %270 = vst [vmem:[#allocation2 + $0x80] sm:$0x1] %v269_v12 }
  0x43   : > { %1406 = vrot.lane.b32.xlu0 %v1361_v44, %s4642_s29  ;;  %v1189_v13 = vrot.slane %v1187_v6, 1  ;;  %v1697_v22 = vrot.slane %v1695_v30, 1  ;;  %v1602_v23 = vor.u32 %v1601_v56, %v1597_v55  ;;  %v1606_v24 = vrot.slane %v1604_v57, 1  ;;  %v191_v25 = vld [vmem:[#allocation2 + $0x24] sm:$0x1]  ;;  %s4583_s11 = sshll.u32 %s4651_s10, 4  ;;  %s4584_s11 = int_to_ptr.vmem [resolvable:$false] %s4583_s11 }
  0x44   : > { %v1382_v50 = vsel %vm1355_vm9, %v1380_v59, %v1381_v60  ;;  %v1184_v10 = vrot.slane %v1182_v0, 1  ;;  %v495_v26 = vrot.slane %v4798_v5, 4  ;;  %v1700_v27 = vshll.u32 %v4892_v8, 16  ;;  %v296_v31 = vld [vmem:[%s4752_s28 + $0x10] sm:$0xf]  ;;  %s4585_s17 = scalar_lea.vmem %s4584_s11, 2048 }
  0x45   : > { %1420 = vrot.lane.b32.xlu1 %v1382_v50, %s4642_s29  ;;  %v660_v28 = vld [vmem:[#allocation2 + $0x20] sm:$0x1]  ;;  %v1707_v32 = vshll.u32 %v4851_v2, 16  ;;  %v1611_v20 = vshll.u32 %v4864_v17, 16  ;;  %v297_v37 = vld [vmem:[%s4752_s28 + $0x14] sm:$0xf]  ;;  %v1106_v5 = vsel %vm1082_vm10, %v1101_v4, %v1105_v9  ;;  %v1202_v39 = vsel %vm1082_vm10, %v1197_v14, %v1201_v7 }
  0x46   : > { %v1185_v21 = vor.u32 %v1184_v10, %v1180_v63  ;;  %v661_v34 = vsel %vm4724_vm3, %v359_v62, %v660_v28  ;;  %v215_v38 = vld [vmem:[#allocation2 + $0x84] sm:$0x1]  ;;  %v1698_v40 = vor.u32 %v1697_v22, %v1693_v15  ;;  %v192_v41 = vsel %vm4724_vm3, 0, %v191_v25  ;;  %v312_v42 = vld [vmem:[%s4752_s28 + $0x50] sm:$0xf] }
  0x47   : > { %662 = vst [vmem:[#allocation2 + $0x20] sm:$0x1] %v661_v34  ;;  %v313_v44 = vld [vmem:[%s4752_s28 + $0x54] sm:$0xf]  ;;  %v1607_v45 = vsel %vm1082_vm10, %v1602_v23, %v1606_v24  ;;  %v1609_v47 = vshrl.u32 %v4864_v17, 16  ;;  %v361_v48 = vshrl.u32 %v296_v31, 16 }
  0x48   : > { %v1190_v30 = vsel %vm1082_vm10, %v1185_v21, %v1189_v13  ;;  %193 = vst [vmem:[#allocation2 + $0x24] sm:$0x1] %v192_v41  ;;  %v364_v49 = vshll.u32 %v296_v31, 16  ;;  %v1702_v52 = vrot.slane %v1700_v27, 1  ;;  %v369_v53 = vshrl.u32 %v297_v37, 16 }
  0x49   : > { %1422 = vrot.lane.b32.xlu1 %v1385_v19, %s4642_s29  ;;  %1291 = vrot.lane.b32.xlu0 %v1190_v30, %s4644_s4  ;;  %v372_v54 = vshll.u32 %v297_v37, 16  ;;  %v216_v55 = vsel %vm4724_vm3, 0, %v215_v38  ;;  %v716_v56 = vld [vmem:[#allocation2 + $0x80] sm:$0x1]  ;;  %v363_v57 = vrot.slane %v361_v48, 7  ;;  %v497_v58 = vshrl.u32 %v312_v42, 16 }
  0x4a   : > { %217 = vst [vmem:[#allocation2 + $0x84] sm:$0x1] %v216_v55  ;;  %v500_v59 = vshll.u32 %v312_v42, 16  ;;  %v505_v60 = vshrl.u32 %v313_v44, 16  ;;  %v873_v63 = vld [vmem:[#allocation2 + $0xc] sm:$0xe]  ;;  %v717_v0 = vsel %vm4724_vm3, %v495_v26, %v716_v56  ;;  %v1703_v26 = vsel %vm1082_vm10, %v1698_v40, %v1702_v52 }
  0x4b   : > { %v1613_v17 = vrot.slane %v1611_v20, 1  ;;  %v4925_v62 = vrot.slane %v369_v53, 7  ;;  %v508_v4 = vshll.u32 %v313_v44, 16  ;;  %718 = vst [vmem:[#allocation2 + $0x80] sm:$0x1] %v717_v0  ;;  %v366_v6 = vor.u32 %v364_v49, %v363_v57 }
  0x4c   : > { %v367_v7 = vrot.slane %v363_v57, 4  ;;  %v499_v50 = vrot.slane %v497_v58, 7  ;;  %v4927_v9 = vrot.slane %v505_v60, 7  ;;  %v874_v10 = vld [vmem:[#allocation2 + $0x18] sm:$0xe]  ;;  %v4167_v22 = vcombine.low %v873_v63, %v4836_v46 }
  0x4d   : > { %1277 = vrot.lane.b32.xlu1 %v1106_v5, %s4644_s4  ;;  %1788 = vrot.lane.b32.xlu0 %v1607_v45, %s4645_s5  ;;  %v374_v12 = vor.u32 %v372_v54, %v4925_v62  ;;  %v247_v13 = vld [vmem:[#allocation2 + $0x2c] sm:$0x1]  ;;  %v881_v15 = vld [vmem:[#allocation2 + $0x6c] sm:$0xe]  ;;  %v882_v25 = vld [vmem:[#allocation2 + $0x78] sm:$0xe]  ;;  %v1614_v27 = vor.u32 %v1613_v17, %v1609_v47 }
  0x4e   : > { %v271_v14 = vld [vmem:[#allocation2 + $0x8c] sm:$0x1]  ;;  %v4931_v19 = vld [vmem:[#allocation2 + $0x20] ss:$0 sps:$4 sm:$0x11]   ;;  %v502_v21 = vor.u32 %v500_v59, %v499_v50  ;;  %v503_v23 = vrot.slane %v499_v50, 4  ;;  %v510_v24 = vor.u32 %v508_v4, %v4927_v9  ;;  %v4176_v52 = vcombine.low %v882_v25, %v4846_v61 }
  0x4f   : > { %v1705_v28 = vshrl.u32 %v4851_v2, 16  ;;  %v375_v31 = vsel %vm4777_vm8, %v367_v7, %v374_v12  ;;  %v663_v20 = vld [vmem:[#allocation2 + $0x24] sm:$0xf]  ;;  %v1616_v46 = vshll.u32 %v4931_v19, 16  ;;  %v1709_v30 = vrot.slane %v1707_v32, 1 }
  0x50   : > { %v890_v34 = vld [vmem:[#allocation2 + $0x18] sm:$0xf]  ;;  %v4940_v37 = vld [vmem:[#allocation2 + $0x1c] sm:$0xf]  ;;  %v664_v5 = vsel %vm4768_vm7, %v366_v6, %v663_v20  ;;  %666 = vst.msk [vmem:[#allocation2 + $0x28] sm:$0xf] %vm170_vm0, %v375_v31  ;;  %v4168_v2 = vcombine.low %v874_v10, %v4855_v11  ;;  %v4175_v11 = vcombine.low %v881_v15, %v4820_v35 }
  0x51   : > { %1293 = vrot.lane.b32.xlu1 %v1202_v39, %s4644_s4  ;;  %v906_v38 = vld [vmem:[#allocation2 + $0x78] sm:$0xf]  ;;  %v511_v39 = vsel %vm4777_vm8, %v503_v23, %v510_v24  ;;  %v4948_v40 = vld [vmem:[#allocation2 + $0x7c] sm:$0xf]  ;;  %665 = vst [vmem:[#allocation2 + $0x24] sm:$0xf] %v664_v5  ;;  %v1710_v54 = vor.u32 %v1709_v30, %v1705_v28  ;;  %v4964_v56 = vcombine.low %v890_v34, %v4940_v37 }
  0x52   : > { %v719_v41 = vld [vmem:[#allocation2 + $0x84] sm:$0xf]  ;;  %722 = vst.msk [vmem:[#allocation2 + $0x88] sm:$0xf] %vm170_vm0, %v511_v39  ;;  %v248_v32 = vsel %vm4732_vm5, 0, %v247_v13  ;;  %v272_v42 = vsel %vm4732_vm5, 0, %v271_v14  ;;  %v4967_v57 = vcombine.low %v906_v38, %v4948_v40 }
  0x53   : > { %v1618_v44 = vrot.slane %v1616_v46, 1  ;;  %v1868_v45 = vrot.slane %v4167_v22, 1  ;;  %v1869_v47 = vrot.slane %v4876_v33, 1  ;;  %v720_v48 = vsel %vm4768_vm7, %v502_v21, %v719_v41  ;;  %249 = vst [vmem:[#allocation2 + $0x2c] sm:$0x1] %v248_v32 }
  0x54   : > { %273 = vst [vmem:[#allocation2 + $0x8c] sm:$0x1] %v272_v42  ;;  %v4459_v49 = vld [vmem:[#allocation2 + $0x80] ss:$0 sps:$4 sm:$0x11]   ;;  %v1871_v33 = vrot.slane %v4168_v2, 1 }
  0x55   : > { %1804 = vrot.lane.b32.xlu1 %v1703_v26, %s4645_s5  ;;  %721 = vst [vmem:[#allocation2 + $0x84] sm:$0xf] %v720_v48  ;;  %v1619_v53 = vsel %vm1082_vm10, %v1614_v27, %v1618_v44  ;;  %v1712_v55 = vshll.u32 %v4459_v49, 16  ;;  %v765_v35 = vld [vmem:[#allocation2 + $0x18] sm:$0xf]  ;;  %v1870_v59 = vsel %vm1355_vm9, %v1868_v45, %v1869_v47  ;;  %v1872_v61 = vrot.slane %v4931_v19, 1 }
  0x56   : > { %1790 = vrot.lane.b32.xlu0 %v1619_v53, %s4645_s5  ;;  %v4969_v58 = vld [vmem:[#allocation2 + $0x1c] sm:$0xf]  ;;  %v938_v60 = vld [vmem:[#allocation2 + $0x18] sm:$0xe]  ;;  %v376_v63 = vrot.slane %v4925_v62, 4  ;;  %v512_v17 = vrot.slane %v4927_v9, 4 }
  0x57   : > { %v1714_v0 = vrot.slane %v1712_v55, 1  ;;  %v1892_v4 = vrot.slane %v4175_v11, 1  ;;  %v1893_v6 = vrot.slane %v4892_v8, 1  ;;  %v4976_v7 = vld [vmem:[#allocation2 + $0x28] sm:$0xf]  ;;  %v1895_v50 = vrot.slane %v4176_v52, 1 }
  0x58   : > { %v892_v10 = vld [vmem:[#allocation2 + $0x24] sm:$0xf]  ;;  %v4978_v12 = vld [vmem:[#allocation2 + $0x20] ss:$0 sps:$4 sm:$0x11]   ;;  %v2111_v14 = vshll.u32 %v4964_v56, 16  ;;  %v4985_v22 = vcombine.low %v765_v35, %v4969_v58  ;;  %v1873_v8 = vsel %vm1355_vm9, %v1871_v33, %v1872_v61  ;;  %v4215_v28 = vcombine.low %v938_v60, %v4940_v37 }
  0x59   : > { %v1715_v13 = vsel %vm1082_vm10, %v1710_v54, %v1714_v0  ;;  %v2207_v62 = vshll.u32 %v4967_v57, 16  ;;  %v4184_v19 = vcombine.low %v892_v10, %v4976_v7  ;;  %v4990_v21 = vld [vmem:[#allocation2 + $0x80] ss:$0 sps:$4 sm:$0x11]   ;;  %v781_v25 = vld [vmem:[#allocation2 + $0x78] sm:$0xf]  ;;  %v1894_v26 = vsel %vm1355_vm9, %v1892_v4, %v1893_v6 }
  0x5a   : > { %1916 = vrot.lane.b32.xlu0 %v1870_v59, %s4646_s6  ;;  %v667_v9 = vld [vmem:[#allocation2 + $0x2c] sm:$0x1]  ;;  %1806 = vrot.lane.b32.xlu1 %v1715_v13, %s4645_s5  ;;  %v1896_v27 = vrot.slane %v4459_v49, 1  ;;  %v4998_v31 = vld [vmem:[#allocation2 + $0x20] ss:$0 sps:$4 sm:$0x11]  }
  0x5b   : > { %v723_v15 = vld [vmem:[#allocation2 + $0x8c] sm:$0x1]  ;;  %v668_v23 = vsel %vm4724_vm3, %v376_v63, %v667_v9  ;;  %v5000_v20 = vld [vmem:[#allocation2 + $0x7c] sm:$0xf]  ;;  %v909_v30 = vld [vmem:[#allocation2 + $0x88] sm:$0xf] }
  0x5c   : > { %v724_v24 = vsel %vm4724_vm3, %v512_v17, %v723_v15  ;;  %669 = vst [vmem:[#allocation2 + $0x2c] sm:$0x1] %v668_v23  ;;  %v908_v46 = vld [vmem:[#allocation2 + $0x84] sm:$0xf]  ;;  %v2116_v34 = vshll.u32 %v4978_v12, 16  ;;  %v2109_v38 = vshrl.u32 %v4964_v56, 16  ;;  %v1897_v32 = vsel %vm1355_vm9, %v1895_v50, %v1896_v27 }
  0x5d   : > { %725 = vst [vmem:[#allocation2 + $0x8c] sm:$0x1] %v724_v24  ;;  %v1110_v5 = vshll.u32 %v4985_v22, 16  ;;  %v2123_v39 = vshll.u32 %v4184_v19, 16  ;;  %v2113_v37 = vrot.slane %v2111_v14, 1  ;;  %v2205_v2 = vshrl.u32 %v4967_v57, 16 }
  0x5e   : > { %1918 = vrot.lane.b32.xlu0 %v1873_v8, %s4646_s6  ;;  %1932 = vrot.lane.b32.xlu1 %v1894_v26, %s4646_s6  ;;  %v2209_v41 = vrot.slane %v2207_v62, 1  ;;  %v5009_v42 = vcombine.low %v908_v46, %v909_v30  ;;  %v2380_v44 = vrot.slane %v4215_v28, 1  ;;  %v5012_v45 = vcombine.low %v781_v25, %v5000_v20  ;;  %v946_v47 = vld [vmem:[#allocation2 + $0x78] sm:$0xe]  ;;  %v939_v53 = vld [vmem:[#allocation2 + $0x24] sm:$0xe] }
  0x5f   : > { %v2118_v48 = vrot.slane %v2116_v34, 1  ;;  %v2212_v11 = vshll.u32 %v4990_v21, 16  ;;  %v1108_v49 = vshrl.u32 %v4985_v22, 16  ;;  %v1115_v52 = vshll.u32 %v4998_v31, 16  ;;  %v947_v54 = vld [vmem:[#allocation2 + $0x84] sm:$0xe] }
  0x60   : > { %v2121_v55 = vshrl.u32 %v4184_v19, 16  ;;  %v1112_v33 = vrot.slane %v1110_v5, 1  ;;  %v2114_v35 = vor.u32 %v2113_v37, %v2109_v38  ;;  %v2125_v61 = vrot.slane %v2123_v39, 1  ;;  %v5022_v60 = vld [vmem:[#allocation2 + $0x80] ss:$0 sps:$4 sm:$0x11]  }
  0x61   : > { %v2219_v63 = vshll.u32 %v5009_v42, 16  ;;  %v4223_v0 = vcombine.low %v946_v47, %v4948_v40  ;;  %v2210_v4 = vor.u32 %v2209_v41, %v2205_v2  ;;  %v1206_v6 = vshll.u32 %v5012_v45, 16  ;;  %v767_v8 = vld [vmem:[#allocation2 + $0x24] sm:$0xf]  ;;  %v5036_v23 = vld [vmem:[#allocation2 + $0x28] sm:$0xf] }
  0x62   : > { %2028 = vrot.lane.b32.xlu0 %v4964_v56, %s4647_s7  ;;  %1934 = vrot.lane.b32.xlu1 %v1897_v32, %s4646_s6  ;;  %v4216_v50 = vcombine.low %v939_v53, %v4976_v7  ;;  %v4224_v10 = vcombine.low %v947_v54, %v909_v30  ;;  %v2214_v13 = vrot.slane %v2212_v11, 1  ;;  %v2381_v14 = vrot.slane %v4978_v12, 1  ;;  %v5040_v26 = vld [vmem:[#allocation2 + $0x18] sm:$0xe]  ;;  %v194_v46 = vld [vmem:[#allocation2 + $0x30] sm:$0x1] }
  0x63   : > { %v5020_v59 = vld [vmem:[#allocation2 + $0x2c] ss:$0 sps:$4 sm:$0x11]   ;;  %v2119_v62 = vsel %vm1082_vm10, %v2114_v35, %v2118_v48  ;;  %v2126_v9 = vor.u32 %v2125_v61, %v2121_v55  ;;  %v1117_v15 = vrot.slane %v1115_v52, 1  ;;  %v2217_v24 = vshrl.u32 %v5009_v42, 16 }
  0x64   : > { %v5025_v17 = vld [vmem:[#allocation2 + $0x8c] ss:$0 sps:$4 sm:$0x11]   ;;  %v2128_v56 = vshll.u32 %v5020_v59, 16  ;;  %v2221_v7 = vrot.slane %v2219_v63, 1  ;;  %v1113_v25 = vor.u32 %v1112_v33, %v1108_v49  ;;  %v5042_v12 = vrot.slane %v4223_v0, 1 }
  0x65   : > { %v1208_v27 = vrot.slane %v1206_v6, 1  ;;  %v1211_v28 = vshll.u32 %v5022_v60, 16  ;;  %v2405_v30 = vrot.slane %v4990_v21, 1  ;;  %v5048_v34 = vrot.slane %v4216_v50, 1  ;;  %v298_v39 = vld [vmem:[%s4752_s28 + $0x18] sm:$0xf] }
  0x66   : > { %2030 = vrot.lane.b32.xlu0 %v4184_v19, %s4647_s7  ;;  %2044 = vrot.lane.b32.xlu1 %v4967_v57, %s4647_s7  ;;  %v2130_v40 = vrot.slane %v2128_v56, 1  ;;  %v2224_v19 = vshll.u32 %v5025_v17, 16  ;;  %v1204_v57 = vshrl.u32 %v5012_v45, 16  ;;  %v5050_v38 = vrot.slane %v4224_v10, 1  ;;  %v783_v32 = vld [vmem:[#allocation2 + $0x84] sm:$0xf] }
  0x67   : > { %v5053_v5 = vcombine.low %v767_v8, %v5036_v23  ;;  %v2215_v37 = vsel %vm1082_vm10, %v2210_v4, %v2214_v13  ;;  %v2382_v41 = vsel %vm1355_vm9, %v2380_v44, %v2381_v14  ;;  %v5061_v21 = vld [vmem:[#allocation2 + $0x88] sm:$0xf]  ;;  %v4121_v47 = vcombine.low %v5040_v26, %v4969_v58  ;;  %v299_v48 = vld [vmem:[%s4752_s28 + $0x1c] sm:$0xf]  ;;  %v218_v11 = vld [vmem:[#allocation2 + $0x90] sm:$0x1] }
  0x68   : > { %v2131_v2 = vsel %vm1082_vm10, %v2126_v9, %v2130_v40  ;;  %v314_v49 = vld [vmem:[%s4752_s28 + $0x58] sm:$0xf]  ;;  %v2222_v52 = vor.u32 %v2221_v7, %v2217_v24  ;;  %v2226_v53 = vrot.slane %v2224_v19, 1  ;;  %v1118_v54 = vsel %vm1082_vm10, %v1113_v25, %v1117_v15  ;;  %v315_v55 = vld [vmem:[%s4752_s28 + $0x5c] sm:$0xf] }
  0x69   : > { %6486 = vst [vmem:[#allocation6_spill] sm:$0xff] %v5053_v5  ;;  %v1209_v33 = vor.u32 %v1208_v27, %v1204_v57  ;;  %v1213_v35 = vrot.slane %v1211_v28, 1  ;;  %v5071_v44 = vld [vmem:[#allocation2 + $0x2c] ss:$0 sps:$4 sm:$0x11]   ;;  %v378_v61 = vshrl.u32 %v298_v39, 16 }
  0x6a   : > { %2300 = vrot.lane.b32.xlu0 %v2119_v62, %s4648_s8  ;;  %2046 = vrot.lane.b32.xlu1 %v5009_v42, %s4647_s7  ;;  %v195_v42 = vsel %vm4724_vm3, 0, %v194_v46  ;;  %v381_v63 = vshll.u32 %v298_v39, 16  ;;  %v1122_v58 = vshll.u32 %v5053_v5, 16  ;;  %v386_v0 = vshrl.u32 %v299_v48, 16  ;;  %v5084_v15 = vld [vmem:[#allocation2 + $0x78] sm:$0xe] }
  0x6b   : > { %196 = vst [vmem:[#allocation2 + $0x30] sm:$0x1] %v195_v42  ;;  %v389_v4 = vshll.u32 %v299_v48, 16  ;;  %v219_v56 = vsel %vm4724_vm3, 0, %v218_v11  ;;  %v380_v6 = vrot.slane %v378_v61, 7  ;;  %v514_v50 = vshrl.u32 %v314_v49, 16 }
  0x6c   : > { %220 = vst [vmem:[#allocation2 + $0x90] sm:$0x1] %v219_v56  ;;  %v517_v10 = vshll.u32 %v314_v49, 16  ;;  %v522_v13 = vshrl.u32 %v315_v55, 16  ;;  %v2227_v14 = vsel %vm1082_vm10, %v2222_v52, %v2226_v53  ;;  %v5080_v62 = vcombine.low %v783_v32, %v5061_v21  ;;  %v250_v28 = vld [vmem:[#allocation2 + $0x38] sm:$0x1] }
  0x6d   : > { %v5082_v9 = vrot.slane %v386_v0, 7  ;;  %v525_v40 = vshll.u32 %v315_v55, 16  ;;  %v383_v8 = vor.u32 %v381_v63, %v380_v6  ;;  %v384_v24 = vrot.slane %v380_v6, 4  ;;  %v274_v32 = vld [vmem:[#allocation2 + $0x98] sm:$0x1] }
  0x6e   : > { %2302 = vrot.lane.b32.xlu0 %v2131_v2, %s4648_s8  ;;  %2316 = vrot.lane.b32.xlu1 %v2215_v37, %s4648_s8  ;;  %6487 = vst [vmem:[#allocation7_spill] sm:$0xff] %v5080_v62  ;;  %v516_v7 = vrot.slane %v514_v50, 7  ;;  %v5086_v19 = vrot.slane %v522_v13, 7  ;;  %v1120_v25 = vshrl.u32 %v5053_v5, 16  ;;  %v1124_v26 = vrot.slane %v1122_v58, 1 }
  0x6f   : > { %v1127_v57 = vshll.u32 %v5071_v44, 16  ;;  %v391_v27 = vor.u32 %v389_v4, %v5082_v9  ;;  %v2384_v46 = vrot.slane %v5020_v59, 1  ;;  %v5097_v48 = vld [vmem:[#allocation2 + $0x8c] ss:$0 sps:$4 sm:$0x11]   ;;  %v1218_v11 = vshll.u32 %v5080_v62, 16 }
  0x70   : > { %v519_v39 = vor.u32 %v517_v10, %v516_v7  ;;  %v520_v37 = vrot.slane %v516_v7, 4  ;;  %v527_v2 = vor.u32 %v525_v40, %v5086_v19  ;;  %v4129_v49 = vcombine.low %v5084_v15, %v5000_v20  ;;  %v5102_v52 = vld [vmem:[#allocation2 + $0x24] sm:$0xe]  ;;  %v197_v61 = vld [vmem:[#allocation2 + $0x3c] sm:$0x1] }
  0x71   : > { %v392_v59 = vsel %vm4777_vm8, %v384_v24, %v391_v27  ;;  %v1362_v42 = vrot.slane %v4121_v47, 1  ;;  %v5114_v63 = vld [vmem:[%s4752_s28 + $0x20] sm:$0xf]  ;;  %v1214_v58 = vsel %vm1082_vm10, %v1209_v33, %v1213_v35  ;;  %v1125_v47 = vor.u32 %v1124_v26, %v1120_v25  ;;  %v301_v6 = vld [vmem:[%s4752_s28 + $0x24] sm:$0xf] }
  0x72   : > { %2428 = vrot.lane.b32.xlu0 %v2382_v41, %s4649_s9  ;;  %2318 = vrot.lane.b32.xlu1 %v2227_v14, %s4648_s8  ;;  %v2406_v41 = vsel %vm1355_vm9, %v5042_v12, %v2405_v30  ;;  %v670_v53 = vld [vmem:[#allocation2 + $0x30] sm:$0xf]  ;;  %673 = vst.msk [vmem:[#allocation2 + $0x34] sm:$0xf] %vm170_vm0, %v392_v59  ;;  %v528_v12 = vsel %vm4777_vm8, %v520_v37, %v527_v2  ;;  %v251_v30 = vsel %vm4732_vm5, 0, %v250_v28  ;;  %v1129_v0 = vrot.slane %v1127_v57, 1 }
  0x73   : > { %v671_v55 = vsel %vm4768_vm7, %v383_v8, %v670_v53  ;;  %v726_v4 = vld [vmem:[#allocation2 + $0x90] sm:$0xf]  ;;  %729 = vst.msk [vmem:[#allocation2 + $0x94] sm:$0xf] %vm170_vm0, %v528_v12  ;;  %252 = vst [vmem:[#allocation2 + $0x38] sm:$0x1] %v251_v30  ;;  %v2385_v50 = vsel %vm1355_vm9, %v5048_v34, %v2384_v46 }
  0x74   : > { %672 = vst [vmem:[#allocation2 + $0x30] sm:$0xf] %v671_v55  ;;  %v275_v56 = vsel %vm4732_vm5, 0, %v274_v32  ;;  %v1216_v33 = vshrl.u32 %v5080_v62, 16  ;;  %v727_v35 = vsel %vm4768_vm7, %v519_v39, %v726_v4  ;;  %v221_v10 = vld [vmem:[#allocation2 + $0x9c] sm:$0x1]  ;;  %v1130_v57 = vsel %vm1082_vm10, %v1125_v47, %v1129_v0 }
  0x75   : > { %276 = vst [vmem:[#allocation2 + $0x98] sm:$0x1] %v275_v56  ;;  %v316_v13 = vld [vmem:[%s4752_s28 + $0x60] sm:$0xf]  ;;  %v1220_v14 = vrot.slane %v1218_v11, 1  ;;  %v1223_v40 = vshll.u32 %v5097_v48, 16 }
  0x76   : > { %1279 = vrot.lane.b32.xlu0 %v1118_v54, %s4644_s4  ;;  %2444 = vrot.lane.b32.xlu1 %v2406_v41, %s4649_s9  ;;  %v2408_v54 = vrot.slane %v5025_v17, 1  ;;  %728 = vst [vmem:[#allocation2 + $0x90] sm:$0xf] %v727_v35  ;;  %v198_v8 = vsel %vm4724_vm3, 0, %v197_v61  ;;  %v395_v24 = vshrl.u32 %v5114_v63, 16  ;;  %v1363_v34 = vrot.slane %v4998_v31, 1 }
  0x77   : > { %v4122_v17 = vcombine.low %v5102_v52, %v5036_v23  ;;  %v829_v7 = vld [vmem:[#allocation2 + $0x24] sm:$0xf]  ;;  %199 = vst [vmem:[#allocation2 + $0x3c] sm:$0x1] %v198_v8  ;;  %v403_v25 = vshrl.u32 %v301_v6, 16  ;;  %v406_v26 = vshll.u32 %v301_v6, 16  ;;  %v1221_v11 = vor.u32 %v1220_v14, %v1216_v33 }
  0x78   : > { %v5139_v27 = vld [vmem:[#allocation2 + $0x28] sm:$0xf]  ;;  %v397_v28 = vrot.slane %v395_v24, 7  ;;  %v222_v46 = vsel %vm4724_vm3, 0, %v221_v10  ;;  %v531_v39 = vshrl.u32 %v316_v13, 16  ;;  %v393_v23 = vrot.slane %v5082_v9, 4 }
  0x79   : > { %v820_v31 = vld [vmem:[#allocation2 + $0x84] sm:$0xe]  ;;  %v529_v37 = vrot.slane %v5086_v19, 4  ;;  %v398_v2 = vshll.u32 %v5114_v63, 16  ;;  %v5147_v32 = vrot.slane %v403_v25, 7  ;;  %v2409_v41 = vsel %vm1355_vm9, %v5050_v38, %v2408_v54 }
  0x7a   : > { %2430 = vrot.lane.b32.xlu0 %v2385_v50, %s4649_s9  ;;  %1295 = vrot.lane.b32.xlu1 %v1214_v58, %s4644_s4  ;;  %223 = vst [vmem:[#allocation2 + $0x9c] sm:$0x1] %v222_v46  ;;  %v1225_v52 = vrot.slane %v1223_v40, 1  ;;  %v401_v59 = vrot.slane %v397_v28, 4  ;;  %v5152_v53 = vcombine.low %v829_v7, %v5139_v27  ;;  %v845_v55 = vld [vmem:[#allocation2 + $0x84] sm:$0xf]  ;;  %v1364_v61 = vsel %vm1355_vm9, %v1362_v42, %v1363_v34 }
  0x7b   : > { %v408_v12 = vor.u32 %v406_v26, %v5147_v32  ;;  %v317_v9 = vld [vmem:[%s4752_s28 + $0x64] sm:$0xf]  ;;  %v5156_v30 = vrot.slane %v531_v39, 7  ;;  %v534_v19 = vshll.u32 %v316_v13, 16  ;;  %v1365_v63 = vrot.slane %v4122_v17, 1 }
  0x7c   : > { %v1366_v38 = vrot.slane %v5071_v44, 1  ;;  %v4130_v58 = vcombine.low %v820_v31, %v5061_v21  ;;  %v674_v47 = vld [vmem:[#allocation2 + $0x38] sm:$0x1]  ;;  %v5163_v4 = vld [vmem:[#allocation2 + $0x88] sm:$0xf]  ;;  %v400_v54 = vor.u32 %v398_v2, %v397_v28  ;;  %v1226_v21 = vsel %vm1082_vm10, %v1221_v11, %v1225_v52 }
  0x7d   : > { %v730_v0 = vld [vmem:[#allocation2 + $0x98] sm:$0x1]  ;;  %v831_v56 = vld [vmem:[#allocation2 + $0x30] sm:$0xf]  ;;  %v5165_v6 = vld [vmem:[#allocation2 + $0x34] sm:$0xf]  ;;  %v675_v50 = vsel %vm4724_vm3, %v393_v23, %v674_v47  ;;  %v409_v44 = vsel %vm4777_vm8, %v401_v59, %v408_v12  ;;  %v536_v40 = vor.u32 %v534_v19, %v5156_v30  ;;  %v5183_v8 = vcombine.low %v845_v55, %v5163_v4 }
  0x7e   : > { %1281 = vrot.lane.b32.xlu0 %v1130_v57, %s4644_s4  ;;  %2446 = vrot.lane.b32.xlu1 %v2409_v41, %s4649_s9  ;;  %v731_v42 = vsel %vm4724_vm3, %v529_v37, %v730_v0  ;;  %v1386_v33 = vrot.slane %v4129_v49, 1  ;;  %v1387_v35 = vrot.slane %v5022_v60, 1  ;;  %676 = vst [vmem:[#allocation2 + $0x38] sm:$0x1] %v675_v50  ;;  %680 = vst.msk [vmem:[#allocation2 + $0x40] sm:$0xf] %vm170_vm0, %v409_v44 }
  0x7f   : > { %732 = vst [vmem:[#allocation2 + $0x98] sm:$0x1] %v731_v42  ;;  %v539_v10 = vshrl.u32 %v317_v9, 16  ;;  %v1623_v13 = vshll.u32 %v5152_v53, 16  ;;  %v677_v14 = vld [vmem:[#allocation2 + $0x3c] sm:$0xf]  ;;  %v5186_v20 = vcombine.low %v831_v56, %v5165_v6  ;;  %v1367_v24 = vsel %vm1355_vm9, %v1365_v63, %v1366_v38 }
  0x80   : > { %v5188_v15 = vld [vmem:[#allocation2 + $0x2c] ss:$0 sps:$4 sm:$0x11]   ;;  %v542_v60 = vshll.u32 %v317_v9, 16  ;;  %v1389_v34 = vrot.slane %v4130_v58, 1  ;;  %v1390_v17 = vrot.slane %v5097_v48, 1  ;;  %v678_v7 = vsel %vm4768_vm7, %v400_v54, %v677_v14 }
  0x81   : > { %v733_v49 = vld [vmem:[#allocation2 + $0x9c] sm:$0xf]  ;;  %v253_v25 = vld [vmem:[#allocation2 + $0x44] sm:$0x1]  ;;  %v1388_v26 = vsel %vm1355_vm9, %v1386_v33, %v1387_v35  ;;  %v847_v57 = vld [vmem:[#allocation2 + $0x90] sm:$0xf] }
  0x82   : > { %1408 = vrot.lane.b32.xlu0 %v1364_v61, %s4642_s29  ;;  %1297 = vrot.lane.b32.xlu1 %v1226_v21, %s4644_s4  ;;  %v5196_v28 = vld [vmem:[#allocation2 + $0x94] sm:$0xf]  ;;  %679 = vst [vmem:[#allocation2 + $0x3c] sm:$0xf] %v678_v7  ;;  %v537_v46 = vrot.slane %v5156_v30, 4  ;;  %v541_v39 = vrot.slane %v539_v10, 7  ;;  %v734_v37 = vsel %vm4768_vm7, %v536_v40, %v733_v49  ;;  %v1391_v30 = vsel %vm1355_vm9, %v1389_v34, %v1390_v17 }
  0x83   : > { %v1621_v31 = vshrl.u32 %v5152_v53, 16  ;;  %v1625_v23 = vrot.slane %v1623_v13, 1  ;;  %v277_v48 = vld [vmem:[#allocation2 + $0xa4] sm:$0x1]  ;;  %v1719_v2 = vshll.u32 %v5183_v8, 16  ;;  %v1635_v41 = vshll.u32 %v5186_v20, 16 }
  0x84   : > { %v1628_v11 = vshll.u32 %v5188_v15, 16  ;;  %v5206_v52 = vld [vmem:[#allocation2 + $0x8c] ss:$0 sps:$4 sm:$0x11]   ;;  %v544_v59 = vor.u32 %v542_v60, %v541_v39  ;;  %735 = vst [vmem:[#allocation2 + $0x9c] sm:$0xf] %v734_v37  ;;  %v4146_v55 = vcombine.low %v847_v57, %v5196_v28 }
  0x85   : > { %v5210_v12 = vld [vmem:[#allocation2 + $0x38] ss:$0 sps:$4 sm:$0x11]   ;;  %v254_v9 = vsel %vm4732_vm5, 0, %v253_v25  ;;  %v278_v61 = vsel %vm4732_vm5, 0, %v277_v48  ;;  %v1626_v63 = vor.u32 %v1625_v23, %v1621_v31  ;;  %v1717_v58 = vshrl.u32 %v5183_v8, 16 }
  0x86   : > { %1410 = vrot.lane.b32.xlu0 %v1367_v24, %s4642_s29  ;;  %1424 = vrot.lane.b32.xlu1 %v1388_v26, %s4642_s29  ;;  %v545_v19 = vsel %vm4777_vm8, %v537_v46, %v544_v59  ;;  %255 = vst [vmem:[#allocation2 + $0x44] sm:$0x1] %v254_v9  ;;  %279 = vst [vmem:[#allocation2 + $0xa4] sm:$0x1] %v278_v61  ;;  %v1630_v38 = vrot.slane %v1628_v11, 1  ;;  %v1721_v47 = vrot.slane %v1719_v2, 1 }
  0x87   : > { %736 = vst.msk [vmem:[#allocation2 + $0xa0] sm:$0xf] %vm170_vm0, %v545_v19  ;;  %v1724_v0 = vshll.u32 %v5206_v52, 16  ;;  %v875_v56 = vld [vmem:[#allocation2 + $0x24] sm:$0xe]  ;;  %v1731_v50 = vshll.u32 %v4146_v55, 16 }
  0x88   : > { %v1633_v42 = vshrl.u32 %v5186_v20, 16  ;;  %v1637_v54 = vrot.slane %v1635_v41, 1  ;;  %v1640_v44 = vshll.u32 %v5210_v12, 16  ;;  %v883_v21 = vld [vmem:[#allocation2 + $0x84] sm:$0xe]  ;;  %v546_v13 = vrot.slane %v541_v39, 4 }
  0x89   : > { %v5227_v33 = vld [vmem:[#allocation2 + $0x98] ss:$0 sps:$4 sm:$0x11]   ;;  %v876_v35 = vld [vmem:[#allocation2 + $0x30] sm:$0xe]  ;;  %v4169_v14 = vcombine.low %v875_v56, %v5139_v27  ;;  %v1631_v40 = vsel %vm1082_vm10, %v1626_v63, %v1630_v38  ;;  %v1722_v24 = vor.u32 %v1721_v47, %v1717_v58  ;;  %v1726_v34 = vrot.slane %v1724_v0, 1 }
  0x8a   : > { %1520 = vrot.lane.b32.xlu0 %v5152_v53, %s4643_s30  ;;  %1426 = vrot.lane.b32.xlu1 %v1391_v30, %s4642_s29  ;;  %v410_v53 = vrot.slane %v5147_v32, 4  ;;  %v5230_v10 = vld [vmem:[#allocation2 + $0x34] sm:$0xf]  ;;  %v894_v60 = vld [vmem:[#allocation2 + $0x30] sm:$0xf]  ;;  %v1638_v17 = vor.u32 %v1637_v54, %v1633_v42  ;;  %v1642_v32 = vrot.slane %v1640_v44, 1  ;;  %v4177_v39 = vcombine.low %v883_v21, %v5163_v4 }
  0x8b   : > { %v910_v49 = vld [vmem:[#allocation2 + $0x90] sm:$0xf]  ;;  %v5238_v7 = vld [vmem:[#allocation2 + $0x94] sm:$0xf]  ;;  %v1729_v26 = vshrl.u32 %v4146_v55, 16  ;;  %v1733_v57 = vrot.slane %v1731_v50, 1  ;;  %v4170_v23 = vcombine.low %v876_v35, %v5165_v6  ;;  %v5249_v37 = vcombine.low %v894_v60, %v5230_v10 }
  0x8c   : > { %v1736_v27 = vshll.u32 %v5227_v33, 16  ;;  %v884_v31 = vld [vmem:[#allocation2 + $0x90] sm:$0xe]  ;;  %v5252_v48 = vcombine.low %v910_v49, %v5238_v7  ;;  %v1643_v4 = vsel %vm1082_vm10, %v1638_v17, %v1642_v32  ;;  %v1874_v2 = vrot.slane %v4169_v14, 1  ;;  %v896_v19 = vld [vmem:[#allocation2 + $0x3c] sm:$0xf] }
  0x8d   : > { %v681_v25 = vld [vmem:[#allocation2 + $0x44] sm:$0x1]  ;;  %v1875_v41 = vrot.slane %v5188_v15, 1  ;;  %v4178_v11 = vcombine.low %v884_v31, %v5196_v28  ;;  %v1727_v6 = vsel %vm1082_vm10, %v1722_v24, %v1726_v34  ;;  %v1734_v59 = vor.u32 %v1733_v57, %v1729_v26  ;;  %v5259_v61 = vld [vmem:[#allocation2 + $0x40] sm:$0xf] }
  0x8e   : > { %1522 = vrot.lane.b32.xlu0 %v5186_v20, %s4643_s30  ;;  %1536 = vrot.lane.b32.xlu1 %v5183_v8, %s4643_s30  ;;  %v682_v20 = vsel %vm4724_vm3, %v410_v53, %v681_v25  ;;  %v737_v46 = vld [vmem:[#allocation2 + $0xa4] sm:$0x1]  ;;  %v1738_v9 = vrot.slane %v1736_v27, 1  ;;  %v1898_v30 = vrot.slane %v4177_v39, 1  ;;  %v1877_v63 = vrot.slane %v4170_v23, 1 }
  0x8f   : > { %683 = vst [vmem:[#allocation2 + $0x44] sm:$0x1] %v682_v20  ;;  %v738_v8 = vsel %vm4724_vm3, %v546_v13, %v737_v46  ;;  %v2135_v38 = vshll.u32 %v5249_v37, 16  ;;  %v2231_v58 = vshll.u32 %v5252_v48, 16  ;;  %v1876_v15 = vsel %vm1355_vm9, %v1874_v2, %v1875_v41  ;;  %v940_v42 = vld [vmem:[#allocation2 + $0x30] sm:$0xe] }
  0x90   : > { %739 = vst [vmem:[#allocation2 + $0xa4] sm:$0x1] %v738_v8  ;;  %v5267_v28 = vld [vmem:[#allocation2 + $0x38] ss:$0 sps:$4 sm:$0x11]   ;;  %v1739_v0 = vsel %vm1082_vm10, %v1734_v59, %v1738_v9  ;;  %v1899_v56 = vrot.slane %v5206_v52, 1  ;;  %v4217_v27 = vcombine.low %v940_v42, %v5230_v10 }
  0x91   : > { %v5269_v47 = vld [vmem:[#allocation2 + $0x98] ss:$0 sps:$4 sm:$0x11]   ;;  %v1901_v50 = vrot.slane %v4178_v11, 1  ;;  %v948_v54 = vld [vmem:[#allocation2 + $0x90] sm:$0xe] }
  0x92   : > { %1792 = vrot.lane.b32.xlu0 %v1631_v40, %s4645_s5  ;;  %1538 = vrot.lane.b32.xlu1 %v4146_v55, %s4643_s30  ;;  %v1878_v55 = vrot.slane %v5210_v12, 1  ;;  %v5274_v12 = vcombine.low %v896_v19, %v5259_v61  ;;  %v769_v44 = vld [vmem:[#allocation2 + $0x30] sm:$0xf]  ;;  %v5276_v21 = vld [vmem:[#allocation2 + $0x34] sm:$0xf]  ;;  %v2133_v53 = vshrl.u32 %v5249_v37, 16  ;;  %v1900_v17 = vsel %vm1355_vm9, %v1898_v30, %v1899_v56 }
  0x93   : > { %v2137_v35 = vrot.slane %v2135_v38, 1  ;;  %v2229_v13 = vshrl.u32 %v5252_v48, 16  ;;  %v2233_v14 = vrot.slane %v2231_v58, 1  ;;  %v785_v40 = vld [vmem:[#allocation2 + $0x90] sm:$0xf]  ;;  %v2140_v24 = vshll.u32 %v5267_v28, 16 }
  0x94   : > { %v1879_v52 = vsel %vm1355_vm9, %v1877_v63, %v1878_v55  ;;  %v912_v60 = vld [vmem:[#allocation2 + $0x9c] sm:$0xf]  ;;  %v5283_v49 = vld [vmem:[#allocation2 + $0xa0] sm:$0xf]  ;;  %v2236_v34 = vshll.u32 %v5269_v47, 16  ;;  %v1902_v32 = vrot.slane %v5227_v33, 1  ;;  %v5291_v26 = vcombine.low %v769_v44, %v5276_v21 }
  0x95   : > { %v2147_v25 = vshll.u32 %v5274_v12, 16  ;;  %v5293_v57 = vld [vmem:[#allocation2 + $0x94] sm:$0xf]  ;;  %v4225_v20 = vcombine.low %v948_v54, %v5238_v7  ;;  %v5298_v46 = vld [vmem:[#allocation2 + $0x3c] sm:$0xe]  ;;  %v5301_v39 = vcombine.low %v912_v60, %v5283_v49  ;;  %v2138_v33 = vor.u32 %v2137_v35, %v2133_v53 }
  0x96   : > { %1794 = vrot.lane.b32.xlu0 %v1643_v4, %s4645_s5  ;;  %1808 = vrot.lane.b32.xlu1 %v1727_v6, %s4645_s5  ;;  %6488 = vst [vmem:[#allocation8_spill] sm:$0xff] %v5291_v26  ;;  %v5303_v31 = vld [vmem:[#allocation2 + $0x44] ss:$0 sps:$4 sm:$0x11]   ;;  %v2142_v8 = vrot.slane %v2140_v24, 1  ;;  %v2234_v23 = vor.u32 %v2233_v14, %v2229_v13  ;;  %v2238_v4 = vrot.slane %v2236_v34, 1  ;;  %v5311_v2 = vcombine.low %v785_v40, %v5293_v57 }
  0x97   : > { %v5308_v7 = vld [vmem:[#allocation2 + $0x38] ss:$0 sps:$4 sm:$0x11]   ;;  %v200_v41 = vld [vmem:[#allocation2 + $0x48] sm:$0x1]  ;;  %v1903_v11 = vsel %vm1355_vm9, %v1901_v50, %v1902_v32  ;;  %v2145_v6 = vshrl.u32 %v5274_v12, 16 }
  0x98   : > { %v2149_v59 = vrot.slane %v2147_v25, 1  ;;  %v1134_v9 = vshll.u32 %v5291_v26, 16  ;;  %v302_v30 = vld [vmem:[%s4752_s28 + $0x28] sm:$0xf]  ;;  %v303_v19 = vld [vmem:[%s4752_s28 + $0x2c] sm:$0xf]  ;;  %v2143_v44 = vsel %vm1082_vm10, %v2138_v33, %v2142_v8  ;;  %v5335_v53 = vsel %vm1082_vm10, %v2234_v23, %v2238_v4 }
  0x99   : > { %v5320_v55 = vrot.slane %v4217_v27, 1  ;;  %v5323_v58 = vrot.slane %v4225_v20, 1  ;;  %v2243_v56 = vshll.u32 %v5301_v39, 16  ;;  %v2152_v50 = vshll.u32 %v5303_v31, 16  ;;  %v771_v32 = vld [vmem:[#allocation2 + $0x3c] sm:$0xf] }
  0x9a   : > { %1920 = vrot.lane.b32.xlu0 %v1876_v15, %s4646_s6  ;;  %1810 = vrot.lane.b32.xlu1 %v1739_v0, %s4645_s5  ;;  %v224_v15 = vld [vmem:[#allocation2 + $0xa8] sm:$0x1]  ;;  %v1132_v54 = vshrl.u32 %v5291_v26, 16  ;;  %v2241_v35 = vshrl.u32 %v5301_v39, 16  ;;  %v1139_v13 = vshll.u32 %v5308_v7, 16  ;;  %v2150_v14 = vor.u32 %v2149_v59, %v2145_v6 }
  0x9b   : > { %v318_v0 = vld [vmem:[%s4752_s28 + $0x68] sm:$0xf]  ;;  %v5340_v40 = vld [vmem:[#allocation2 + $0xa4] ss:$0 sps:$4 sm:$0x11]   ;;  %v201_v34 = vsel %vm4724_vm3, 0, %v200_v41 }
  0x9c   : > { %v5342_v60 = vld [vmem:[#allocation2 + $0x98] ss:$0 sps:$4 sm:$0x11]   ;;  %v5349_v25 = vld [vmem:[#allocation2 + $0x40] sm:$0xf]  ;;  %v412_v27 = vshrl.u32 %v302_v30, 16 }
  0x9d   : > { %202 = vst [vmem:[#allocation2 + $0x48] sm:$0x1] %v201_v34  ;;  %v415_v20 = vshll.u32 %v302_v30, 16  ;;  %v420_v33 = vshrl.u32 %v303_v19, 16  ;;  %v423_v8 = vshll.u32 %v303_v19, 16  ;;  %v2154_v23 = vrot.slane %v2152_v50, 1 }
  0x9e   : > { %1922 = vrot.lane.b32.xlu0 %v1879_v52, %s4646_s6  ;;  %1936 = vrot.lane.b32.xlu1 %v1900_v17, %s4646_s6  ;;  %v5306_v10 = vpop.permute.xlu0 %1404  ;;  %v1136_v52 = vrot.slane %v1134_v9, 1  ;;  %v225_v4 = vsel %vm4724_vm3, 0, %v224_v15  ;;  %v414_v41 = vrot.slane %v412_v27, 7  ;;  %v551_v9 = vshll.u32 %v318_v0, 16  ;;  %v5381_v62 = vld [vmem:[#allocation2 + $0xa0] sm:$0xf] }
  0x9f   : > { %v5357_v59 = vrot.slane %v420_v33, 7  ;;  %226 = vst [vmem:[#allocation2 + $0xa8] sm:$0x1] %v225_v4  ;;  %v2245_v34 = vrot.slane %v2243_v56, 1  ;;  %v2248_v19 = vshll.u32 %v5340_v40, 16  ;;  %v1230_v50 = vshll.u32 %v5311_v2, 16 }
  0xa0   : > { %v417_v15 = vor.u32 %v415_v20, %v414_v41  ;;  %v418_v24 = vrot.slane %v414_v41, 4  ;;  %v1235_v27 = vshll.u32 %v5342_v60, 16  ;;  %v256_v33 = vld [vmem:[#allocation2 + $0x50] sm:$0x1]  ;;  %v2155_v20 = vsel %vm1082_vm10, %v2150_v14, %v2154_v23 }
  0xa1   : > { %v425_v38 = vor.u32 %v423_v8, %v5357_v59  ;;  %v280_v4 = vld [vmem:[#allocation2 + $0xb0] sm:$0x1]  ;;  %v1141_v8 = vrot.slane %v1139_v13, 1  ;;  %v2246_v63 = vor.u32 %v2245_v34, %v2241_v35  ;;  %v2250_v26 = vrot.slane %v2248_v19, 1 }
  0xa2   : > { %2032 = vrot.lane.b32.xlu0 %v5249_v37, %s4647_s7  ;;  %1938 = vrot.lane.b32.xlu1 %v1903_v11, %s4646_s6  ;;  %v319_v37 = vld [vmem:[%s4752_s28 + $0x6c] sm:$0xf]  ;;  %v548_v11 = vshrl.u32 %v318_v0, 16  ;;  %v5369_v0 = vcombine.low %v771_v32, %v5349_v25  ;;  %v1232_v14 = vrot.slane %v1230_v50, 1  ;;  %v6490_v35 = vcombine.low %v5298_v46, %v5259_v61  ;;  %v5416_v50 = vld [vmem:[%s4752_s28 + $0x30] sm:$0xf] }
  0xa3   : > { %v556_v6 = vshrl.u32 %v319_v37, 16  ;;  %v559_v30 = vshll.u32 %v319_v37, 16  ;;  %v426_v32 = vsel %vm4777_vm8, %v418_v24, %v425_v38  ;;  %v5386_v23 = vld [vmem:[#allocation2 + $0x44] ss:$0 sps:$4 sm:$0x11]   ;;  %v257_v38 = vsel %vm4732_vm5, 0, %v256_v33 }
  0xa4   : > { %v550_v42 = vrot.slane %v548_v11, 7  ;;  %6489 = vst [vmem:[#allocation9_spill] sm:$0xff] %v5369_v0  ;;  %v5372_v11 = vld [vmem:[#allocation2 + $0x9c] sm:$0xe]  ;;  %v684_v5 = vld [vmem:[#allocation2 + $0x48] sm:$0xf] }
  0xa5   : > { %687 = vst.msk [vmem:[#allocation2 + $0x4c] sm:$0xf] %vm170_vm0, %v426_v32  ;;  %v685_v13 = vsel %vm4768_vm7, %v417_v15, %v684_v5  ;;  %v5402_v5 = vrot.slane %v6490_v35, 1  ;;  %258 = vst [vmem:[#allocation2 + $0x50] sm:$0x1] %v257_v38  ;;  %v4226_v34 = vcombine.low %v5372_v11, %v5283_v49  ;;  %v6491_v19 = vrot.slane %v5267_v28, 1 }
  0xa6   : > { %2034 = vrot.lane.b32.xlu0 %v5274_v12, %s4647_s7  ;;  %2048 = vrot.lane.b32.xlu1 %v5252_v48, %s4647_s7  ;;  %v5360_v12 = vrot.slane %v556_v6, 7  ;;  %v5365_v48 = vpop.permute.xlu1 %1532  ;;  %v554_v56 = vrot.slane %v550_v42, 4  ;;  %v787_v6 = vld [vmem:[#allocation2 + $0x9c] sm:$0xf]  ;;  %v553_v41 = vor.u32 %v551_v9, %v550_v42  ;;  %v281_v42 = vsel %vm4732_vm5, 0, %v280_v4  ;;  %v4537_v28 = vld [vmem:[%s6468_s1 + $0x8] sm:$0xff]  }
  0xa7   : > { %v5347_v17 = vpop.permute.xlu0 %1516  ;;  %686 = vst [vmem:[#allocation2 + $0x48] sm:$0xf] %v685_v13  ;;  %v740_v24 = vld [vmem:[#allocation2 + $0xa8] sm:$0xf]  ;;  %282 = vst [vmem:[#allocation2 + $0xb0] sm:$0x1] %v281_v42  ;;  %v2388_v61 = vsel %vm1355_vm9, %v5320_v55, %v6491_v19 }
  0xa8   : > { %v561_v37 = vor.u32 %v559_v30, %v5360_v12  ;;  %v1137_v30 = vor.u32 %v1136_v52, %v1132_v54  ;;  %v4532_v54 = vld [vmem:[%s6468_s1 + $0x10] ss:$0 sps:$4 sm:$0x33]   ;;  %v1146_v52 = vshll.u32 %v5369_v0, 16  ;;  %v203_v9 = vld [vmem:[#allocation2 + $0x54] sm:$0x1]  ;;  %v741_v46 = vsel %vm4768_vm7, %v553_v41, %v740_v24 }
  0xa9   : > { %v5419_v15 = vld [vmem:[%s4752_s28 + $0x34] sm:$0xf]  ;;  %v1237_v49 = vrot.slane %v1235_v27, 1  ;;  %742 = vst [vmem:[#allocation2 + $0xa8] sm:$0xf] %v741_v46  ;;  %vm2784_vm11 = vcmask 1041408  }
  0xaa   : > { %2304 = vrot.lane.b32.xlu0 %v2143_v44, %s4648_s8  ;;  %2050 = vrot.lane.b32.xlu1 %v5301_v39, %s4647_s7  ;;  %v562_v39 = vsel %vm4777_vm8, %v554_v56, %v561_v37  ;;  %v2251_v56 = vsel %vm1082_vm10, %v2246_v63, %v2250_v26  ;;  %v5422_v37 = vpop.permute.xlu1 %1534  ;;  %v1142_v55 = vsel %vm1082_vm10, %v1137_v30, %v1141_v8  ;;  %v6493_v4 = vshrl.u32 %v5311_v2, 16  ;;  %v813_v26 = vld [vmem:[#allocation2 + $0x30] sm:$0xe]  ;;  %v5452_v42 = vld [vmem:[#allocation2 + $0xa4] ss:$0 sps:$4 sm:$0x11]  }
  0xab   : > { %743 = vst.msk [vmem:[#allocation2 + $0xac] sm:$0xf] %vm170_vm0, %v562_v39  ;;  %4385 = vmatprep.subr.msk.bf16.mxu0 %vm2784_vm11, %v4532_v54  ;;  %4386 = vmatprep.subr.msk.bf16.mxu1 %vm2784_vm11, %v4532_v54  ;;  %v2786_v63 = vsel %vm2784_vm11, %v4532_v54, 0  ;;  %v204_v27 = vsel %vm4724_vm3, 0, %v203_v9  ;;  %v427_v32 = vrot.slane %v5357_v59, 4  ;;  %v429_v8 = vshrl.u32 %v5416_v50, 16 }
  0xac   : > { %v1233_v11 = vor.u32 %v1232_v14, %v6493_v4  ;;  %4342 = vmatpush3.bf16.msra.mxu0 %v2786_v63  ;;  %205 = vst [vmem:[#allocation2 + $0x54] sm:$0x1] %v204_v27  ;;  %v437_v41 = vshrl.u32 %v5419_v15, 16  ;;  %v2390_v30 = vrot.slane %v5303_v31, 1  ;;  %v1148_v39 = vrot.slane %v1146_v52, 1  ;;  %4382 = vmatpush3.bf16.msra.mxu1 %v2786_v63 }
  0xad   : > { %v5377_v44 = vpop.permute.xlu0 %1518  ;;  %v1151_v14 = vshll.u32 %v5386_v23, 16  ;;  %v563_v13 = vrot.slane %v5360_v12, 4  ;;  %v6494_v38 = vrot.slane %v5269_v47, 1  ;;  %4343 = vmatprep.subr.bf16.mxu0 %v4537_v28  ;;  %v431_v35 = vrot.slane %v429_v8, 7  ;;  %4380 = vmatprep.subr.bf16.mxu1 %v4537_v28  ;;  %v688_v52 = vld [vmem:[#allocation2 + $0x50] sm:$0x1] }
  0xae   : > { %2306 = vrot.lane.b32.xlu0 %v2155_v20, %s4648_s8  ;;  %2320 = vrot.lane.b32.xlu1 %v5335_v53, %s4648_s8  ;;  %v5427_v53 = vcombine.low %v787_v6, %v5381_v62  ;;  %v1144_v20 = vshrl.u32 %v5369_v0, 16  ;;  %v5439_v6 = vld [vmem:[#allocation2 + $0x90] sm:$0xe]  ;;  %v432_v24 = vshll.u32 %v5416_v50, 16  ;;  %v4123_v31 = vcombine.low %v813_v26, %v5276_v21  ;;  %v814_v63 = vld [vmem:[#allocation2 + $0x3c] sm:$0xe] }
  0xaf   : > { %v2412_v59 = vsel %vm1355_vm9, %v5323_v58, %v6494_v38  ;;  %v4131_v12 = vcombine.low %v5439_v6, %v5293_v57  ;;  %v5459_v9 = vrot.slane %v437_v41, 7  ;;  %v440_v47 = vshll.u32 %v5419_v15, 16  ;;  %v4542_v58 = vld [vmem:[%s6468_s1] sm:$0xff]   ;;  %v833_v27 = vld [vmem:[#allocation2 + $0x3c] sm:$0xf] }
  0xb0   : > { %6492 = vst [vmem:[#allocation10_spill] sm:$0xff] %v5427_v53  ;;  %v1242_v54 = vshll.u32 %v5427_v53, 16  ;;  %v2413_v46 = vrot.slane %v4226_v34, 1  ;;  %v2414_v21 = vrot.slane %v5340_v40, 1  ;;  %v689_v57 = vsel %vm4724_vm3, %v427_v32, %v688_v52  ;;  %4344 = vmatpush3.bf16.msra.mxu0 %v4537_v28  ;;  %4383 = vmatpush3.bf16.msra.mxu1 %v4537_v28  ;;  %v5481_v6 = vld [vmem:[#allocation2 + $0x40] sm:$0xf] }
  0xb1   : > { %v5424_v33 = vpop.permute.xlu0 %1275  ;;  %v2391_v15 = vsel %vm1355_vm9, %v5402_v5, %v2390_v30  ;;  %v1149_v4 = vor.u32 %v1148_v39, %v1144_v20  ;;  %v1153_v26 = vrot.slane %v1151_v14, 1  ;;  %690 = vst [vmem:[#allocation2 + $0x50] sm:$0x1] %v689_v57  ;;  %v1240_v40 = vshrl.u32 %v5427_v53, 16  ;;  %4345 = vmatprep.subr.bf16.mxu0 %v4542_v58  ;;  %4381 = vmatprep.subr.bf16.mxu1 %v4542_v58  ;;  %v227_v39 = vld [vmem:[#allocation2 + $0xb4] sm:$0x1] }
  0xb2   : > { %2432 = vrot.lane.b32.xlu0 %v2388_v61, %s4649_s9  ;;  %2322 = vrot.lane.b32.xlu1 %v2251_v56, %s4648_s8  ;;  %v1238_v61 = vsel %vm1082_vm10, %v1233_v11, %v1237_v49  ;;  %v744_v56 = vld [vmem:[#allocation2 + $0xb0] sm:$0x1]  ;;  %v1244_v49 = vrot.slane %v1242_v54, 1  ;;  %v434_v11 = vor.u32 %v432_v24, %v431_v35  ;;  %v442_v5 = vor.u32 %v440_v47, %v5459_v9  ;;  %v822_v38 = vld [vmem:[#allocation2 + $0x9c] sm:$0xe] }
  0xb3   : > { %v745_v34 = vsel %vm4724_vm3, %v563_v13, %v744_v56  ;;  %v691_v20 = vld [vmem:[#allocation2 + $0x54] sm:$0xf]  ;;  %v1368_v8 = vrot.slane %v4123_v31, 1  ;;  %v1369_v41 = vrot.slane %v5308_v7, 1  ;;  %v4124_v30 = vcombine.low %v814_v63, %v5349_v25  ;;  %v320_v54 = vld [vmem:[%s4752_s28 + $0x70] sm:$0xf] }
  0xb4   : > { %746 = vst [vmem:[#allocation2 + $0xb0] sm:$0x1] %v745_v34  ;;  %v2415_v28 = vsel %vm1355_vm9, %v2413_v46, %v2414_v21  ;;  %v1154_v14 = vsel %vm1082_vm10, %v1149_v4, %v1153_v26  ;;  %v1392_v13 = vrot.slane %v4131_v12, 1  ;;  %v1245_v24 = vor.u32 %v1244_v49, %v1240_v40  ;;  %4346 = vmatpush3.bf16.msra.mxu0 %v4542_v58  ;;  %v5501_v12 = vld [vmem:[#allocation2 + $0xa0] sm:$0xf] }
  0xb5   : > { %v5470_v50 = vpop.permute.xlu0 %1406  ;;  %v5496_v31 = vcombine.low %v833_v27, %v5481_v6  ;;  %v692_v7 = vsel %vm4768_vm7, %v434_v11, %v691_v20  ;;  %4384 = vmatpush3.bf16.msra.mxu1 %v4542_v58  ;;  %v1393_v25 = vrot.slane %v5342_v60, 1  ;;  %v228_v46 = vsel %vm4724_vm3, 0, %v227_v39  ;;  %v321_v60 = vld [vmem:[%s4752_s28 + $0x74] sm:$0xf]  ;;  %v5516_v26 = vld [vmem:[#allocation2 + $0x4c] sm:$0xf] }
  0xb6   : > { %1283 = vrot.lane.b32.xlu0 %v1142_v55, %s4644_s4  ;;  %2448 = vrot.lane.b32.xlu1 %v2412_v59, %s4649_s9  ;;  %v1247_v55 = vshll.u32 %v5452_v42, 16  ;;  %v435_v59 = vrot.slane %v431_v35, 4  ;;  %693 = vst [vmem:[#allocation2 + $0x54] sm:$0xf] %v692_v7  ;;  %v1371_v57 = vrot.slane %v4124_v30, 1  ;;  %v4132_v56 = vcombine.low %v822_v38, %v5381_v62 }
  0xb7   : > { %v5465_v19 = vpop.permute.xlu1 %1420  ;;  %229 = vst [vmem:[#allocation2 + $0xb4] sm:$0x1] %v228_v46  ;;  %v565_v58 = vshrl.u32 %v320_v54, 16  ;;  %v1372_v4 = vrot.slane %v5386_v23, 1  ;;  %v568_v63 = vshll.u32 %v320_v54, 16  ;;  %v1647_v40 = vshll.u32 %v5496_v31, 16 }
  0xb8   : > { %v1249_v52 = vrot.slane %v1247_v55, 1  ;;  %v443_v35 = vsel %vm4777_vm8, %v435_v59, %v442_v5  ;;  %v835_v49 = vld [vmem:[#allocation2 + $0x48] sm:$0xf]  ;;  %v5520_v55 = vld [vmem:[#allocation2 + $0x44] ss:$0 sps:$4 sm:$0x11]   ;;  %v1394_v5 = vsel %vm1355_vm9, %v1392_v13, %v1393_v25 }
  0xb9   : > { %694 = vst.msk [vmem:[#allocation2 + $0x58] sm:$0xf] %vm170_vm0, %v443_v35  ;;  %v567_v62 = vrot.slane %v565_v58, 7  ;;  %v573_v11 = vshrl.u32 %v321_v60, 16  ;;  %v1395_v23 = vrot.slane %v4132_v56, 1  ;;  %v1373_v30 = vsel %vm1355_vm9, %v1371_v57, %v1372_v4 }
  0xba   : > { %2434 = vrot.lane.b32.xlu0 %v2391_v15, %s4649_s9  ;;  %1299 = vrot.lane.b32.xlu1 %v1238_v61, %s4644_s4  ;;  %v849_v61 = vld [vmem:[#allocation2 + $0x9c] sm:$0xf]  ;;  %v1370_v15 = vsel %vm1355_vm9, %v1368_v8, %v1369_v41  ;;  %v1250_v34 = vsel %vm1082_vm10, %v1245_v24, %v1249_v52  ;;  %v1396_v39 = vrot.slane %v5452_v42, 1  ;;  %v1645_v38 = vshrl.u32 %v5496_v31, 16  ;;  %v851_v52 = vld [vmem:[#allocation2 + $0xa8] sm:$0xf] }
  0xbb   : > { %v5484_v32 = vpop.permute.xlu1 %1422  ;;  %v5493_v47 = vpop.permute.xlu0 %1291  ;;  %v5529_v8 = vcombine.low %v849_v61, %v5501_v12  ;;  %v570_v41 = vor.u32 %v568_v63, %v567_v62  ;;  %v1649_v13 = vrot.slane %v1647_v40, 1  ;;  %v5538_v59 = vld [vmem:[#allocation2 + $0xa4] ss:$0 sps:$4 sm:$0x11]   ;;  %v571_v54 = vrot.slane %v567_v62, 4 }
  0xbc   : > { %v576_v24 = vshll.u32 %v321_v60, 16  ;;  %v5540_v7 = vld [vmem:[#allocation2 + $0xac] sm:$0xf]  ;;  %v1652_v42 = vshll.u32 %v5520_v55, 16  ;;  %v259_v57 = vld [vmem:[#allocation2 + $0x5c] sm:$0x1]  ;;  %v1397_v4 = vsel %vm1355_vm9, %v1395_v23, %v1396_v39 }
  0xbd   : > { %v1743_v61 = vshll.u32 %v5529_v8, 16  ;;  %v5551_v58 = vld [vmem:[#allocation2 + $0x50] ss:$0 sps:$4 sm:$0x11]   ;;  %v1650_v62 = vor.u32 %v1649_v13, %v1645_v38  ;;  %v1741_v23 = vshrl.u32 %v5529_v8, 16  ;;  %vm2460_vm12 = vcmask 31744  }
  0xbe   : > { %1285 = vrot.lane.b32.xlu0 %v1154_v14, %s4644_s4  ;;  %2450 = vrot.lane.b32.xlu1 %v2415_v28, %s4649_s9  ;;  %v4140_v28 = vcombine.low %v835_v49, %v5516_v26  ;;  %v5535_v14 = vrot.slane %v573_v11, 7  ;;  %v747_v25 = vld [vmem:[#allocation2 + $0xb4] sm:$0xf]  ;;  %v877_v49 = vld [vmem:[#allocation2 + $0x3c] sm:$0xe]  ;;  %v260_v11 = vsel %vm4732_vm5, 0, %v259_v57 }
  0xbf   : > { %v5507_v21 = vpop.permute.xlu1 %1277  ;;  %v5526_v20 = vpop.permute.xlu0 %1788  ;;  %v748_v46 = vsel %vm4768_vm7, %v570_v41, %v747_v25  ;;  %v1748_v41 = vshll.u32 %v5538_v59, 16  ;;  %261 = vst [vmem:[#allocation2 + $0x5c] sm:$0x1] %v260_v11  ;;  %v1745_v39 = vrot.slane %v1743_v61, 1  ;;  %vm2493_vm13 = vcmask 64512  }
  0xc0   : > { %v578_v35 = vor.u32 %v576_v24, %v5535_v14  ;;  %v1659_v60 = vshll.u32 %v4140_v28, 16  ;;  %749 = vst [vmem:[#allocation2 + $0xb4] sm:$0xf] %v748_v46  ;;  %v1657_v38 = vshrl.u32 %v4140_v28, 16  ;;  %v4171_v24 = vcombine.low %v877_v49, %v5481_v6  ;;  %v5582_v57 = vld [vmem:[#allocation2 + $0x4c] sm:$0xf] }
  0xc1   : > { %v5576_v25 = vld [vmem:[#allocation2 + $0xb0] ss:$0 sps:$4 sm:$0x11]   ;;  %vm2526_vm14 = vcmask 97280   ;;  %v1750_v46 = vrot.slane %v1748_v41, 1  ;;  %v444_v6 = vrot.slane %v5459_v9, 4 }
  0xc2   : > { %1412 = vrot.lane.b32.xlu0 %v1370_v15, %s4642_s29  ;;  %1301 = vrot.lane.b32.xlu1 %v1250_v34, %s4644_s4  ;;  %v283_v15 = vld [vmem:[#allocation2 + $0xbc] sm:$0x1]  ;;  %v5557_v34 = vcombine.low %v851_v52, %v5540_v7  ;;  %v579_v40 = vsel %vm4777_vm8, %v571_v54, %v578_v35  ;;  %v1661_v13 = vrot.slane %v1659_v60, 1  ;;  %v1664_v54 = vshll.u32 %v5551_v58, 16  ;;  %v885_v35 = vld [vmem:[#allocation2 + $0x9c] sm:$0xe] }
  0xc3   : > { %v5522_v27 = vpop.permute.xlu1 %1293  ;;  %750 = vst.msk [vmem:[#allocation2 + $0xb8] sm:$0xf] %vm170_vm0, %v579_v40  ;;  %v878_v60 = vld [vmem:[#allocation2 + $0x48] sm:$0xe]  ;;  %v580_v11 = vrot.slane %v5535_v14, 4  ;;  %v1880_v41 = vrot.slane %v4171_v24, 1  ;;  %v4179_v9 = vcombine.low %v885_v35, %v5501_v12  ;;  %v2462_v12 = vsel %vm2460_vm12, %v4815_v29, %v5424_v33 }
  0xc4   : > { %v1755_v52 = vshll.u32 %v5557_v34, 16  ;;  %v1666_v40 = vrot.slane %v1664_v54, 1  ;;  %v898_v49 = vld [vmem:[#allocation2 + $0x48] sm:$0xf]  ;;  %v1881_v14 = vrot.slane %v5520_v55, 1  ;;  %v2478_v29 = vsel %vm2460_vm12, %v4883_v51, %v5493_v47 }
  0xc5   : > { %vm2559_vm15 = vcmask 130048   ;;  %vm2592_vm1 = vcmask 162816   ;;  %v1884_v47 = vrot.slane %v5551_v58, 1  ;;  %vm2625_vm2 = vcmask 195584   ;;  %v789_v58 = vld [vmem:[#allocation2 + $0xa8] sm:$0xf] }
  0xc6   : > { %1414 = vrot.lane.b32.xlu0 %v1373_v30, %s4642_s29  ;;  %1428 = vrot.lane.b32.xlu1 %v1394_v5, %s4642_s29  ;;  %v1654_v5 = vrot.slane %v1652_v42, 1  ;;  %v284_v30 = vsel %vm4732_vm5, 0, %v283_v15  ;;  %v1746_v15 = vor.u32 %v1745_v39, %v1741_v23  ;;  %v5595_v23 = vld [vmem:[#allocation2 + $0xac] sm:$0xf]  ;;  %v695_v39 = vld [vmem:[#allocation2 + $0x5c] sm:$0x1]  ;;  %v1882_v51 = vsel %vm1355_vm9, %v1880_v41, %v1881_v14 }
  0xc7   : > { %v5549_v56 = vpop.permute.xlu1 %1804  ;;  %285 = vst [vmem:[#allocation2 + $0xbc] sm:$0x1] %v284_v30  ;;  %v886_v30 = vld [vmem:[#allocation2 + $0xa8] sm:$0xe]  ;;  %v696_v54 = vsel %vm4724_vm3, %v444_v6, %v695_v39  ;;  %v5647_v39 = vld [vmem:[#allocation2 + $0x4c] sm:$0xf]  ;;  %v2480_v14 = vsel %vm2460_vm12, %v4867_v18, %v5522_v27 }
  0xc8   : > { %v5554_v63 = vpop.permute.xlu0 %1790  ;;  %v1655_v61 = vsel %vm1082_vm10, %v1650_v62, %v1654_v5  ;;  %v1757_v62 = vrot.slane %v1755_v52, 1  ;;  %v1760_v5 = vshll.u32 %v5576_v25, 16  ;;  %v4180_v52 = vcombine.low %v886_v30, %v5540_v7  ;;  %697 = vst [vmem:[#allocation2 + $0x5c] sm:$0x1] %v696_v54  ;;  %v900_v30 = vld [vmem:[#allocation2 + $0x54] sm:$0xf] }
  0xc9   : > { %v1751_v35 = vsel %vm1082_vm10, %v1746_v15, %v1750_v46  ;;  %v1904_v7 = vrot.slane %v4179_v9, 1  ;;  %v2495_v46 = vsel %vm2493_vm13, %v2462_v12, %v5306_v10  ;;  %v2511_v10 = vsel %vm2493_vm13, %v2478_v29, %v5465_v19  ;;  %v773_v41 = vld [vmem:[#allocation2 + $0x48] sm:$0xf] }
  0xca   : > { %1524 = vrot.lane.b32.xlu0 %v5496_v31, %s4643_s30  ;;  %1430 = vrot.lane.b32.xlu1 %v1397_v4, %s4642_s29  ;;  %v1662_v4 = vor.u32 %v1661_v13, %v1657_v38  ;;  %v4172_v38 = vcombine.low %v878_v60, %v5516_v26  ;;  %v5601_v13 = vcombine.low %v898_v49, %v5582_v57  ;;  %v1762_v60 = vrot.slane %v1760_v5, 1 }
  0xcb   : > { %v2464_v19 = vsel %vm2460_vm12, %v4861_v16, %v5507_v21  ;;  %v2528_v54 = vsel %vm2526_vm14, %v2495_v46, %v5347_v17  ;;  %vm2658_vm4 = vcmask 228352   ;;  %vm2691_vm6 = vcmask 261120   ;;  %v5674_v21 = vld [vmem:[#allocation2 + $0xb0] ss:$0 sps:$4 sm:$0x11]  }
  0xcc   : > { %v5573_v31 = vpop.permute.xlu0 %1916  ;;  %v5578_v42 = vpop.permute.xlu1 %1806  ;;  %v1667_v26 = vsel %vm1082_vm10, %v1662_v4, %v1666_v40  ;;  %v1883_v15 = vrot.slane %v4172_v38, 1  ;;  %v5629_v4 = vld [vmem:[#allocation2 + $0x48] sm:$0xe]  ;;  %v2159_v40 = vshll.u32 %v5601_v13, 16  ;;  %v5649_v38 = vld [vmem:[#allocation2 + $0xac] sm:$0xf]  ;;  %v2544_v27 = vsel %vm2526_vm14, %v2511_v10, %v5365_v48 }
  0xcd   : > { %v4219_v16 = vcombine.low %v5629_v4, %v5582_v57  ;;  %vm2751_vm11 = vcmask 293888   ;;  %v2497_v29 = vsel %vm2493_vm13, %v2464_v19, %v5470_v50  ;;  %v5694_v10 = vcombine.low %v773_v41, %v5647_v39 }
  0xce   : > { %1526 = vrot.lane.b32.xlu0 %v4140_v28, %s4643_s30  ;;  %1540 = vrot.lane.b32.xlu1 %v5529_v8, %s4643_s30  ;;  %v1753_v28 = vshrl.u32 %v5557_v34, 16  ;;  %v914_v8 = vld [vmem:[#allocation2 + $0xa8] sm:$0xf]  ;;  %v751_v24 = vld [vmem:[#allocation2 + $0xbc] sm:$0x1]  ;;  %v2260_v19 = vshll.u32 %v5674_v21, 16  ;;  %v2530_v41 = vsel %vm2526_vm14, %v2497_v29, %v5377_v44 }
  0xcf   : > { %v752_v55 = vsel %vm4724_vm3, %v580_v11, %v751_v24  ;;  %v5618_v49 = vcombine.low %v914_v8, %v5595_v23  ;;  %v5632_v11 = vld [vmem:[#allocation2 + $0xa8] sm:$0xe]  ;;  %v5645_v8 = vld [vmem:[#allocation2 + $0x50] ss:$0 sps:$4 sm:$0x11]   ;;  %v1158_v57 = vshll.u32 %v5694_v10, 16 }
  0xd0   : > { %v5588_v53 = vpop.permute.xlu0 %1918  ;;  %v5593_v0 = vpop.permute.xlu1 %1932  ;;  %v1758_v6 = vor.u32 %v1757_v62, %v1753_v28  ;;  %753 = vst [vmem:[#allocation2 + $0xbc] sm:$0x1] %v752_v55  ;;  %v5637_v28 = vld [vmem:[#allocation2 + $0x58] sm:$0xf]  ;;  %v1908_v55 = vrot.slane %v5576_v25, 1  ;;  %v2164_v46 = vshll.u32 %v5645_v8, 16 }
  0xd1   : > { %v2255_v9 = vshll.u32 %v5618_v49, 16  ;;  %v5672_v17 = vcombine.low %v900_v30, %v5637_v28  ;;  %v5680_v25 = vld [vmem:[#allocation2 + $0x54] sm:$0xe]  ;;  %v2253_v48 = vshrl.u32 %v5618_v49, 16  ;;  %v323_v29 = vld [vmem:[%s4752_s28 + $0x7c] sm:$0xf] }
  0xd2   : > { %1796 = vrot.lane.b32.xlu0 %v1655_v61, %s4645_s5  ;;  %1542 = vrot.lane.b32.xlu1 %v5557_v34, %s4643_s30  ;;  %v1905_v34 = vrot.slane %v5538_v59, 1  ;;  %v1907_v59 = vrot.slane %v4180_v52, 1  ;;  %v1763_v62 = vsel %vm1082_vm10, %v1758_v6, %v1762_v60  ;;  %v230_v52 = vld [vmem:[#allocation2 + $0xc0] sm:$0x1]  ;;  %v2157_v6 = vshrl.u32 %v5601_v13, 16 }
  0xd3   : > { %v2161_v60 = vrot.slane %v2159_v40, 1  ;;  %v2257_v30 = vrot.slane %v2255_v9, 1  ;;  %v5697_v40 = vcombine.low %v789_v58, %v5649_v38  ;;  %v231_v50 = vsel %vm4724_vm3, 0, %v230_v52 }
  0xd4   : > { %v5615_v61 = vpop.permute.xlu0 %2028  ;;  %v5623_v33 = vpop.permute.xlu1 %1934  ;;  %v1906_v12 = vsel %vm1355_vm9, %v1904_v7, %v1905_v34  ;;  %v2513_v7 = vsel %vm2493_vm13, %v2480_v14, %v5484_v32  ;;  %v2561_v32 = vsel %vm2559_vm15, %v2528_v54, %v5526_v20  ;;  %232 = vst [vmem:[#allocation2 + $0xc0] sm:$0x1] %v231_v50  ;;  %v1909_v20 = vsel %vm1355_vm9, %v1907_v59, %v1908_v55  ;;  %v5717_v54 = vld [vmem:[#allocation2 + $0x5c] ss:$0 sps:$4 sm:$0x11]  }
  0xd5   : > { %v5711_v58 = vsel %vm2526_vm14, %v2513_v7, %v5422_v37  ;;  %v2162_v50 = vor.u32 %v2161_v60, %v2157_v6  ;;  %v2166_v44 = vrot.slane %v2164_v46, 1  ;;  %v2577_v37 = vsel %vm2559_vm15, %v2544_v27, %v5549_v56  ;;  %v5741_v27 = vld [vmem:[#allocation2 + $0x50] ss:$0 sps:$4 sm:$0x11]  }
  0xd6   : > { %1798 = vrot.lane.b32.xlu0 %v1667_v26, %s4645_s5  ;;  %1812 = vrot.lane.b32.xlu1 %v1751_v35, %s4645_s5  ;;  %v5663_v26 = vld [vmem:[%s4752_s28 + $0x78] sm:$0xf]  ;;  %v1885_v35 = vsel %vm1355_vm9, %v1883_v15, %v1884_v47  ;;  %v916_v15 = vld [vmem:[#allocation2 + $0xb4] sm:$0xf]  ;;  %v2563_v59 = vsel %vm2559_vm15, %v2530_v41, %v5554_v63  ;;  %v5729_v55 = vor.u32 %v2257_v30, %v2253_v48  ;;  %v2169_v7 = vshrl.u32 %v5672_v17, 16  ;;  %s4084_s28 = sshll.u32 %s161_s27, 6 }
  0xd7   : > { %v5691_v47 = vld [vmem:[#allocation2 + $0xb8] sm:$0xf]  ;;  %v582_v9 = vshrl.u32 %v5663_v26, 16  ;;  %v2594_v14 = vsel %vm2592_vm1, %v2561_v32, %v5573_v31  ;;  %v2262_v6 = vrot.slane %v2260_v19, 1  ;;  %v585_v46 = vshll.u32 %v5663_v26, 16 }
  0xd8   : > { %v5642_v5 = vpop.permute.xlu0 %2030  ;;  %v5659_v24 = vpop.permute.xlu1 %2044  ;;  %v2627_v56 = vsel %vm2625_vm2, %v2594_v14, %v5615_v61  ;;  %v2176_v63 = vshll.u32 %v5717_v54, 16  ;;  %v590_v48 = vshrl.u32 %v323_v29, 16  ;;  %v2167_v32 = vsel %vm1082_vm10, %v2162_v50, %v2166_v44 }
  0xd9   : > { %v584_v18 = vrot.slane %v582_v9, 7  ;;  %v5754_v9 = vrot.slane %v4219_v16, 1  ;;  %v2393_v14 = vrot.slane %v5645_v8, 1  ;;  %v6495_v50 = vcombine.low %v5632_v11, %v5595_v23  ;;  %v5774_v8 = vld [vmem:[#allocation2 + $0x58] sm:$0xf] }
  0xda   : > { %1924 = vrot.lane.b32.xlu0 %v1882_v51, %s4646_s6  ;;  %1814 = vrot.lane.b32.xlu1 %v1763_v62, %s4645_s5  ;;  %v2171_v62 = vshll.u32 %v5672_v17, 16  ;;  %v2610_v16 = vsel %vm2592_vm1, %v2577_v37, %v5593_v0  ;;  %v286_v37 = vld [vmem:[#allocation2 + $0xc8] sm:$0x1] }
  0xdb   : > { %v587_v26 = vor.u32 %v585_v46, %v584_v18  ;;  %v588_v41 = vrot.slane %v584_v18, 4  ;;  %v5765_v44 = vrot.slane %v6495_v50, 1  ;;  %v2643_v11 = vsel %vm2625_vm2, %v2610_v16, %v5659_v24 }
  0xdc   : > { %v2301_v34 = vpop.permute.xlu0 %2300  ;;  %v5689_v51 = vpop.permute.xlu1 %2046  ;;  %v2173_v60 = vrot.slane %v2171_v62, 1  ;;  %v5746_v62 = vld [vmem:[#allocation2 + $0xbc] ss:$0 sps:$4 sm:$0x11]   ;;  %v2596_v24 = vsel %vm2592_vm1, %v2563_v59, %v5588_v53  ;;  %v287_v59 = vsel %vm4732_vm5, 0, %v286_v37  ;;  %v2579_v50 = vsel %vm2559_vm15, %v5711_v58, %v5578_v42 }
  0xdd   : > { %v2660_v31 = vsel %vm2658_vm4, %v2627_v56, %v2301_v34  ;;  %v754_v34 = vld [vmem:[#allocation2 + $0xc0] sm:$0xf]  ;;  %v2272_v0 = vshll.u32 %v5746_v62, 16  ;;  %288 = vst [vmem:[#allocation2 + $0xc8] sm:$0x1] %v287_v59  ;;  %v1252_v16 = vshrl.u32 %v5697_v40, 16 }
  0xde   : > { %1926 = vrot.lane.b32.xlu0 %v1885_v35, %s4646_s6  ;;  %1940 = vrot.lane.b32.xlu1 %v1906_v12, %s4646_s6  ;;  %v5722_v35 = vcombine.low %v916_v15, %v5691_v47  ;;  %v593_v15 = vshll.u32 %v323_v29, 16  ;;  %v755_v4 = vsel %vm4768_vm7, %v587_v26, %v754_v34  ;;  %v2174_v18 = vor.u32 %v2173_v60, %v2169_v7  ;;  %v775_v29 = vld [vmem:[#allocation2 + $0x54] sm:$0xf]  ;;  %v233_v34 = vld [vmem:[#allocation2 + $0xcc] sm:$0x1] }
  0xdf   : > { %756 = vst [vmem:[#allocation2 + $0xc0] sm:$0xf] %v755_v4  ;;  %v1156_v60 = vshrl.u32 %v5694_v10, 16  ;;  %v5803_v53 = vcombine.low %v775_v29, %v5774_v8  ;;  %v5809_v26 = vld [vmem:[#allocation2 + $0xb4] sm:$0xe]  ;;  %v2420_v1 = vrot.slane %v5746_v62, 1 }
  0xe0   : > { %v5719_v52 = vpop.permute.xlu0 %2302  ;;  %v2317_v12 = vpop.permute.xlu1 %2316  ;;  %v2265_v36 = vshrl.u32 %v5722_v35, 16  ;;  %v289_v58 = vld [vmem:[#allocation2 + $0xd4] sm:$0x1]  ;;  %v5866_v59 = vld [vmem:[#allocation2 + $0xbc] ss:$0 sps:$4 sm:$0x11]  }
  0xe1   : > { %vm3931_vm7 = vcmask 1044484  }
  0xe2   : > { %2036 = vrot.lane.b32.xlu0 %v5601_v13, %s4647_s7  ;;  %1942 = vrot.lane.b32.xlu1 %v1909_v20, %s4646_s6  ;;  %v2267_v13 = vshll.u32 %v5722_v35, 16  ;;  %v5756_v20 = vrot.slane %v590_v48, 7 }
  0xe4   : > { %v2429_v30 = vpop.permute.xlu0 %2428  ;;  %v5748_v19 = vpop.permute.xlu1 %2318  ;;  %v595_v23 = vor.u32 %v593_v15, %v5756_v20  ;;  %v2269_v56 = vrot.slane %v2267_v13, 1  ;;  %v2629_v13 = vsel %vm2625_vm2, %v2596_v24, %v5642_v5  ;;  %v2263_v5 = vsel %vm1082_vm10, %v5729_v55, %v2262_v6 }
  0xe5   : > { %v2693_v61 = vsel %vm2691_vm6, %v2660_v31, %v2429_v30  ;;  %v1160_v31 = vrot.slane %v1158_v57, 1  ;;  %v5792_v30 = vld [vmem:[#allocation2 + $0xb0] ss:$0 sps:$4 sm:$0x11]  }
  0xe6   : > { %2038 = vrot.lane.b32.xlu0 %v5672_v17, %s4647_s7  ;;  %4347 = vmatprep.mubr.msk.bf16.mxu0 %vm2751_vm11, %v2693_v61  ;;  %v2178_v17 = vrot.slane %v2176_v63, 1  ;;  %v1163_v63 = vshll.u32 %v5741_v27, 16  ;;  %v596_v48 = vsel %vm4777_vm8, %v588_v41, %v595_v23  ;;  %v2274_v41 = vrot.slane %v2272_v0, 1 }
  0xe7   : > { %2052 = vrot.lane.b32.xlu1 %v5618_v49, %s4647_s7  ;;  %v2676_v49 = vsel %vm2658_vm4, %v2643_v11, %v2317_v12  ;;  %v1254_v12 = vshll.u32 %v5697_v40, 16  ;;  %757 = vst.msk [vmem:[#allocation2 + $0xc4] sm:$0xf] %vm170_vm0, %v596_v48  ;;  %v1161_v55 = vor.u32 %v1160_v31, %v1156_v60  ;;  %v1259_v42 = vshll.u32 %v5792_v30, 16 }
  0xe8   : > { %v5779_v46 = vpop.permute.xlu0 %1279  ;;  %v2445_v7 = vpop.permute.xlu1 %2444  ;;  %v2179_v43 = vsel %vm1082_vm10, %v2174_v18, %v2178_v17  ;;  %v791_v18 = vld [vmem:[#allocation2 + $0xb4] sm:$0xf]  ;;  %v5821_v17 = vld [vmem:[#allocation2 + $0xb8] sm:$0xf]  ;;  %v1165_v6 = vrot.slane %v1163_v63, 1  ;;  %v2612_v23 = vsel %vm2592_vm1, %v2579_v50, %v5623_v33  ;;  %v290_v48 = vsel %vm4732_vm5, 0, %v289_v58 }
  0xe9   : > { %v2709_v15 = vsel %vm2691_vm6, %v2676_v49, %v2445_v7  ;;  %v1256_v29 = vrot.slane %v1254_v12, 1  ;;  %v5831_v11 = vld [vmem:[#allocation2 + $0x5c] ss:$0 sps:$4 sm:$0x11]   ;;  %v2645_v0 = vsel %vm2625_vm2, %v2612_v23, %v5689_v51  ;;  %v5842_v33 = vcombine.low %v791_v18, %v5821_v17  ;;  %291 = vst [vmem:[#allocation2 + $0xd4] sm:$0x1] %v290_v48 }
  0xea   : > { %2308 = vrot.lane.b32.xlu0 %v2167_v32, %s4648_s8  ;;  %4363 = vmatprep.mubr.msk.bf16.mxu1 %vm2751_vm11, %v2709_v15  ;;  %v2662_v32 = vsel %vm2658_vm4, %v2629_v13, %v5719_v52  ;;  %v2417_v52 = vrot.slane %v5674_v21, 1  ;;  %v2394_v21 = vsel %vm1355_vm9, %v5754_v9, %v2393_v14  ;;  %v597_v7 = vrot.slane %v5756_v20, 4  ;;  %v758_v12 = vld [vmem:[#allocation2 + $0xc8] sm:$0x1]  ;;  %v816_v18 = vld [vmem:[#allocation2 + $0x54] sm:$0xe] }
  0xeb   : > { %2054 = vrot.lane.b32.xlu1 %v5722_v35, %s4647_s7  ;;  %v2270_v35 = vor.u32 %v2269_v56, %v2265_v36  ;;  %v1170_v36 = vshll.u32 %v5803_v53, 16  ;;  %v234_v56 = vsel %vm4724_vm3, 0, %v233_v34  ;;  %v2678_v9 = vsel %vm2658_vm4, %v2645_v0, %v5748_v19  ;;  %v815_v19 = vld [vmem:[#allocation2 + $0x48] sm:$0xe]  ;;  %v837_v58 = vld [vmem:[#allocation2 + $0x54] sm:$0xf] }
  0xec   : > { %v2431_v61 = vpop.permute.xlu0 %2430  ;;  %v5816_v57 = vpop.permute.xlu1 %1295  ;;  %235 = vst [vmem:[#allocation2 + $0xcc] sm:$0x1] %v234_v56  ;;  %v4228_v14 = vcombine.low %v5809_v26, %v5691_v47  ;;  %v6496_v51 = vcombine.low %v5680_v25, %v5637_v28  ;;  %v1166_v20 = vsel %vm1082_vm10, %v1161_v55, %v1165_v6  ;;  %v1257_v15 = vor.u32 %v1256_v29, %v1252_v16 }
  0xed   : > { %v2695_v4 = vsel %vm2691_vm6, %v2662_v32, %v2431_v61  ;;  %v2275_v37 = vsel %vm1082_vm10, %v2270_v35, %v2274_v41  ;;  %v1261_v31 = vrot.slane %v1259_v42, 1  ;;  %v2396_v28 = vrot.slane %v5717_v54, 1 }
  0xee   : > { %2310 = vrot.lane.b32.xlu0 %v2179_v43, %s4648_s8  ;;  %4348 = vmatmul.mubr.msk.bf16.vlgmr.msra.gmra.mxu0 %vm2751_vm11, %v2695_v4  ;;  %v2395_v63 = vrot.slane %v6496_v51, 1  ;;  %v1168_v25 = vshrl.u32 %v5803_v53, 16  ;;  %v1172_v3 = vrot.slane %v1170_v36, 1  ;;  %v1175_v47 = vshll.u32 %v5831_v11, 16 }
  0xef   : > { %2324 = vrot.lane.b32.xlu1 %v2263_v5, %s4648_s8  ;;  %v2418_v13 = vsel %vm1355_vm9, %v5765_v44, %v2417_v52  ;;  %v1266_v32 = vshll.u32 %v5842_v33, 16  ;;  %v759_v26 = vsel %vm4724_vm3, %v597_v7, %v758_v12  ;;  %v1262_v54 = vsel %vm1082_vm10, %v1257_v15, %v1261_v31  ;;  %v5908_v15 = vld [vmem:[#allocation2 + $0x64] sm:$0xf] }
  0xf0   : > { %v5839_v49 = vpop.permute.xlu0 %1281  ;;  %v2447_v60 = vpop.permute.xlu1 %2446  ;;  %760 = vst [vmem:[#allocation2 + $0xc8] sm:$0x1] %v759_v26  ;;  %v4125_v61 = vcombine.low %v815_v19, %v5647_v39  ;;  %v2397_v44 = vsel %vm1355_vm9, %v2395_v63, %v2396_v28  ;;  %v2419_v35 = vrot.slane %v4228_v14, 1  ;;  %v1173_v41 = vor.u32 %v1172_v3, %v1168_v25  ;;  %v823_v39 = vld [vmem:[#allocation2 + $0xa8] sm:$0xe] }
  0xf1   : > { %v2711_v24 = vsel %vm2691_vm6, %v2678_v9, %v2447_v60  ;;  %v1177_v34 = vrot.slane %v1175_v47, 1  ;;  %v1264_v4 = vshrl.u32 %v5842_v33, 16  ;;  %v1268_v52 = vrot.slane %v1266_v32, 1  ;;  %v824_v9 = vld [vmem:[#allocation2 + $0xb4] sm:$0xe] }
  0xf2   : > { %2436 = vrot.lane.b32.xlu0 %v2394_v21, %s4649_s9  ;;  %4364 = vmatmul.mubr.msk.bf16.vlgmr.msra.gmra.mxu1 %vm2751_vm11, %v2711_v24  ;;  %v1271_v16 = vshll.u32 %v5866_v59, 16  ;;  %v1374_v29 = vrot.slane %v4125_v61, 1  ;;  %v1375_v42 = vrot.slane %v5741_v27, 1  ;;  %v4126_v62 = vcombine.low %v816_v18, %v5774_v8  ;;  %v853_v19 = vld [vmem:[#allocation2 + $0xb4] sm:$0xf] }
  0xf3   : > { %2326 = vrot.lane.b32.xlu1 %v2275_v37, %s4648_s8  ;;  %v1178_v6 = vsel %vm1082_vm10, %v1173_v41, %v1177_v34  ;;  %v2421_v23 = vsel %vm1355_vm9, %v2419_v35, %v2420_v1  ;;  %v1269_v36 = vor.u32 %v1268_v52, %v1264_v4  ;;  %v4133_v0 = vcombine.low %v823_v39, %v5649_v38  ;;  %v5894_v37 = vld [vmem:[#allocation2 + $0x58] sm:$0xf]  ;;  %v5927_v61 = vld [vmem:[#allocation2 + $0xc4] sm:$0xf] }
  0xf4   : > { %v5864_v43 = vpop.permute.xlu0 %1408  ;;  %v5871_v5 = vpop.permute.xlu1 %1297  ;;  %v1273_v56 = vrot.slane %v1271_v16, 1  ;;  %v1376_v27 = vsel %vm1355_vm9, %v1374_v29, %v1375_v42  ;;  %v1377_v8 = vrot.slane %v4126_v62, 1  ;;  %v1378_v14 = vrot.slane %v5831_v11, 1  ;;  %v5912_v28 = vld [vmem:[#allocation2 + $0xb8] sm:$0xf] }
  0xf5   : > { %v4141_v60 = vcombine.low %v837_v58, %v5894_v37  ;;  %v1398_v38 = vrot.slane %v4133_v0, 1  ;;  %v1399_v48 = vrot.slane %v5792_v30, 1  ;;  %v4134_v24 = vcombine.low %v824_v9, %v5821_v17  ;;  %v5915_v11 = vld [vmem:[#allocation2 + $0x5c] ss:$0 sps:$4 sm:$0x11]  }
  0xf6   : > { %1287 = vrot.lane.b32.xlu0 %v1166_v20, %s4644_s4  ;;  %v1274_v51 = vsel %vm1082_vm10, %v1269_v36, %v1273_v56  ;;  %v839_v20 = vld [vmem:[#allocation2 + $0x60] sm:$0xf]  ;;  %v1379_v25 = vsel %vm1355_vm9, %v1377_v8, %v1378_v14  ;;  %v4149_v32 = vcombine.low %v853_v19, %v5912_v28  ;;  %v5931_v35 = vld [vmem:[#allocation2 + $0xbc] ss:$0 sps:$4 sm:$0x11]   ;;  %vm3925_vm0 = vcmask 1041409  }
  0xf7   : > { %2452 = vrot.lane.b32.xlu1 %v2418_v13, %s4649_s9  ;;  %v4142_v30 = vcombine.low %v839_v20, %v5908_v15  ;;  %v1671_v3 = vshll.u32 %v4141_v60, 16  ;;  %v1400_v17 = vsel %vm1355_vm9, %v1398_v38, %v1399_v48  ;;  %v1401_v12 = vrot.slane %v4134_v24, 1  ;;  %v5934_v1 = vld [vmem:[#allocation2 + $0x68] ss:$0 sps:$4 sm:$0x11]  }
  0xf8   : > { %v5878_v50 = vpop.permute.xlu0 %1410  ;;  %v5883_v55 = vpop.permute.xlu1 %1424  ;;  %v1402_v13 = vrot.slane %v5866_v59, 1  ;;  %v1669_v41 = vshrl.u32 %v4141_v60, 16  ;;  %v1767_v18 = vshll.u32 %v4149_v32, 16  ;;  %v1772_v29 = vshll.u32 %v5931_v35, 16  ;;  %v879_v36 = vld [vmem:[#allocation2 + $0x54] sm:$0xe] }
  0xf9   : > { %v1673_v34 = vrot.slane %v1671_v3, 1  ;;  %v1683_v59 = vshll.u32 %v4142_v30, 16  ;;  %v1681_v62 = vshrl.u32 %v4142_v30, 16  ;;  %v1765_v0 = vshrl.u32 %v4149_v32, 16 }
  0xfa   : > { %2438 = vrot.lane.b32.xlu0 %v2397_v44, %s4649_s9  ;;  %v1676_v44 = vshll.u32 %v5915_v11, 16  ;;  %v1403_v4 = vsel %vm1355_vm9, %v1401_v12, %v1402_v13  ;;  %v1769_v9 = vrot.slane %v1767_v18, 1  ;;  %v1774_v38 = vrot.slane %v1772_v29, 1  ;;  %v880_v12 = vld [vmem:[#allocation2 + $0x60] sm:$0xe] }
  0xfb   : > { %1303 = vrot.lane.b32.xlu1 %v1262_v54, %s4644_s4  ;;  %v855_v54 = vld [vmem:[#allocation2 + $0xc0] sm:$0xf]  ;;  %v1674_v42 = vor.u32 %v1673_v34, %v1669_v41  ;;  %v1685_v58 = vrot.slane %v1683_v59, 1  ;;  %v1887_v41 = vrot.slane %v5915_v11, 1  ;;  %v4174_v34 = vcombine.low %v880_v12, %v5908_v15 }
  0xfc   : > { %v5891_v21 = vpop.permute.xlu0 %1520  ;;  %v5896_v7 = vpop.permute.xlu1 %1426  ;;  %v4150_v16 = vcombine.low %v855_v54, %v5927_v61  ;;  %v1770_v19 = vor.u32 %v1769_v9, %v1765_v0  ;;  %vm3927_vm3 = vcmask 1042434   ;;  %vm3929_vm5 = vcmask 1043459  }
  0xfd   : > { %v1686_v48 = vor.u32 %v1685_v58, %v1681_v62  ;;  %v888_v62 = vld [vmem:[#allocation2 + $0xc0] sm:$0xe]  ;;  %v1889_v15 = vrot.slane %v4174_v34, 1  ;;  %v1890_v58 = vrot.slane %v5934_v1, 1  ;;  %vm3933_vm8 = vcmask 1045509  }
  0xfe   : > { %1289 = vrot.lane.b32.xlu0 %v1178_v6, %s4644_s4  ;;  %v1678_v6 = vrot.slane %v1676_v44, 1  ;;  %v1779_v8 = vshll.u32 %v4150_v16, 16  ;;  %v1775_v59 = vsel %vm1082_vm10, %v1770_v19, %v1774_v38  ;;  %v5986_v38 = vld [vmem:[#allocation2 + $0xc4] sm:$0xf] }
  0xff   : > { %2454 = vrot.lane.b32.xlu1 %v2421_v23, %s4649_s9  ;;  %v1688_v23 = vshll.u32 %v5934_v1, 16 }
 0x100   : > { %v5904_v63 = vpop.permute.xlu0 %1522  ;;  %v5910_v31 = vpop.permute.xlu1 %1536  ;;  %v1781_v3 = vrot.slane %v1779_v8, 1  ;;  %v1911_v8 = vrot.slane %v5931_v35, 1 }
 0x101   : > { %v1690_v24 = vrot.slane %v1688_v23, 1  ;;  %v904_v23 = vld [vmem:[#allocation2 + $0x6c] sm:$0xf] }
 0x102   : > { %1416 = vrot.lane.b32.xlu0 %v1376_v27, %s4642_s29  ;;  %v5948_v27 = vld [vmem:[#allocation2 + $0xc8] ss:$0 sps:$4 sm:$0x11]  }
 0x103   : > { %1305 = vrot.lane.b32.xlu1 %v1274_v51, %s4644_s4  ;;  %v1679_v51 = vsel %vm1082_vm10, %v1674_v42, %v1678_v6  ;;  %v1691_v54 = vsel %vm1082_vm10, %v1686_v48, %v1690_v24  ;;  %v5990_v24 = vld [vmem:[#allocation2 + $0x68] ss:$0 sps:$4 sm:$0x11]   ;;  %v1914_v12 = vrot.slane %v5948_v27, 1  ;;  %s4321_s4 = sshll.u32 %s4694_s16, 10  ;;  %s6426_s16 = scalar_lea.sflag [#allocation4], %s161_s27 }
 0x104   : > { %v5921_v47 = vpop.permute.xlu0 %1792  ;;  %v5925_v26 = vpop.permute.xlu1 %1538  ;;  %v2188_v34 = vshll.u32 %v5990_v24, 16 }
 0x106   : > { %1418 = vrot.lane.b32.xlu0 %v1379_v25, %s4642_s29  ;;  %v1777_v25 = vshrl.u32 %v4150_v16, 16 }
 0x107   : > { %1432 = vrot.lane.b32.xlu1 %v1400_v17, %s4642_s29  ;;  %v1784_v17 = vshll.u32 %v5948_v27, 16 }
 0x108   : > { %v5937_v52 = vpop.permute.xlu0 %1794  ;;  %v5940_v39 = vpop.permute.xlu1 %1808  ;;  %v1782_v18 = vor.u32 %v1781_v3, %v1777_v25  ;;  %v1891_v25 = vsel %vm1355_vm9, %v1889_v15, %v1890_v58  ;;  %v2482_v58 = vsel %vm2460_vm12, %v5012_v45, %v5816_v57 }
 0x109   : > { %v1786_v6 = vrot.slane %v1784_v17, 1 }
 0x10a   : > { %1528 = vrot.lane.b32.xlu0 %v4141_v60, %s4643_s30  ;;  %v4173_v60 = vcombine.low %v879_v36, %v5894_v37  ;;  %v902_v37 = vld [vmem:[#allocation2 + $0x60] sm:$0xf]  ;;  %v5979_v36 = vld [vmem:[#allocation2 + $0x70] sm:$0xf] }
 0x10b   : > { %1434 = vrot.lane.b32.xlu1 %v1403_v4, %s4642_s29  ;;  %v1787_v0 = vsel %vm1082_vm10, %v1782_v18, %v1786_v6  ;;  %v4190_v19 = vcombine.low %v904_v23, %v5979_v36  ;;  %v6008_v18 = vld [vmem:[#allocation2 + $0x74] ss:$0 sps:$4 sm:$0x11]  }
 0x10c   : > { %v5946_v56 = vpop.permute.xlu0 %1920  ;;  %v5950_v14 = vpop.permute.xlu1 %1810  ;;  %v1886_v44 = vrot.slane %v4173_v60, 1  ;;  %v4182_v60 = vcombine.low %v888_v62, %v5927_v61 }
 0x10d   : > { %v2195_v6 = vshll.u32 %v4190_v19, 16 }
 0x10e   : > { %1530 = vrot.lane.b32.xlu0 %v4142_v30, %s4643_s30  ;;  %v887_v30 = vld [vmem:[#allocation2 + $0xb4] sm:$0xe]  ;;  %v1888_v11 = vsel %vm1355_vm9, %v1886_v44, %v1887_v41  ;;  %v1913_v17 = vrot.slane %v4182_v60, 1 }
 0x10f   : > { %1544 = vrot.lane.b32.xlu1 %v4149_v32, %s4643_s30  ;;  %v5962_v32 = vld [vmem:[#allocation2 + $0x64] sm:$0xf]  ;;  %v4181_v29 = vcombine.low %v887_v30, %v5912_v28  ;;  %v5999_v30 = vld [vmem:[#allocation2 + $0xd0] sm:$0xf]  ;;  %v2197_v60 = vrot.slane %v2195_v6, 1 }
 0x110   : > { %v5956_v20 = vpop.permute.xlu0 %1922  ;;  %v5959_v13 = vpop.permute.xlu1 %1936 }
 0x111   : > { %v1910_v9 = vrot.slane %v4181_v29, 1 }
 0x112   : > { %1800 = vrot.lane.b32.xlu0 %v1679_v51, %s4645_s5  ;;  %v918_v51 = vld [vmem:[#allocation2 + $0xc0] sm:$0xf] }
 0x113   : > { %1546 = vrot.lane.b32.xlu1 %v4150_v16, %s4643_s30  ;;  %v4189_v16 = vcombine.low %v902_v37, %v5962_v32  ;;  %v4197_v35 = vcombine.low %v918_v51, %v5986_v38  ;;  %v1912_v61 = vsel %vm1355_vm9, %v1910_v9, %v1911_v8  ;;  %v2190_v9 = vrot.slane %v2188_v34, 1  ;;  %s6249_s30 = scalar_lea.vmem [#allocation3], %s4084_s28 }
 0x114   : > { %v5969_v4 = vpop.permute.xlu0 %2032  ;;  %v5972_v42 = vpop.permute.xlu1 %1938  ;;  %v2193_v8 = vshrl.u32 %v4190_v19, 16  ;;  %v2200_v51 = vshll.u32 %v6008_v18, 16 }
 0x115   : > { %v2183_v1 = vshll.u32 %v4189_v16, 16  ;;  %v2181_v44 = vshrl.u32 %v4189_v16, 16  ;;  %v2279_v29 = vshll.u32 %v4197_v35, 16 }
 0x116   : > { %1802 = vrot.lane.b32.xlu0 %v1691_v54, %s4645_s5  ;;  %v920_v54 = vld [vmem:[#allocation2 + $0xcc] sm:$0xf]  ;;  %v2198_v6 = vor.u32 %v2197_v60, %v2193_v8 }
 0x117   : > { %1816 = vrot.lane.b32.xlu1 %v1775_v59, %s4645_s5  ;;  %v2185_v41 = vrot.slane %v2183_v1, 1  ;;  %v2466_v59 = vsel %vm2460_vm12, %v4985_v22, %v5779_v46  ;;  %v6019_v22 = vcombine.low %v920_v54, %v5999_v30  ;;  %v6021_v46 = vld [vmem:[#allocation2 + $0xc8] ss:$0 sps:$4 sm:$0x11]   ;;  %v944_v1 = vld [vmem:[#allocation2 + $0x60] sm:$0xe] }
 0x118   : > { %v5982_v28 = vpop.permute.xlu0 %2034  ;;  %v5988_v48 = vpop.permute.xlu1 %2048  ;;  %v2499_v27 = vsel %vm2493_vm13, %v2466_v59, %v5864_v43  ;;  %v2284_v54 = vshll.u32 %v6021_v46, 16  ;;  %v4221_v59 = vcombine.low %v944_v1, %v5962_v32 }
 0x119   : > { %v2532_v62 = vsel %vm2526_vm14, %v2499_v27, %v5891_v21  ;;  %v2202_v27 = vrot.slane %v2200_v51, 1  ;;  %v2289_v32 = vshrl.u32 %v6019_v22, 16  ;;  %v2399_v51 = vrot.slane %v5990_v24, 1 }
 0x11a   : > { %1928 = vrot.lane.b32.xlu0 %v1888_v11, %s4646_s6  ;;  %v1915_v11 = vsel %vm1355_vm9, %v1913_v17, %v1914_v12  ;;  %v2565_v43 = vsel %vm2559_vm15, %v2532_v62, %v5921_v47  ;;  %v2277_v47 = vshrl.u32 %v4197_v35, 16  ;;  %v6038_v17 = vld [vmem:[#allocation2 + $0xd4] ss:$0 sps:$4 sm:$0x11]   ;;  %v2398_v60 = vrot.slane %v4221_v59, 1 }
 0x11b   : > { %1818 = vrot.lane.b32.xlu1 %v1787_v0, %s4645_s5  ;;  %v2186_v0 = vor.u32 %v2185_v41, %v2181_v44  ;;  %v2598_v21 = vsel %vm2592_vm1, %v2565_v43, %v5946_v56  ;;  %v2515_v56 = vsel %vm2493_vm13, %v2482_v58, %v5883_v55  ;;  %v2291_v44 = vshll.u32 %v6019_v22, 16  ;;  %s4018_s5 = sshll.u32 %s6249_s30, 4  ;;  %s6419_s5 = int_to_ptr.vmem [resolvable:$true] %s4018_s5 }
 0x11c   : > { %v2305_v3 = vpop.permute.xlu0 %2304  ;;  %v6001_v37 = vpop.permute.xlu1 %2050  ;;  %v2631_v57 = vsel %vm2625_vm2, %v2598_v21, %v5969_v4  ;;  %v2296_v62 = vshll.u32 %v6038_v17, 16  ;;  %v2286_v58 = vrot.slane %v2284_v54, 1  ;;  %p4586_p0 = scmp.lt.s32.totalorder %s6419_s5, %s4584_s11 }
 0x11d   : > { %v2191_v34 = vsel %vm1082_vm10, %v2186_v0, %v2190_v9  ;;  %v2293_v43 = vrot.slane %v2291_v44, 1  ;;  %v945_v0 = vld [vmem:[#allocation2 + $0x6c] sm:$0xe]  ;;  %v2423_v44 = vrot.slane %v6021_v46, 1  ;;  %v2426_v46 = vrot.slane %v6038_v17, 1 }
 0x11e   : > { %1930 = vrot.lane.b32.xlu0 %v1891_v25, %s4646_s6  ;;  %v6497_v25 = vld [vmem:[#allocation6_spill] sm:$0xff] }
 0x11f   : > { %1944 = vrot.lane.b32.xlu1 %v1912_v61, %s4646_s6  ;;  %v2468_v45 = vsel %vm2460_vm12, %v6497_v25, %v5839_v49  ;;  %v2281_v61 = vrot.slane %v2279_v29, 1  ;;  %v2548_v49 = vsel %vm2526_vm14, %v2515_v56, %v5910_v31 }
 0x120   : > { %v6016_v15 = vpop.permute.xlu0 %2306  ;;  %v2321_v23 = vpop.permute.xlu1 %2320  ;;  %v2501_v55 = vsel %vm2493_vm13, %v2468_v45, %v5878_v50  ;;  %v952_v50 = vld [vmem:[#allocation2 + $0xc0] sm:$0xe] }
 0x121   : > { %v2282_v29 = vor.u32 %v2281_v61, %v2277_v47  ;;  %v4229_v1 = vcombine.low %v952_v50, %v5986_v38  ;;  %v953_v61 = vld [vmem:[#allocation2 + $0xcc] sm:$0xe] }
 0x122   : > { %2040 = vrot.lane.b32.xlu0 %v4189_v16, %s4647_s7  ;;  %v2664_v16 = vsel %vm2658_vm4, %v2631_v57, %v2305_v3  ;;  %v2581_v3 = vsel %vm2559_vm15, %v2548_v49, %v5940_v39  ;;  %v2534_v39 = vsel %vm2526_vm14, %v2501_v55, %v5904_v63  ;;  %v4230_v49 = vcombine.low %v953_v61, %v5999_v30  ;;  %v6500_v61 = vld [vmem:[#allocation9_spill] sm:$0xff] }
 0x123   : > { %1946 = vrot.lane.b32.xlu1 %v1915_v11, %s4646_s6  ;;  %v2614_v31 = vsel %vm2592_vm1, %v2581_v3, %v5959_v13  ;;  %v6498_v13 = vld [vmem:[#allocation7_spill] sm:$0xff]  ;;  %v2567_v9 = vsel %vm2559_vm15, %v2534_v39, %v5937_v52  ;;  %v2203_v52 = vsel %vm1082_vm10, %v2198_v6, %v2202_v27  ;;  %v2287_v38 = vsel %vm1082_vm10, %v2282_v29, %v2286_v58 }
 0x124   : > { %v2433_v12 = vpop.permute.xlu0 %2432  ;;  %v2323_v4 = vpop.permute.xlu1 %2322  ;;  %v2600_v63 = vsel %vm2592_vm1, %v2567_v9, %v5956_v20  ;;  %v4222_v20 = vcombine.low %v945_v0, %v5979_v36  ;;  %v2422_v56 = vrot.slane %v4229_v1, 1  ;;  %v2425_v55 = vrot.slane %v4230_v49, 1  ;;  %v6501_v49 = vld [vmem:[#allocation10_spill] sm:$0xff] }
 0x125   : > { %v2697_v41 = vsel %vm2691_vm6, %v2664_v16, %v2433_v12 }
 0x126   : > { %2042 = vrot.lane.b32.xlu0 %v4190_v19, %s4647_s7  ;;  %4351 = vmatprep.mubr.msk.bf16.mxu0 %vm2751_vm11, %v2697_v41  ;;  %v2647_v19 = vsel %vm2625_vm2, %v2614_v31, %v5988_v48  ;;  %v2401_v16 = vrot.slane %v4222_v20, 1 }
 0x127   : > { %2056 = vrot.lane.b32.xlu1 %v4197_v35, %s4647_s7  ;;  %v2484_v35 = vsel %vm2460_vm12, %v6498_v13, %v5871_v5  ;;  %v2680_v21 = vsel %vm2658_vm4, %v2647_v19, %v2321_v23  ;;  %v2633_v5 = vsel %vm2625_vm2, %v2600_v63, %v5982_v28  ;;  %v2298_v23 = vrot.slane %v2296_v62, 1  ;;  %v6499_v63 = vld [vmem:[#allocation8_spill] sm:$0xff] }
 0x128   : > { %v6065_v11 = vpop.permute.xlu0 %1283  ;;  %v2449_v8 = vpop.permute.xlu1 %2448  ;;  %v2517_v25 = vsel %vm2493_vm13, %v2484_v35, %v5896_v7  ;;  %v2666_v24 = vsel %vm2658_vm4, %v2633_v5, %v6016_v15  ;;  %v2294_v28 = vor.u32 %v2293_v43, %v2289_v32  ;;  %v2402_v7 = vrot.slane %v6008_v18, 1 }
 0x129   : > { %v2713_v48 = vsel %vm2691_vm6, %v2680_v21, %v2449_v8 }
 0x12a   : > { %2312 = vrot.lane.b32.xlu0 %v2191_v34, %s4648_s8  ;;  %4367 = vmatprep.mubr.msk.bf16.mxu1 %vm2751_vm11, %v2713_v48  ;;  %v2424_v34 = vsel %vm1355_vm9, %v2422_v56, %v2423_v44  ;;  %v2470_v48 = vsel %vm2460_vm12, %v6499_v63, %v6065_v11 }
 0x12b   : > { %2058 = vrot.lane.b32.xlu1 %v6019_v22, %s4647_s7  ;;  %v2550_v22 = vsel %vm2526_vm14, %v2517_v25, %v5925_v26  ;;  %v2400_v26 = vsel %vm1355_vm9, %v2398_v60, %v2399_v51 }
 0x12c   : > { %v2435_v45 = vpop.permute.xlu0 %2434  ;;  %v1300_v57 = vpop.permute.xlu1 %1299  ;;  %v2583_v36 = vsel %vm2559_vm15, %v2550_v22, %v5950_v14  ;;  %v2299_v14 = vsel %vm1082_vm10, %v2294_v28, %v2298_v23  ;;  %vm3937_vm10 = vcmask 1047559  }
 0x12d   : > { %v2699_v47 = vsel %vm2691_vm6, %v2666_v24, %v2435_v45  ;;  %v2616_v15 = vsel %vm2592_vm1, %v2583_v36, %v5972_v42  ;;  %v2486_v25 = vsel %vm2460_vm12, %v5311_v2, %v1300_v57 }
 0x12e   : > { %2314 = vrot.lane.b32.xlu0 %v2203_v52, %s4648_s8  ;;  %4352 = vmatmul.mubr.msk.bf16.gmra.mxu0 %vm2751_vm11, %v2699_v47  ;;  %v2649_v12 = vsel %vm2625_vm2, %v2616_v15, %v6001_v37  ;;  %v2403_v37 = vsel %vm1355_vm9, %v2401_v16, %v2402_v7 }
 0x12f   : > { %2328 = vrot.lane.b32.xlu1 %v2287_v38, %s4648_s8  ;;  %v2682_v18 = vsel %vm2658_vm4, %v2649_v12, %v2323_v4  ;;  %v2427_v4 = vsel %vm1355_vm9, %v2425_v55, %v2426_v46  ;;  %vm3935_vm9 = vcmask 1046534  }
 0x130   : > { %v1286_v54 = vpop.permute.xlu0 %1285  ;;  %v2451_v41 = vpop.permute.xlu1 %2450 }
 0x131   : > { %v2715_v42 = vsel %vm2691_vm6, %v2682_v18, %v2451_v41  ;;  %v2472_v36 = vsel %vm2460_vm12, %v6500_v61, %v1286_v54 }
 0x132   : > { %2440 = vrot.lane.b32.xlu0 %v2400_v26, %s4649_s9  ;;  %4368 = vmatmul.mubr.msk.bf16.gmra.mxu1 %vm2751_vm11, %v2715_v42 }
 0x133   : > { %2330 = vrot.lane.b32.xlu1 %v2299_v14, %s4648_s8  ;;  %s6416_s8 = scalar_lea.hbm %s6470_s3, %s4321_s4 }
 0x134   : > { %v1413_v59 = vpop.permute.xlu0 %1412  ;;  %v1302_v30 = vpop.permute.xlu1 %1301 }
 0x135   : > { %v2503_v51 = vsel %vm2493_vm13, %v2470_v48, %v1413_v59  ;;  %v2488_v18 = vsel %vm2460_vm12, %v6501_v49, %v1302_v30 }
 0x136   : > { %2442 = vrot.lane.b32.xlu0 %v2403_v37, %s4649_s9 }
 0x137   : > { %2456 = vrot.lane.b32.xlu1 %v2424_v34, %s4649_s9 }
 0x138   : > { %v1415_v3 = vpop.permute.xlu0 %1414  ;;  %v1429_v6 = vpop.permute.xlu1 %1428 }
 0x139   : > { %v2519_v38 = vsel %vm2493_vm13, %v2486_v25, %v1429_v6  ;;  %v2505_v2 = vsel %vm2493_vm13, %v2472_v36, %v1415_v3 }
 0x13b   : > { %2458 = vrot.lane.b32.xlu1 %v2427_v4, %s4649_s9  ;;  %s4579_s9 = scalar_lea.vmem %s6419_s5, 1024 }
 0x13c   : > { %v1525_v27 = vpop.permute.xlu0 %1524  ;;  %v1431_v31 = vpop.permute.xlu1 %1430  ;;  %p4580_p11 = scmp.ne.s32.totalorder %s6419_s5, %s4579_s9  ;;  %p4587_p1 = scmp.lt.s32.totalorder %s4585_s17, %s4579_s9 }
 0x13d   : > { %v2536_v1 = vsel %vm2526_vm14, %v2503_v51, %v1525_v27  ;;  %v2521_v42 = vsel %vm2493_vm13, %v2488_v18, %v1431_v31 }
 0x13e   : > { %p4581_p12 = pnand %p4580_p11, %p4711_p5  ;;  %p4588_p2 = por %p4587_p1, %p4586_p0 }
 0x140   : > { %v1527_v29 = vpop.permute.xlu0 %1526  ;;  %v1541_v32 = vpop.permute.xlu1 %1540  ;;  %p4582_p13 = pneg %p4581_p12 }
 0x141   : > { %v2552_v28 = vsel %vm2526_vm14, %v2519_v38, %v1541_v32  ;;  %v2538_v15 = vsel %vm2526_vm14, %v2505_v2, %v1527_v29 }
 0x142   : > { %p4589_p3 = pnand %p4588_p2, %p4582_p13 }
 0x144   : > { %v1797_v62 = vpop.permute.xlu0 %1796  ;;  %v1543_v50 = vpop.permute.xlu1 %1542 }
 0x145   : > { %v2569_v52 = vsel %vm2559_vm15, %v2536_v1, %v1797_v62  ;;  %v2554_v59 = vsel %vm2526_vm14, %v2521_v42, %v1543_v50 }
 0x148   : > { %v1799_v39 = vpop.permute.xlu0 %1798  ;;  %v1813_v19 = vpop.permute.xlu1 %1812 }
 0x149   : > { %v2585_v7 = vsel %vm2559_vm15, %v2552_v28, %v1813_v19  ;;  %v2571_v16 = vsel %vm2559_vm15, %v2538_v15, %v1799_v39 }
 0x14c   : > { %v1925_v17 = vpop.permute.xlu0 %1924  ;;  %v1815_v58 = vpop.permute.xlu1 %1814 }
 0x14d   : > { %v2602_v20 = vsel %vm2592_vm1, %v2569_v52, %v1925_v17  ;;  %v2587_v4 = vsel %vm2559_vm15, %v2554_v59, %v1815_v58 }
 0x150   : > { %v1927_v43 = vpop.permute.xlu0 %1926  ;;  %v1941_v0 = vpop.permute.xlu1 %1940 }
 0x151   : > { %v2618_v57 = vsel %vm2592_vm1, %v2585_v7, %v1941_v0  ;;  %v2604_v54 = vsel %vm2592_vm1, %v2571_v16, %v1927_v43 }
 0x154   : > { %v2037_v13 = vpop.permute.xlu0 %2036  ;;  %v1943_v35 = vpop.permute.xlu1 %1942 }
 0x155   : > { %v2635_v24 = vsel %vm2625_vm2, %v2602_v20, %v2037_v13  ;;  %v2620_v30 = vsel %vm2592_vm1, %v2587_v4, %v1943_v35  ;;  %v4650_v4 = vmov 1983009808  }
 0x158   : > { %v2039_v9 = vpop.permute.xlu0 %2038 }
 0x159   : > { %v2053_v21 = vpop.permute.xlu1 %2052  ;;  %v2637_v41 = vsel %vm2625_vm2, %v2604_v54, %v2039_v9 }
 0x15a   : > { %v2651_v26 = vsel %vm2625_vm2, %v2618_v57, %v2053_v21 }
 0x15c   : > { %v2309_v8 = vpop.permute.xlu0 %2308 }
 0x15d   : > { %v2055_v60 = vpop.permute.xlu1 %2054  ;;  %v2668_v45 = vsel %vm2658_vm4, %v2635_v24, %v2309_v8 }
 0x15e   : > { %v2653_v3 = vsel %vm2625_vm2, %v2620_v30, %v2055_v60  ;;  %v3015_v30 = vunpack.c.l.s4 %v4650_v4 }
 0x160   : > { %v2311_v5 = vpop.permute.xlu0 %2310 }
 0x161   : > { %v2325_v23 = vpop.permute.xlu1 %2324  ;;  %v2670_v37 = vsel %vm2658_vm4, %v2637_v41, %v2311_v5 }
 0x162   : > { %v2684_v12 = vsel %vm2658_vm4, %v2651_v26, %v2325_v23 }
 0x164   : > { %v2437_v11 = vpop.permute.xlu0 %2436 }
 0x165   : > { %v2327_v22 = vpop.permute.xlu1 %2326  ;;  %v2701_v47 = vsel %vm2691_vm6, %v2668_v45, %v2437_v11 }
 0x166   : > { %4355 = vmatprep.mubr.msk.bf16.mxu0 %vm2751_vm11, %v2701_v47  ;;  %v2686_v27 = vsel %vm2658_vm4, %v2653_v3, %v2327_v22  ;;  %v3017_v3 = vlaneseq }
 0x168   : > { %v1288_v56 = vpop.permute.xlu0 %1287 }
 0x169   : > { %v2453_v14 = vpop.permute.xlu1 %2452  ;;  %v2474_v20 = vsel %vm2460_vm12, %v5694_v10, %v1288_v56 }
 0x16a   : > { %v2717_v44 = vsel %vm2691_vm6, %v2684_v12, %v2453_v14 }
 0x16b   : > { %4371 = vmatprep.mubr.msk.bf16.mxu1 %vm2751_vm11, %v2717_v44 }
 0x16c   : > { %v2439_v34 = vpop.permute.xlu0 %2438 }
 0x16d   : > { %v1304_v55 = vpop.permute.xlu1 %1303  ;;  %v2703_v46 = vsel %vm2691_vm6, %v2670_v37, %v2439_v34 }
 0x16e   : > { %4356 = vmatmul.mubr.msk.bf16.gmra.mxu0 %vm2751_vm11, %v2703_v46  ;;  %v2490_v47 = vsel %vm2460_vm12, %v5697_v40, %v1304_v55 }
 0x170   : > { %v1290_v6 = vpop.permute.xlu0 %1289 }
 0x171   : > { %v2455_v31 = vpop.permute.xlu1 %2454  ;;  %v2476_v28 = vsel %vm2460_vm12, %v5803_v53, %v1290_v6 }
 0x172   : > { %v2719_v29 = vsel %vm2691_vm6, %v2686_v27, %v2455_v31  ;;  %v6201_v27 = vld [vmem:[%s6469_s2] ss:$0 sm:$0xff] }
 0x173   : > { %4372 = vmatmul.mubr.msk.bf16.gmra.mxu1 %vm2751_vm11, %v2719_v29 }
 0x174   : > { %v1417_v32 = vpop.permute.xlu0 %1416 }
 0x175   : > { %v1306_v62 = vpop.permute.xlu1 %1305  ;;  %v2507_v25 = vsel %vm2493_vm13, %v2474_v20, %v1417_v32 }
 0x176   : > { %v2492_v12 = vsel %vm2460_vm12, %v5842_v33, %v1306_v62 }
 0x178   : > { %v1419_v50 = vpop.permute.xlu0 %1418 }
 0x179   : > { %v1433_v39 = vpop.permute.xlu1 %1432  ;;  %v2509_v61 = vsel %vm2493_vm13, %v2476_v28, %v1419_v50 }
 0x17a   : > { %v2523_v36 = vsel %vm2493_vm13, %v2490_v47, %v1433_v39  ;;  %v3016_v39 = vunpack.c.0.s8 %v3015_v30 }
 0x17c   : > { %v1529_v19 = vpop.permute.xlu0 %1528 }
 0x17d   : > { %v1435_v17 = vpop.permute.xlu1 %1434  ;;  %v2540_v24 = vsel %vm2526_vm14, %v2507_v25, %v1529_v19  ;;  %v3018_v19 = vshrl.u32 %v3017_v3, 7 }
 0x17e   : > { %v2525_v44 = vsel %vm2493_vm13, %v2492_v12, %v1435_v17 }
 0x180   : > { %v1531_v58 = vpop.permute.xlu0 %1530 }
 0x181   : > { %v1545_v43 = vpop.permute.xlu1 %1544  ;;  %v2542_v7 = vsel %vm2526_vm14, %v2509_v61, %v1531_v58 }
 0x182   : > { %v2556_v15 = vsel %vm2526_vm14, %v2523_v36, %v1545_v43 }
 0x184   : > { %v1801_v0 = vpop.permute.xlu0 %1800 }
 0x185   : > { %v1547_v13 = vpop.permute.xlu1 %1546  ;;  %v2573_v45 = vsel %vm2559_vm15, %v2540_v24, %v1801_v0  ;;  %v6215_v24 = vsub.s32 0, %v3018_v19 }
 0x186   : > { %v2558_v42 = vsel %vm2526_vm14, %v2525_v44, %v1547_v13 }
 0x188   : > { %v1803_v35 = vpop.permute.xlu0 %1802 }
 0x189   : > { %v1817_v9 = vpop.permute.xlu1 %1816  ;;  %v2575_v53 = vsel %vm2559_vm15, %v2542_v7, %v1803_v35 }
 0x18a   : > { %v2589_v40 = vsel %vm2559_vm15, %v2556_v15, %v1817_v9  ;;  %v6208_v9 = vsub.s32 %v3016_v39, %v3018_v19 }
 0x18c   : > { %v1929_v21 = vpop.permute.xlu0 %1928 }
 0x18d   : > { %v1819_v8 = vpop.permute.xlu1 %1818  ;;  %v2606_v22 = vsel %vm2592_vm1, %v2573_v45, %v1929_v21 }
 0x18e   : > { %v2591_v33 = vsel %vm2559_vm15, %v2558_v42, %v1819_v8 }
 0x190   : > { %v1931_v60 = vpop.permute.xlu0 %1930 }
 0x191   : > { %v1945_v63 = vpop.permute.xlu1 %1944  ;;  %v2608_v16 = vsel %vm2592_vm1, %v2575_v53, %v1931_v60 }
 0x192   : > { %v2622_v14 = vsel %vm2592_vm1, %v2589_v40, %v1945_v63 }
 0x194   : > { %v2041_v48 = vpop.permute.xlu0 %2040 }
 0x195   : > { %v1947_v51 = vpop.permute.xlu1 %1946  ;;  %v2639_v10 = vsel %vm2625_vm2, %v2606_v22, %v2041_v48 }
 0x196   : > { %v2624_v46 = vsel %vm2592_vm1, %v2591_v33, %v1947_v51 }
 0x198   : > { %v2043_v1 = vpop.permute.xlu0 %2042 }
 0x199   : > { %v2057_v5 = vpop.permute.xlu1 %2056  ;;  %v2641_v54 = vsel %vm2625_vm2, %v2608_v16, %v2043_v1 }
 0x19a   : > { %v2655_v49 = vsel %vm2625_vm2, %v2622_v14, %v2057_v5 }
 0x19c   : > { %v2313_v52 = vpop.permute.xlu0 %2312 }
 0x19d   : > { %v2059_v23 = vpop.permute.xlu1 %2058  ;;  %v2672_v2 = vsel %vm2658_vm4, %v2639_v10, %v2313_v52 }
 0x19e   : > { %v2657_v6 = vsel %vm2625_vm2, %v2624_v46, %v2059_v23 }
 0x1a0   : > { %v2315_v38 = vpop.permute.xlu0 %2314 }
 0x1a1   : > { %v2329_v11 = vpop.permute.xlu1 %2328  ;;  %v2674_v18 = vsel %vm2658_vm4, %v2641_v54, %v2315_v38 }
 0x1a2   : > { %v2688_v37 = vsel %vm2658_vm4, %v2655_v49, %v2329_v11 }
 0x1a4   : > { %v2441_v57 = vpop.permute.xlu0 %2440 }
 0x1a5   : > { %v2331_v26 = vpop.permute.xlu1 %2330  ;;  %v2705_v56 = vsel %vm2691_vm6, %v2672_v2, %v2441_v57 }
 0x1a6   : > { %4359 = vmatprep.mubr.msk.bf16.mxu0 %vm2751_vm11, %v2705_v56  ;;  %v2690_v31 = vsel %vm2658_vm4, %v2657_v6, %v2331_v26 }
 0x1a8   : > { %v2443_v41 = vpop.permute.xlu0 %2442 }
 0x1a9   : > { %v2457_v34 = vpop.permute.xlu1 %2456  ;;  %v2707_v59 = vsel %vm2691_vm6, %v2674_v18, %v2443_v41 }
 0x1aa   : > { %v2721_v55 = vsel %vm2691_vm6, %v2688_v37, %v2457_v34  ;;  %4360 = vmatmul.mubr.msk.bf16.gmra.mxu0 %vm2751_vm11, %v2707_v59 }
 0x1ab   : > { %4375 = vmatprep.mubr.msk.bf16.mxu1 %vm2751_vm11, %v2721_v55 }
 0x1ad   : > { %v2459_v29 = vpop.permute.xlu1 %2458 }
 0x1ae   : > { %v2723_v32 = vsel %vm2691_vm6, %v2690_v31, %v2459_v29  ;;  %v4349_v62 = vpop.f32.mrf.mxu0 }
 0x1af   : > { %4376 = vmatmul.mubr.msk.bf16.gmra.mxu1 %vm2751_vm11, %v2723_v32  ;;  %v2831_v50 = vadd.f32 %v4349_v62, %v6201_v27 }
 0x1b0   : > { %v2822_v17 = vpop.f32.mrf.mxu0 }
 0x1b1   : > { %v2823_v58 = vadd.f32 %v6201_v27, %v2822_v17  ;;  %v2951_v0 = vmax.f32 %v2831_v50, 0.0 }
 0x1b2   : > { %v4350_v43 = vpop.f32.mrf.mxu0  ;;  %v4365_v13 = vpop.f32.mrf.mxu1 }
 0x1b3   : > { %v2949_v35 = vmax.f32 %v2823_v58, 0.0  ;;  %v2834_v21 = vadd.f32 %v4350_v43, %v6201_v27  ;;  %v2895_v8 = vadd.f32 %v4365_v13, %v6201_v27 }
 0x1b4   : > { %v2825_v60 = vpop.f32.mrf.mxu0  ;;  %v2886_v48 = vpop.f32.mrf.mxu1 }
 0x1b5   : > { %v2981_v63 = vmax.f32 %v2949_v35, %v2951_v0  ;;  %v2826_v51 = vadd.f32 %v6201_v27, %v2825_v60  ;;  %v2887_v1 = vadd.f32 %v6201_v27, %v2886_v48  ;;  %v2952_v23 = vmax.f32 %v2834_v21, 0.0 }
 0x1b6   : > { %v2967_v25 = vmax.f32 %v2895_v8, 0.0  ;;  %v4366_v2 = vpop.f32.mrf.mxu1 }
 0x1b7   : > { %v3013_v5 = vcombine.high %v2981_v63, %v2981_v63  ;;  %v3020_v52 = vrot.slane %v2981_v63, %v6208_v9  ;;  %v2950_v20 = vmax.f32 %v2826_v51, 0.0  ;;  %v2965_v38 = vmax.f32 %v2887_v1, 0.0 }
 0x1b8   : > { %v2889_v34 = vpop.f32.mrf.mxu1  ;;  %v2898_v46 = vadd.f32 %v4366_v2, %v6201_v27 }
 0x1b9   : > { %v3027_v45 = vrot.slane %v3013_v5, %v6208_v9  ;;  %v3028_v11 = vcombine.high %v3020_v52, %v3020_v52  ;;  %v4251_v28 = vrot.slane %v3020_v52, 9  ;;  %v2982_v22 = vmax.f32 %v2950_v20, %v2952_v23 }
 0x1ba   : > { %v2989_v47 = vmax.f32 %v2965_v38, %v2967_v25  ;;  %v2890_v62 = vadd.f32 %v6201_v27, %v2889_v34  ;;  %v2968_v63 = vmax.f32 %v2898_v46, 0.0 }
 0x1bb   : > { %v3029_v61 = vcombine.high %v3027_v45, %v3027_v45  ;;  %v4252_v10 = vrot.slane %v3028_v11, 9  ;;  %v4253_v36 = vrot.slane %v3027_v45, 9  ;;  %v3541_v7 = vmax.f32 %v3020_v52, %v4251_v28 }
 0x1bc   : > { %v3149_v57 = vcombine.high %v2989_v47, %v2989_v47  ;;  %v3156_v15 = vrot.slane %v2989_v47, %v6208_v9  ;;  %v3030_v53 = vcombine.high %v2982_v22, %v2982_v22  ;;  %v3037_v26 = vrot.slane %v2982_v22, %v6208_v9 }
 0x1bd   : > { %v4254_v56 = vrot.slane %v3029_v61, 9  ;;  %v3542_v40 = vmax.f32 %v3028_v11, %v4252_v10  ;;  %v3543_v16 = vmax.f32 %v3027_v45, %v4253_v36  ;;  %v3672_v12 = vrot.slane %v3541_v7, %v6215_v24 }
 0x1be   : > { %v3163_v14 = vrot.slane %v3149_v57, %v6208_v9  ;;  %v3164_v54 = vcombine.high %v3156_v15, %v3156_v15  ;;  %v4283_v44 = vrot.slane %v3156_v15, 9  ;;  %v3044_v49 = vrot.slane %v3030_v53, %v6208_v9 }
 0x1bf   : > { %v3544_v18 = vmax.f32 %v3029_v61, %v4254_v56  ;;  %v3676_v41 = vrot.slane %v3542_v40, %v6215_v24  ;;  %v3680_v42 = vrot.slane %v3543_v16, %v6215_v24  ;;  %v3045_v37 = vcombine.high %v3037_v26, %v3037_v26 }
 0x1c0   : > { %v3165_v59 = vcombine.high %v3163_v14, %v3163_v14  ;;  %v4284_v33 = vrot.slane %v3164_v54, 9  ;;  %v4285_v55 = vrot.slane %v3163_v14, 9  ;;  %v3046_v3 = vcombine.high %v3044_v49, %v3044_v49 }
 0x1c1   : > { %v3684_v4 = vrot.slane %v3544_v18, %v6215_v24  ;;  %v3926_v30 = vsel %vm3925_vm0, %v3676_v41, %v3672_v12  ;;  %v4255_v6 = vrot.slane %v3037_v26, 9  ;;  %v3573_v29 = vmax.f32 %v3156_v15, %v4283_v44 }
 0x1c2   : > { %v3928_v31 = vsel %vm3927_vm3, %v3680_v42, %v3926_v30  ;;  %v3574_v32 = vmax.f32 %v3164_v54, %v4284_v33  ;;  %v4286_v50 = vrot.slane %v3165_v59, 9  ;;  %v4256_v39 = vrot.slane %v3045_v37, 9 }
 0x1c3   : > { %v4257_v19 = vrot.slane %v3044_v49, 9  ;;  %v4258_v17 = vrot.slane %v3046_v3, 9  ;;  %v3575_v58 = vmax.f32 %v3163_v14, %v4285_v55  ;;  %v3545_v0 = vmax.f32 %v3037_v26, %v4255_v6 }
 0x1c4   : > { %v3804_v43 = vrot.slane %v3574_v32, %v6215_v24  ;;  %v3546_v13 = vmax.f32 %v3045_v37, %v4256_v39  ;;  %v3930_v8 = vsel %vm3929_vm5, %v3684_v4, %v3928_v31  ;;  %v3800_v60 = vrot.slane %v3573_v29, %v6215_v24 }
 0x1c5   : > { %v3547_v35 = vmax.f32 %v3044_v49, %v4257_v19  ;;  %v3548_v21 = vmax.f32 %v3046_v3, %v4258_v17  ;;  %v3688_v48 = vrot.slane %v3545_v0, %v6215_v24  ;;  %v2966_v51 = vmax.f32 %v2890_v62, 0.0 }
 0x1c6   : > { %v3576_v1 = vmax.f32 %v3165_v59, %v4286_v50  ;;  %v3692_v5 = vrot.slane %v3546_v13, %v6215_v24  ;;  %v3808_v20 = vrot.slane %v3575_v58, %v6215_v24  ;;  %v3960_v45 = vsel %vm3925_vm0, %v3804_v43, %v3800_v60 }
 0x1c7   : > { %v3696_v52 = vrot.slane %v3547_v35, %v6215_v24  ;;  %v3700_v23 = vrot.slane %v3548_v21, %v6215_v24  ;;  %v3932_v25 = vsel %vm3931_vm7, %v3688_v48, %v3930_v8  ;;  %v2990_v38 = vmax.f32 %v2966_v51, %v2968_v63 }
 0x1c8   : > { %v3934_v11 = vsel %vm3933_vm8, %v3692_v5, %v3932_v25  ;;  %v3812_v61 = vrot.slane %v3576_v1, %v6215_v24  ;;  %v3961_v36 = vsel %vm3927_vm3, %v3808_v20, %v3960_v45 }
 0x1c9   : > { %v3936_v28 = vsel %vm3935_vm9, %v3696_v52, %v3934_v11  ;;  %v3166_v22 = vcombine.high %v2990_v38, %v2990_v38  ;;  %v3173_v47 = vrot.slane %v2990_v38, %v6208_v9 }
 0x1ca   : > { %v3938_v10 = vsel %vm3937_vm10, %v3700_v23, %v3936_v28  ;;  %v3962_v40 = vsel %vm3929_vm5, %v3812_v61, %v3961_v36 }
 0x1cb   : > { %3996 = vst.msk [vmem:[%s6249_s30] sm:$0xff] %vm2493_vm13, %v3938_v10  ;;  %v3180_v7 = vrot.slane %v3166_v22, %v6208_v9  ;;  %v3181_v2 = vcombine.high %v3173_v47, %v3173_v47  ;;  %v4287_v57 = vrot.slane %v3173_v47, 9 }
 0x1cd   : > { %v3182_v15 = vcombine.high %v3180_v7, %v3180_v7  ;;  %v4288_v53 = vrot.slane %v3181_v2, 9  ;;  %v4289_v26 = vrot.slane %v3180_v7, 9  ;;  %v3577_v56 = vmax.f32 %v3173_v47, %v4287_v57 }
 0x1cf   : > { %v4290_v16 = vrot.slane %v3182_v15, 9  ;;  %v3578_v12 = vmax.f32 %v3181_v2, %v4288_v53  ;;  %v3579_v14 = vmax.f32 %v3180_v7, %v4289_v26  ;;  %v3816_v54 = vrot.slane %v3577_v56, %v6215_v24 }
 0x1d1   : > { %v3580_v44 = vmax.f32 %v3182_v15, %v4290_v16  ;;  %v3820_v49 = vrot.slane %v3578_v12, %v6215_v24  ;;  %v3824_v18 = vrot.slane %v3579_v14, %v6215_v24  ;;  %v3963_v41 = vsel %vm3931_vm7, %v3816_v54, %v3962_v40 }
 0x1d3   : > { %v3828_v42 = vrot.slane %v3580_v44, %v6215_v24  ;;  %v3964_v37 = vsel %vm3933_vm8, %v3820_v49, %v3963_v41 }
 0x1d4   : > { %v3965_v34 = vsel %vm3935_vm9, %v3824_v18, %v3964_v37 }
 0x1d5   : > { %v3966_v59 = vsel %vm3937_vm10, %v3828_v42, %v3965_v34 }
 0x1d6   : > { %4000 = vst.msk [vmem:[%s6249_s30 + $0x20] sm:$0xff] %vm2493_vm13, %v3966_v59 }
 0x1ee   : > { %v4353_v33 = vpop.f32.mrf.mxu0 }
 0x1ef   : > { %v2847_v55 = vadd.f32 %v4353_v33, %v6201_v27 }
 0x1f0   : > { %v2838_v46 = vpop.f32.mrf.mxu0 }
 0x1f1   : > { %v2839_v4 = vadd.f32 %v6201_v27, %v2838_v46  ;;  %v2955_v3 = vmax.f32 %v2847_v55, 0.0 }
 0x1f2   : > { %v4354_v30 = vpop.f32.mrf.mxu0  ;;  %v4369_v6 = vpop.f32.mrf.mxu1 }
 0x1f3   : > { %v2953_v31 = vmax.f32 %v2839_v4, 0.0  ;;  %v2850_v29 = vadd.f32 %v4354_v30, %v6201_v27  ;;  %v2911_v32 = vadd.f32 %v4369_v6, %v6201_v27 }
 0x1f4   : > { %v2841_v62 = vpop.f32.mrf.mxu0  ;;  %v2902_v39 = vpop.f32.mrf.mxu1 }
 0x1f5   : > { %v2983_v50 = vmax.f32 %v2953_v31, %v2955_v3  ;;  %v2842_v19 = vadd.f32 %v6201_v27, %v2841_v62  ;;  %v2903_v17 = vadd.f32 %v6201_v27, %v2902_v39  ;;  %v2956_v0 = vmax.f32 %v2850_v29, 0.0 }
 0x1f6   : > { %v2971_v35 = vmax.f32 %v2911_v32, 0.0  ;;  %v4370_v20 = vpop.f32.mrf.mxu1 }
 0x1f7   : > { %v3047_v58 = vcombine.high %v2983_v50, %v2983_v50  ;;  %v3054_v43 = vrot.slane %v2983_v50, %v6208_v9  ;;  %v2954_v13 = vmax.f32 %v2842_v19, 0.0  ;;  %v2969_v21 = vmax.f32 %v2903_v17, 0.0 }
 0x1f8   : > { %v2905_v56 = vpop.f32.mrf.mxu1  ;;  %v2914_v14 = vadd.f32 %v4370_v20, %v6201_v27 }
 0x1f9   : > { %v3061_v8 = vrot.slane %v3047_v58, %v6208_v9  ;;  %v3062_v60 = vcombine.high %v3054_v43, %v3054_v43  ;;  %v4259_v63 = vrot.slane %v3054_v43, 9  ;;  %v2984_v48 = vmax.f32 %v2954_v13, %v2956_v0 }
 0x1fa   : > { %v2991_v51 = vmax.f32 %v2969_v21, %v2971_v35  ;;  %v2906_v34 = vadd.f32 %v6201_v27, %v2905_v56  ;;  %v2972_v50 = vmax.f32 %v2914_v14, 0.0 }
 0x1fb   : > { %v3063_v1 = vcombine.high %v3061_v8, %v3061_v8  ;;  %v4260_v5 = vrot.slane %v3062_v60, 9  ;;  %v4261_v52 = vrot.slane %v3061_v8, 9  ;;  %v3549_v23 = vmax.f32 %v3054_v43, %v4259_v63 }
 0x1fc   : > { %v3183_v25 = vcombine.high %v2991_v51, %v2991_v51  ;;  %v3190_v38 = vrot.slane %v2991_v51, %v6208_v9  ;;  %v3064_v45 = vcombine.high %v2984_v48, %v2984_v48  ;;  %v3071_v11 = vrot.slane %v2984_v48, %v6208_v9 }
 0x1fd   : > { %v4262_v28 = vrot.slane %v3063_v1, 9  ;;  %v3550_v22 = vmax.f32 %v3062_v60, %v4260_v5  ;;  %v3551_v47 = vmax.f32 %v3061_v8, %v4261_v52  ;;  %v3704_v61 = vrot.slane %v3549_v23, %v6215_v24 }
 0x1fe   : > { %v3197_v10 = vrot.slane %v3183_v25, %v6208_v9  ;;  %v3198_v36 = vcombine.high %v3190_v38, %v3190_v38  ;;  %v4291_v7 = vrot.slane %v3190_v38, 9  ;;  %v3078_v2 = vrot.slane %v3064_v45, %v6208_v9 }
 0x1ff   : > { %v3552_v57 = vmax.f32 %v3063_v1, %v4262_v28  ;;  %v3708_v15 = vrot.slane %v3550_v22, %v6215_v24  ;;  %v3712_v53 = vrot.slane %v3551_v47, %v6215_v24  ;;  %v3079_v26 = vcombine.high %v3071_v11, %v3071_v11 }
 0x200   : > { %v3199_v40 = vcombine.high %v3197_v10, %v3197_v10  ;;  %v4292_v16 = vrot.slane %v3198_v36, 9  ;;  %v4293_v12 = vrot.slane %v3197_v10, 9  ;;  %v3080_v49 = vcombine.high %v3078_v2, %v3078_v2 }
 0x201   : > { %v3716_v54 = vrot.slane %v3552_v57, %v6215_v24  ;;  %v3939_v44 = vsel %vm3925_vm0, %v3708_v15, %v3704_v61  ;;  %v4263_v18 = vrot.slane %v3071_v11, 9  ;;  %v3581_v42 = vmax.f32 %v3190_v38, %v4291_v7 }
 0x202   : > { %v3940_v41 = vsel %vm3927_vm3, %v3712_v53, %v3939_v44  ;;  %v3582_v37 = vmax.f32 %v3198_v36, %v4292_v16  ;;  %v4294_v59 = vrot.slane %v3199_v40, 9  ;;  %v4264_v33 = vrot.slane %v3079_v26, 9 }
 0x203   : > { %v4265_v55 = vrot.slane %v3078_v2, 9  ;;  %v4266_v46 = vrot.slane %v3080_v49, 9  ;;  %v3583_v4 = vmax.f32 %v3197_v10, %v4293_v12  ;;  %v3553_v3 = vmax.f32 %v3071_v11, %v4263_v18 }
 0x204   : > { %v3836_v30 = vrot.slane %v3582_v37, %v6215_v24  ;;  %v3554_v6 = vmax.f32 %v3079_v26, %v4264_v33  ;;  %v3941_v32 = vsel %vm3929_vm5, %v3716_v54, %v3940_v41  ;;  %v3832_v62 = vrot.slane %v3581_v42, %v6215_v24 }
 0x205   : > { %v3555_v31 = vmax.f32 %v3078_v2, %v4265_v55  ;;  %v3556_v29 = vmax.f32 %v3080_v49, %v4266_v46  ;;  %v3720_v39 = vrot.slane %v3553_v3, %v6215_v24  ;;  %v2970_v19 = vmax.f32 %v2906_v34, 0.0 }
 0x206   : > { %v3584_v17 = vmax.f32 %v3199_v40, %v4294_v59  ;;  %v3724_v58 = vrot.slane %v3554_v6, %v6215_v24  ;;  %v3840_v13 = vrot.slane %v3583_v4, %v6215_v24  ;;  %v3967_v8 = vsel %vm3925_vm0, %v3836_v30, %v3832_v62 }
 0x207   : > { %v3728_v43 = vrot.slane %v3555_v31, %v6215_v24  ;;  %v3732_v0 = vrot.slane %v3556_v29, %v6215_v24  ;;  %v3942_v35 = vsel %vm3931_vm7, %v3720_v39, %v3941_v32  ;;  %v2992_v21 = vmax.f32 %v2970_v19, %v2972_v50 }
 0x208   : > { %v3943_v60 = vsel %vm3933_vm8, %v3724_v58, %v3942_v35  ;;  %v3844_v1 = vrot.slane %v3584_v17, %v6215_v24  ;;  %v3968_v52 = vsel %vm3927_vm3, %v3840_v13, %v3967_v8 }
 0x209   : > { %v3944_v63 = vsel %vm3935_vm9, %v3728_v43, %v3943_v60  ;;  %v3200_v48 = vcombine.high %v2992_v21, %v2992_v21  ;;  %v3207_v51 = vrot.slane %v2992_v21, %v6208_v9 }
 0x20a   : > { %v3945_v5 = vsel %vm3937_vm10, %v3732_v0, %v3944_v63  ;;  %v3969_v22 = vsel %vm3929_vm5, %v3844_v1, %v3968_v52 }
 0x20b   : > { %3997 = vst.msk [vmem:[%s6249_s30 + $0x8] sm:$0xff] %vm2493_vm13, %v3945_v5  ;;  %v3214_v23 = vrot.slane %v3200_v48, %v6208_v9  ;;  %v3215_v20 = vcombine.high %v3207_v51, %v3207_v51  ;;  %v4295_v25 = vrot.slane %v3207_v51, 9 }
 0x20d   : > { %v3216_v38 = vcombine.high %v3214_v23, %v3214_v23  ;;  %v4296_v45 = vrot.slane %v3215_v20, 9  ;;  %v4297_v11 = vrot.slane %v3214_v23, 9  ;;  %v3585_v28 = vmax.f32 %v3207_v51, %v4295_v25 }
 0x20f   : > { %v4298_v47 = vrot.slane %v3216_v38, 9  ;;  %v3586_v61 = vmax.f32 %v3215_v20, %v4296_v45  ;;  %v3587_v10 = vmax.f32 %v3214_v23, %v4297_v11  ;;  %v3848_v36 = vrot.slane %v3585_v28, %v6215_v24 }
 0x211   : > { %v3588_v7 = vmax.f32 %v3216_v38, %v4298_v47  ;;  %v3852_v2 = vrot.slane %v3586_v61, %v6215_v24  ;;  %v3856_v57 = vrot.slane %v3587_v10, %v6215_v24  ;;  %v3970_v15 = vsel %vm3931_vm7, %v3848_v36, %v3969_v22 }
 0x213   : > { %v3860_v53 = vrot.slane %v3588_v7, %v6215_v24  ;;  %v3971_v26 = vsel %vm3933_vm8, %v3852_v2, %v3970_v15 }
 0x214   : > { %v3972_v56 = vsel %vm3935_vm9, %v3856_v57, %v3971_v26 }
 0x215   : > { %v3973_v40 = vsel %vm3937_vm10, %v3860_v53, %v3972_v56 }
 0x216   : > { %4001 = vst.msk [vmem:[%s6249_s30 + $0x28] sm:$0xff] %vm2493_vm13, %v3973_v40 }
 0x22e   : > { %v4357_v16 = vpop.f32.mrf.mxu0 }
 0x22f   : > { %v2863_v12 = vadd.f32 %v4357_v16, %v6201_v27 }
 0x230   : > { %v2854_v14 = vpop.f32.mrf.mxu0 }
 0x231   : > { %v2855_v54 = vadd.f32 %v6201_v27, %v2854_v14  ;;  %v2959_v49 = vmax.f32 %v2863_v12, 0.0 }
 0x232   : > { %v4358_v44 = vpop.f32.mrf.mxu0 }
 0x233   : > { %v4373_v18 = vpop.f32.mrf.mxu1  ;;  %v2957_v41 = vmax.f32 %v2855_v54, 0.0  ;;  %v2866_v42 = vadd.f32 %v4358_v44, %v6201_v27 }
 0x234   : > { %v2927_v37 = vadd.f32 %v4373_v18, %v6201_v27  ;;  %v2857_v34 = vpop.f32.mrf.mxu0 }
 0x235   : > { %v2985_v59 = vmax.f32 %v2957_v41, %v2959_v49  ;;  %v2918_v33 = vpop.f32.mrf.mxu1  ;;  %v2858_v55 = vadd.f32 %v6201_v27, %v2857_v34  ;;  %v2960_v3 = vmax.f32 %v2866_v42, 0.0 }
 0x236   : > { %v2919_v46 = vadd.f32 %v6201_v27, %v2918_v33  ;;  %v2975_v31 = vmax.f32 %v2927_v37, 0.0 }
 0x237   : > { %v3081_v4 = vcombine.high %v2985_v59, %v2985_v59  ;;  %v3088_v30 = vrot.slane %v2985_v59, %v6208_v9  ;;  %v2958_v6 = vmax.f32 %v2858_v55, 0.0  ;;  %v4374_v13 = vpop.f32.mrf.mxu1 }
 0x238   : > { %v2973_v29 = vmax.f32 %v2919_v46, 0.0  ;;  %v2930_v10 = vadd.f32 %v4374_v13, %v6201_v27 }
 0x239   : > { %v3095_v32 = vrot.slane %v3081_v4, %v6208_v9  ;;  %v3096_v62 = vcombine.high %v3088_v30, %v3088_v30  ;;  %v4267_v50 = vrot.slane %v3088_v30, 9  ;;  %v2986_v39 = vmax.f32 %v2958_v6, %v2960_v3  ;;  %v2921_v28 = vpop.f32.mrf.mxu1 }
 0x23a   : > { %v2993_v19 = vmax.f32 %v2973_v29, %v2975_v31  ;;  %v2922_v56 = vadd.f32 %v6201_v27, %v2921_v28  ;;  %v2976_v59 = vmax.f32 %v2930_v10, 0.0 }
 0x23b   : > { %v3097_v17 = vcombine.high %v3095_v32, %v3095_v32  ;;  %v4268_v58 = vrot.slane %v3096_v62, 9  ;;  %v4269_v43 = vrot.slane %v3095_v32, 9  ;;  %v3557_v0 = vmax.f32 %v3088_v30, %v4267_v50 }
 0x23c   : > { %v3217_v35 = vcombine.high %v2993_v19, %v2993_v19  ;;  %v3224_v21 = vrot.slane %v2993_v19, %v6208_v9  ;;  %v3098_v8 = vcombine.high %v2986_v39, %v2986_v39  ;;  %v3105_v60 = vrot.slane %v2986_v39, %v6208_v9 }
 0x23d   : > { %v4270_v63 = vrot.slane %v3097_v17, 9  ;;  %v3558_v48 = vmax.f32 %v3096_v62, %v4268_v58  ;;  %v3559_v51 = vmax.f32 %v3095_v32, %v4269_v43  ;;  %v3736_v1 = vrot.slane %v3557_v0, %v6215_v24 }
 0x23e   : > { %v3231_v5 = vrot.slane %v3217_v35, %v6208_v9  ;;  %v3232_v52 = vcombine.high %v3224_v21, %v3224_v21  ;;  %v4299_v23 = vrot.slane %v3224_v21, 9  ;;  %v3112_v20 = vrot.slane %v3098_v8, %v6208_v9 }
 0x23f   : > { %v3560_v25 = vmax.f32 %v3097_v17, %v4270_v63  ;;  %v3740_v38 = vrot.slane %v3558_v48, %v6215_v24  ;;  %v3744_v45 = vrot.slane %v3559_v51, %v6215_v24  ;;  %v3113_v11 = vcombine.high %v3105_v60, %v3105_v60 }
 0x240   : > { %v3233_v22 = vcombine.high %v3231_v5, %v3231_v5  ;;  %v4300_v47 = vrot.slane %v3232_v52, 9  ;;  %v4301_v61 = vrot.slane %v3231_v5, 9  ;;  %v3114_v2 = vcombine.high %v3112_v20, %v3112_v20 }
 0x241   : > { %v3748_v36 = vrot.slane %v3560_v25, %v6215_v24  ;;  %v3946_v7 = vsel %vm3925_vm0, %v3740_v38, %v3736_v1  ;;  %v4271_v57 = vrot.slane %v3105_v60, 9  ;;  %v3589_v53 = vmax.f32 %v3224_v21, %v4299_v23 }
 0x242   : > { %v3947_v15 = vsel %vm3927_vm3, %v3744_v45, %v3946_v7  ;;  %v3590_v26 = vmax.f32 %v3232_v52, %v4300_v47  ;;  %v4302_v40 = vrot.slane %v3233_v22, 9  ;;  %v4272_v16 = vrot.slane %v3113_v11, 9 }
 0x243   : > { %v4273_v12 = vrot.slane %v3112_v20, 9  ;;  %v4274_v14 = vrot.slane %v3114_v2, 9  ;;  %v3591_v54 = vmax.f32 %v3231_v5, %v4301_v61  ;;  %v3561_v49 = vmax.f32 %v3105_v60, %v4271_v57 }
 0x244   : > { %v3868_v44 = vrot.slane %v3590_v26, %v6215_v24  ;;  %v3562_v18 = vmax.f32 %v3113_v11, %v4272_v16  ;;  %v3948_v37 = vsel %vm3929_vm5, %v3748_v36, %v3947_v15  ;;  %v3864_v34 = vrot.slane %v3589_v53, %v6215_v24 }
 0x245   : > { %v3563_v41 = vmax.f32 %v3112_v20, %v4273_v12  ;;  %v3564_v42 = vmax.f32 %v3114_v2, %v4274_v14  ;;  %v3752_v33 = vrot.slane %v3561_v49, %v6215_v24  ;;  %v2974_v55 = vmax.f32 %v2922_v56, 0.0 }
 0x246   : > { %v3592_v46 = vmax.f32 %v3233_v22, %v4302_v40  ;;  %v3756_v4 = vrot.slane %v3562_v18, %v6215_v24  ;;  %v3872_v6 = vrot.slane %v3591_v54, %v6215_v24  ;;  %v3974_v32 = vsel %vm3925_vm0, %v3868_v44, %v3864_v34 }
 0x247   : > { %v3760_v30 = vrot.slane %v3563_v41, %v6215_v24  ;;  %v3764_v3 = vrot.slane %v3564_v42, %v6215_v24  ;;  %v3949_v31 = vsel %vm3931_vm7, %v3752_v33, %v3948_v37  ;;  %v2994_v29 = vmax.f32 %v2974_v55, %v2976_v59 }
 0x248   : > { %v3950_v62 = vsel %vm3933_vm8, %v3756_v4, %v3949_v31  ;;  %v3876_v17 = vrot.slane %v3592_v46, %v6215_v24  ;;  %v3975_v43 = vsel %vm3927_vm3, %v3872_v6, %v3974_v32 }
 0x249   : > { %v3951_v50 = vsel %vm3935_vm9, %v3760_v30, %v3950_v62  ;;  %v3234_v39 = vcombine.high %v2994_v29, %v2994_v29  ;;  %v3241_v19 = vrot.slane %v2994_v29, %v6208_v9 }
 0x24a   : > { %v3952_v58 = vsel %vm3937_vm10, %v3764_v3, %v3951_v50  ;;  %v3976_v48 = vsel %vm3929_vm5, %v3876_v17, %v3975_v43 }
 0x24b   : > { %3998 = vst.msk [vmem:[%s6249_s30 + $0x10] sm:$0xff] %vm2493_vm13, %v3952_v58  ;;  %v3248_v0 = vrot.slane %v3234_v39, %v6208_v9  ;;  %v3249_v13 = vcombine.high %v3241_v19, %v3241_v19  ;;  %v4303_v35 = vrot.slane %v3241_v19, 9 }
 0x24d   : > { %v3250_v21 = vcombine.high %v3248_v0, %v3248_v0  ;;  %v4304_v8 = vrot.slane %v3249_v13, 9  ;;  %v4305_v60 = vrot.slane %v3248_v0, 9  ;;  %v3593_v63 = vmax.f32 %v3241_v19, %v4303_v35 }
 0x24f   : > { %v4306_v51 = vrot.slane %v3250_v21, 9  ;;  %v3594_v1 = vmax.f32 %v3249_v13, %v4304_v8  ;;  %v3595_v5 = vmax.f32 %v3248_v0, %v4305_v60  ;;  %v3880_v52 = vrot.slane %v3593_v63, %v6215_v24 }
 0x251   : > { %v3596_v23 = vmax.f32 %v3250_v21, %v4306_v51  ;;  %v3884_v20 = vrot.slane %v3594_v1, %v6215_v24  ;;  %v3888_v25 = vrot.slane %v3595_v5, %v6215_v24  ;;  %v3977_v38 = vsel %vm3931_vm7, %v3880_v52, %v3976_v48 }
 0x253   : > { %v3892_v45 = vrot.slane %v3596_v23, %v6215_v24  ;;  %v3978_v11 = vsel %vm3933_vm8, %v3884_v20, %v3977_v38 }
 0x254   : > { %v3979_v28 = vsel %vm3935_vm9, %v3888_v25, %v3978_v11 }
 0x255   : > { %v3980_v22 = vsel %vm3937_vm10, %v3892_v45, %v3979_v28 }
 0x256   : > { %4002 = vst.msk [vmem:[%s6249_s30 + $0x30] sm:$0xff] %vm2493_vm13, %v3980_v22 }
 0x26a   : > { %v4361_v47 = vpop.f32.mrf.mxu0 }
 0x26b   : > { %v2879_v61 = vadd.f32 %v4361_v47, %v6201_v27 }
 0x26c   : > { %v2870_v10 = vpop.f32.mrf.mxu0 }
 0x26d   : > { %v2871_v36 = vadd.f32 %v6201_v27, %v2870_v10  ;;  %v2963_v2 = vmax.f32 %v2879_v61, 0.0 }
 0x26e   : > { %v4362_v7 = vpop.f32.mrf.mxu0 }
 0x26f   : > { %v4377_v57 = vpop.f32.mrf.mxu1  ;;  %v2961_v15 = vmax.f32 %v2871_v36, 0.0  ;;  %v2882_v53 = vadd.f32 %v4362_v7, %v6201_v27 }
 0x270   : > { %v2943_v26 = vadd.f32 %v4377_v57, %v6201_v27  ;;  %v2873_v56 = vpop.f32.mrf.mxu0 }
 0x271   : > { %v2987_v40 = vmax.f32 %v2961_v15, %v2963_v2  ;;  %v2934_v16 = vpop.f32.mrf.mxu1  ;;  %v2874_v12 = vadd.f32 %v6201_v27, %v2873_v56  ;;  %v2964_v49 = vmax.f32 %v2882_v53, 0.0 }
 0x272   : > { %v2935_v14 = vadd.f32 %v6201_v27, %v2934_v16  ;;  %v2979_v41 = vmax.f32 %v2943_v26, 0.0 }
 0x273   : > { %v3115_v54 = vcombine.high %v2987_v40, %v2987_v40  ;;  %v3122_v44 = vrot.slane %v2987_v40, %v6208_v9  ;;  %v2962_v18 = vmax.f32 %v2874_v12, 0.0  ;;  %v4378_v6 = vpop.f32.mrf.mxu1 }
 0x274   : > { %v2977_v42 = vmax.f32 %v2935_v14, 0.0  ;;  %v2946_v5 = vadd.f32 %v4378_v6, %v6201_v27 }
 0x275   : > { %v3129_v37 = vrot.slane %v3115_v54, %v6208_v9  ;;  %v3130_v34 = vcombine.high %v3122_v44, %v3122_v44  ;;  %v4275_v59 = vrot.slane %v3122_v44, 9  ;;  %v2988_v33 = vmax.f32 %v2962_v18, %v2964_v49  ;;  %v2937_v63 = vpop.f32.mrf.mxu1 }
 0x276   : > { %v2995_v55 = vmax.f32 %v2977_v42, %v2979_v41  ;;  %v2938_v28 = vadd.f32 %v6201_v27, %v2937_v63  ;;  %v2980_v40 = vmax.f32 %v2946_v5, 0.0 }
 0x277   : > { %v3131_v46 = vcombine.high %v3129_v37, %v3129_v37  ;;  %v4276_v4 = vrot.slane %v3130_v34, 9  ;;  %v4277_v30 = vrot.slane %v3129_v37, 9  ;;  %v3565_v3 = vmax.f32 %v3122_v44, %v4275_v59 }
 0x278   : > { %v3251_v31 = vcombine.high %v2995_v55, %v2995_v55  ;;  %v3258_v29 = vrot.slane %v2995_v55, %v6208_v9  ;;  %v3132_v32 = vcombine.high %v2988_v33, %v2988_v33  ;;  %v3139_v62 = vrot.slane %v2988_v33, %v6208_v9 }
 0x279   : > { %v4278_v50 = vrot.slane %v3131_v46, 9  ;;  %v3566_v39 = vmax.f32 %v3130_v34, %v4276_v4  ;;  %v3567_v19 = vmax.f32 %v3129_v37, %v4277_v30  ;;  %v3768_v17 = vrot.slane %v3565_v3, %v6215_v24 }
 0x27a   : > { %v3265_v58 = vrot.slane %v3251_v31, %v6208_v9  ;;  %v3266_v43 = vcombine.high %v3258_v29, %v3258_v29  ;;  %v4307_v0 = vrot.slane %v3258_v29, 9  ;;  %v3146_v13 = vrot.slane %v3132_v32, %v6208_v9 }
 0x27b   : > { %v3568_v35 = vmax.f32 %v3131_v46, %v4278_v50  ;;  %v3772_v21 = vrot.slane %v3566_v39, %v6215_v24  ;;  %v3776_v8 = vrot.slane %v3567_v19, %v6215_v24  ;;  %v3147_v60 = vcombine.high %v3139_v62, %v3139_v62 }
 0x27c   : > { %v3267_v48 = vcombine.high %v3265_v58, %v3265_v58  ;;  %v4308_v51 = vrot.slane %v3266_v43, 9  ;;  %v4309_v1 = vrot.slane %v3265_v58, 9  ;;  %v3148_v20 = vcombine.high %v3146_v13, %v3146_v13 }
 0x27d   : > { %v3780_v52 = vrot.slane %v3568_v35, %v6215_v24  ;;  %v3953_v23 = vsel %vm3925_vm0, %v3772_v21, %v3768_v17  ;;  %v4279_v25 = vrot.slane %v3139_v62, 9  ;;  %v3597_v45 = vmax.f32 %v3258_v29, %v4307_v0 }
 0x27e   : > { %v3954_v38 = vsel %vm3927_vm3, %v3776_v8, %v3953_v23  ;;  %v3598_v11 = vmax.f32 %v3266_v43, %v4308_v51  ;;  %v4310_v22 = vrot.slane %v3267_v48, 9  ;;  %v4280_v47 = vrot.slane %v3147_v60, 9 }
 0x27f   : > { %v4281_v61 = vrot.slane %v3146_v13, 9  ;;  %v4282_v10 = vrot.slane %v3148_v20, 9  ;;  %v3599_v36 = vmax.f32 %v3265_v58, %v4309_v1  ;;  %v3569_v2 = vmax.f32 %v3139_v62, %v4279_v25 }
 0x280   : > { %v3900_v7 = vrot.slane %v3598_v11, %v6215_v24  ;;  %v3570_v57 = vmax.f32 %v3147_v60, %v4280_v47  ;;  %v3955_v26 = vsel %vm3929_vm5, %v3780_v52, %v3954_v38  ;;  %v3896_v56 = vrot.slane %v3597_v45, %v6215_v24 }
 0x281   : > { %v3571_v15 = vmax.f32 %v3146_v13, %v4281_v61  ;;  %v3572_v53 = vmax.f32 %v3148_v20, %v4282_v10  ;;  %v3784_v16 = vrot.slane %v3569_v2, %v6215_v24  ;;  %v2978_v12 = vmax.f32 %v2938_v28, 0.0 }
 0x282   : > { %v3600_v27 = vmax.f32 %v3267_v48, %v4310_v22  ;;  %v3788_v14 = vrot.slane %v3570_v57, %v6215_v24  ;;  %v3904_v49 = vrot.slane %v3599_v36, %v6215_v24  ;;  %v3981_v42 = vsel %vm3925_vm0, %v3900_v7, %v3896_v56 }
 0x283   : > { %v3792_v54 = vrot.slane %v3571_v15, %v6215_v24  ;;  %v3796_v44 = vrot.slane %v3572_v53, %v6215_v24  ;;  %v3956_v18 = vsel %vm3931_vm7, %v3784_v16, %v3955_v26  ;;  %v2996_v41 = vmax.f32 %v2978_v12, %v2980_v40 }
 0x284   : > { %v3957_v37 = vsel %vm3933_vm8, %v3788_v14, %v3956_v18  ;;  %v3908_v55 = vrot.slane %v3600_v27, %v6215_v24  ;;  %v3982_v4 = vsel %vm3927_vm3, %v3904_v49, %v3981_v42 }
 0x285   : > { %v3958_v34 = vsel %vm3935_vm9, %v3792_v54, %v3957_v37  ;;  %v3268_v59 = vcombine.high %v2996_v41, %v2996_v41  ;;  %v3275_v33 = vrot.slane %v2996_v41, %v6208_v9 }
 0x286   : > { %v3959_v46 = vsel %vm3937_vm10, %v3796_v44, %v3958_v34  ;;  %v3983_v50 = vsel %vm3929_vm5, %v3908_v55, %v3982_v4 }
 0x287   : > { %3999 = vst.msk [vmem:[%s6249_s30 + $0x18] sm:$0xff] %vm2493_vm13, %v3959_v46  ;;  %v3282_v30 = vrot.slane %v3268_v59, %v6208_v9  ;;  %v3283_v3 = vcombine.high %v3275_v33, %v3275_v33  ;;  %v4311_v6 = vrot.slane %v3275_v33, 9 }
 0x289   : > { %v3284_v31 = vcombine.high %v3282_v30, %v3282_v30  ;;  %v4312_v29 = vrot.slane %v3283_v3, 9  ;;  %v4313_v32 = vrot.slane %v3282_v30, 9  ;;  %v3601_v62 = vmax.f32 %v3275_v33, %v4311_v6 }
 0x28b   : > { %v4314_v39 = vrot.slane %v3284_v31, 9  ;;  %v3602_v19 = vmax.f32 %v3283_v3, %v4312_v29  ;;  %v3603_v17 = vmax.f32 %v3282_v30, %v4313_v32  ;;  %v3912_v58 = vrot.slane %v3601_v62, %v6215_v24 }
 0x28d   : > { %v3604_v43 = vmax.f32 %v3284_v31, %v4314_v39  ;;  %v3916_v9 = vrot.slane %v3602_v19, %v6215_v24  ;;  %v3920_v0 = vrot.slane %v3603_v17, %v6215_v24  ;;  %v3984_v13 = vsel %vm3931_vm7, %v3912_v58, %v3983_v50 }
 0x28f   : > { %v3924_v35 = vrot.slane %v3604_v43, %v6215_v24  ;;  %v3985_v21 = vsel %vm3933_vm8, %v3916_v9, %v3984_v13 }
 0x290   : > { %v3986_v8 = vsel %vm3935_vm9, %v3920_v0, %v3985_v21 }
 0x291   : > { %v3987_v60 = vsel %vm3937_vm10, %v3924_v35, %v3986_v8 }
 0x292   : > { %4003 = vst.msk [vmem:[%s6249_s30 + $0x38] sm:$0xff] %vm2493_vm13, %v3987_v60 }
 0x293   : > { %4592 = shalt.err (!%p4589_p3)
}
 0x294   : > { %s4593_s19 = scalar_lea.hbm %s6416_s8, 1024  ;;  %s4597_s25 = scalar_lea.hbm %s6470_s3, 2048 }
 0x295   : > { %p4594_p4 = scmp.ne.s32.totalorder %s6416_s8, %s4593_s19  ;;  %p4598_p9 = scmp.lt.s32.totalorder %s6416_s8, %s6470_s3 }
 0x296   : > { %p4599_p10 = scmp.lt.s32.totalorder %s4597_s25, %s4593_s19 }
 0x297   : > { %p4595_p7 = pnand %p4594_p4, %p4711_p5 }
 0x298   : > { %p4600_p11 = por %p4599_p10, %p4598_p9 }
 0x299   : > { %p4596_p8 = pneg %p4595_p7 }
 0x29b   : > { %p4601_p12 = pnand %p4600_p11, %p4596_p8 }
 0x29d   : > { %4604 = shalt.err (!%p4601_p12)
}
 0x29e   : > { %s4652_s28 = smov 128  }
 0x29f   : > { %4387 = dma.vmem_to_hbm [thread:$0]  (%p4711_p5), %s6419_s5, 1024, %s6416_s8, %s6426_s16, %s4652_s28, %s4652_s28, %s4642_s29  }
 0x2a0 PF: > { %p4393_p13 = scmp.ge.s32.totalorder %s4639_s15, 2  ;;  %s4033_s30 = sand.u32 1, %s4627_s12  }
 0x2a1   : > { %s4034_s4 = scalar_lea.sflag [#allocation4], %s4033_s30 }
 0x2a2   : > { %p4390_p0 = pnand %p4393_p13, %p4715_p6 }
 0x2a4   : > { %p4391_p1 = pneg %p4390_p0 }
 0x2a6   : > { %4622 = dma.done.wait (%p4391_p1), %s4034_s4, 1024  }
 0x2a7   : > { %4624 = vsyncadd (%p4391_p1), %s4034_s4, 4294966272  ;;  %p13_p2 = scmp.ge.s32.totalorder %s4698_s18, 4   ;;  %s6502_s12 = smov %s4631_s13 }
 0x2a8   : > { %s6503_s13 = smov %s4635_s14  ;;  %s6504_s14 = smov %s4709_s21 }
 0x2a9   : > { %s6505_s15 = smov %s4698_s18  ;;  %15 = sbr.rel (!%p13_p2) target bundleno = 3 (0x3), region = 70 }
 0x2ae   :  { %4039 = vsyncpa [#allocation4], 1 }
 0x2af   :  { %4041 = vsyncpa [#allocation4 + $0x1], 1 }

</bundles_post_ra>
